<compile_context>
chip_gen: v7x
topology: tpu7x:2x2x1
jax: 0.10.0
libtpu: 0.0.40
codegen_flags: <defaults>
</compile_context>

<pallas_src>
import functools
import math

import jax
import jax.numpy as jnp
from jax.experimental import pallas as pl
from jax.experimental.pallas import tpu as pltpu


# ------------------------------- fused kernel --------------------------------


def _encoder_kernel(p1_ref, w1_ref, b1_ref, w2_ref, b2_ref, w3_ref, b3_ref,
                    w4_ref, b4_ref, wt_ref, bt_ref, g_ref, beta_ref, o_ref,
                    *, conv1_hw, frame_hw):
    """Whole Encoderv2 forward for one image (one grid step).

    p1_ref : [H1*W1, 9*Cin]    bf16  conv1 im2col patches (norm folded into w1/b1)
    w1_ref : [9*Cin, 32]       bf16
    w{2,3,4}_ref : [9, 32, 32] bf16  per-tap weights, tap k = kh*3 + kw
    wt_ref : [fh*fw, 32, 512]  bf16  trunk weight, NHWC (spatial-major) row order
    b*_ref, bt_ref, g_ref, beta_ref : [1, N] f32
    o_ref  : [1, 512]          f32
    """
    ch, cw = conv1_hw            # conv1 output grid (row stride = cw)
    fh, fw = frame_hw            # conv4 output grid
    step = 2 * cw + 2            # rows consumed by one stride-1 3x3 conv

    # ---- conv1: plain matmul on host-built stride-2 patches -------------------
    a = jnp.dot(p1_ref[...], w1_ref[...], preferred_element_type=jnp.float32)
    a = jnp.maximum(a + b1_ref[...], 0.0)          # [ch*cw, 32] f32, row = y*cw + x

    # ---- conv2..conv4 (stride 1): sum of 9 shifted-row matmuls ----------------
    # The activation keeps row stride cw; row r is valid iff (r // cw, r % cw) is
    # inside the layer's valid grid.  Valid rows only ever read valid rows, so the
    # trailing "don't care" rows are harmless filler work.
    def conv3x3(x, wk_ref, bk_ref):
        rows = x.shape[0] - step
        acc = None
        for k in range(9):
            off = (k // 3) * cw + (k % 3)
            lhs = x[off:off + rows, :].astype(jnp.bfloat16)
            t = jnp.dot(lhs, wk_ref[k], preferred_element_type=jnp.float32)
            acc = t if acc is None else acc + t
        return jnp.maximum(acc + bk_ref[...], 0.0)

    a = conv3x3(a, w2_ref, b2_ref)
    a = conv3x3(a, w3_ref, b3_ref)
    a = conv3x3(a, w4_ref, b4_ref)                 # [ch*cw - 3*step, 32]

    # ---- trunk Linear: h.view(B, -1) @ Wt -------------------------------------
    # Implemented as a sum over the fh*fw valid spatial positions of a [1, 32] row
    # times its [32, 512] weight slab (Wt rows pre-permuted to NHWC order on host),
    # which avoids any in-kernel flatten/relayout of the activation.
    y = bt_ref[...]
    for s in range(fh * fw):
        off = (s // fw) * cw + (s % fw)
        row = a[off:off + 1, :].astype(jnp.bfloat16)
        y = y + jnp.dot(row, wt_ref[s], preferred_element_type=jnp.float32)

    # ---- LayerNorm (biased var, eps=1e-5) + Tanh, all f32 ---------------------
    mean = jnp.mean(y, axis=-1, keepdims=True)
    var = jnp.mean((y - mean) ** 2, axis=-1, keepdims=True)
    yn = (y - mean) * jax.lax.rsqrt(var + 1e-5)
    o_ref[...] = jnp.tanh(yn * g_ref[...] + beta_ref[...])


# ------------------------------ host-side prep --------------------------------


def prepare_params(params, obs_shape):
    """One-time conversion of PyTorch-layout params to the fused-kernel layout."""
    C, H, W = obs_shape
    h1, w1 = (H - 3) // 2 + 1, (W - 3) // 2 + 1
    fh, fw = h1 - 6, w1 - 6

    w1c, b1c = params["w1"], params["b1"]          # [32, C, 3, 3], [32]
    # Fold obs/255 - 0.5 into conv1:
    #   conv(x/255 - 0.5, W) + b = conv(x, W/255) + (b - 0.5 * sum_{cin,kh,kw} W).
    w1_fold = w1c / 255.0
    b1_fold = b1c - 0.5 * jnp.sum(w1c, axis=(1, 2, 3))

    def conv1_mat(w):        # [OC, Cin, 3, 3] -> [9*Cin, OC], rows ordered (kh, kw, cin)
        return jnp.transpose(w, (2, 3, 1, 0)).reshape(-1, w.shape[0])

    def conv_taps(w):        # [OC, 32, 3, 3] -> [9, 32, OC], tap k = kh*3 + kw
        return jnp.transpose(w, (2, 3, 1, 0)).reshape(9, w.shape[1], w.shape[0])

    wt = params["wt"]                              # [32*fh*fw, 512], rows in NCHW order
    feat, d = wt.shape
    assert feat == 32 * fh * fw
    # rows (c, y, x) -> slabs [(y, x), c, :]  (matches the kernel's NHWC flatten)
    wt3 = wt.reshape(32, fh, fw, d).transpose(1, 2, 0, 3).reshape(fh * fw, 32, d)

    f32, bf16 = jnp.float32, jnp.bfloat16
    return {
        "w1": conv1_mat(w1_fold).astype(bf16), "b1": b1_fold.reshape(1, -1).astype(f32),
        "w2": conv_taps(params["w2"]).astype(bf16), "b2": params["b2"].reshape(1, -1).astype(f32),
        "w3": conv_taps(params["w3"]).astype(bf16), "b3": params["b3"].reshape(1, -1).astype(f32),
        "w4": conv_taps(params["w4"]).astype(bf16), "b4": params["b4"].reshape(1, -1).astype(f32),
        "wt": wt3.astype(bf16), "bt": params["bt"].reshape(1, -1).astype(f32),
        "gamma": params["gamma"].reshape(1, -1).astype(f32),
        "beta": params["beta"].reshape(1, -1).astype(f32),
    }


def encoder_v2_forward(obs, prep):
    """obs: [B, C, H, W] raw pixels (f32).  Returns [B, 512] f32."""
    B, C, H, W = obs.shape
    h1, w1 = (H - 3) // 2 + 1, (W - 3) // 2 + 1     # conv1 output grid
    fh, fw = h1 - 6, w1 - 6                          # conv4 output grid
    assert fh >= 1 and fw >= 1
    assert prep["wt"].shape[0] == fh * fw

    # Host-side im2col for the stride-2 conv1 only (columns ordered kh, kw, cin).
    # TODO(synk): stride-2 window gathers are left to XLA; the three stride-1 convs
    # are done in-kernel on VMEM-resident data.
    x = jnp.transpose(obs, (0, 2, 3, 1))             # NHWC
    taps = [x[:, i:i + 2 * h1 - 1:2, j:j + 2 * w1 - 1:2, :]
            for i in range(3) for j in range(3)]
    p1 = jnp.concatenate(taps, axis=-1).reshape(B, h1 * w1, 9 * C).astype(jnp.bfloat16)

    kernel = functools.partial(_encoder_kernel, conv1_hw=(h1, w1), frame_hw=(fh, fw))

    r1, k1 = h1 * w1, 9 * C
    weights = [prep["w1"], prep["b1"], prep["w2"], prep["b2"], prep["w3"], prep["b3"],
               prep["w4"], prep["b4"], prep["wt"], prep["bt"], prep["gamma"], prep["beta"]]

    def resident(a):
        # Full-array block with a constant index_map -> DMA'd once, stays in VMEM.
        return pl.BlockSpec(a.shape, lambda i: (0,) * a.ndim)

    step = 2 * w1 + 2
    rows2, rows3, rows4 = r1 - step, r1 - 2 * step, r1 - 3 * step
    flops = 2 * B * (r1 * k1 * 32 + (rows2 + rows3 + rows4) * 9 * 32 * 32
                     + fh * fw * 32 * 512)
    bytes_accessed = int(p1.size * 2
                         + sum(a.size * a.dtype.itemsize for a in weights)
                         + B * 512 * 4)

    out = pl.pallas_call(
        kernel,
        out_shape=jax.ShapeDtypeStruct((B, 1, 512), jnp.float32),
        grid_spec=pltpu.PrefetchScalarGridSpec(
            num_scalar_prefetch=0,
            grid=(B,),
            in_specs=[pl.BlockSpec((None, r1, k1), lambda i: (i, 0, 0))]
                     + [resident(a) for a in weights],
            out_specs=pl.BlockSpec((None, 1, 512), lambda i: (i, 0, 0)),
        ),
        compiler_params=pltpu.CompilerParams(
            dimension_semantics=("parallel",),        # shard batch across TCs on v7x
            vmem_limit_bytes=32 * 1024 * 1024,
        ),
        cost_estimate=pl.CostEstimate(
            flops=flops, transcendentals=2 * B * 512, bytes_accessed=bytes_accessed),
    )(p1, *weights)
    return out.reshape(B, 512)


# ------------------------------ param init ------------------------------------


def init_params(key, obs_shape):
    C, H, W = obs_shape
    frame = (H - 3) // 2 + 1 - 6
    feat = 32 * frame * frame
    ks = jax.random.split(key, 12)

    # TODO(synk): utils.weight_init (orthogonal) is not reproduced; plain normal init.
    def conv_w(k, oc, ic):
        return jax.random.normal(k, (oc, ic, 3, 3), jnp.float32) * 0.1

    def bias(k, n):
        return jax.random.normal(k, (n,), jnp.float32) * 0.1

    return {
        "w1": conv_w(ks[0], 32, C), "b1": bias(ks[1], 32),
        "w2": conv_w(ks[2], 32, 32), "b2": bias(ks[3], 32),
        "w3": conv_w(ks[4], 32, 32), "b3": bias(ks[5], 32),
        "w4": conv_w(ks[6], 32, 32), "b4": bias(ks[7], 32),
        # trunk linear stored as [in, out] (transposed from PyTorch's [out, in])
        "wt": jax.random.normal(ks[8], (feat, 512), jnp.float32) * 0.02,
        "bt": bias(ks[9], 512),
        "gamma": 1.0 + 0.1 * jax.random.normal(ks[10], (512,), jnp.float32),
        "beta": bias(ks[11], 512),
    }


# --------------------------- pure-JAX reference --------------------------------


def reference_forward(obs, params):
    x = obs / 255.0 - 0.5

    def conv(x, w, b, stride):
        y = jax.lax.conv_general_dilated(
            x, w, (stride, stride), "VALID",
            dimension_numbers=("NCHW", "OIHW", "NCHW"),
            precision=jax.lax.Precision.HIGHEST)
        return jax.nn.relu(y + b[None, :, None, None])

    h = conv(x, params["w1"], params["b1"], 2)
    h = conv(h, params["w2"], params["b2"], 1)
    h = conv(h, params["w3"], params["b3"], 1)
    h = conv(h, params["w4"], params["b4"], 1)
    h = h.reshape(h.shape[0], -1)
    y = jnp.dot(h, params["wt"], precision=jax.lax.Precision.HIGHEST) + params["bt"]
    mean = jnp.mean(y, axis=-1, keepdims=True)
    var = jnp.mean((y - mean) ** 2, axis=-1, keepdims=True)
    yn = (y - mean) / jnp.sqrt(var + 1e-5)
    return jnp.tanh(yn * params["gamma"] + params["beta"])


# ---------------------------------- main ---------------------------------------

if __name__ == "__main__":
    # obs_shape = (4, 21, 21): frame_size = (21-3)//2 + 1 - 6 = 4 -> trunk in = 512
    obs_shape = (4, 21, 21)
    B = 2

    key = jax.random.PRNGKey(0)
    k_obs, k_params = jax.random.split(key)
    obs = jax.random.uniform(k_obs, (B, *obs_shape), jnp.float32, 0.0, 255.0)
    params = init_params(k_params, obs_shape)

    prep = prepare_params(params, obs_shape)
    fwd = jax.jit(encoder_v2_forward)
    out = jax.block_until_ready(fwd(obs, prep))
    assert out.shape == (B, 512), out.shape

    ref = jax.block_until_ready(reference_forward(obs, params))
    max_err = float(jnp.max(jnp.abs(out - ref)))
    # bf16 MXU operands vs an f32 (HIGHEST precision) reference: a few 1e-3 of
    # absolute error on the tanh-bounded output is expected; any layout /
    # permutation bug would produce O(1) errors.
    assert max_err < 2e-2, max_err
    print("KERNEL_OK")
</pallas_src>

<mosaic_0001>
module attributes {stable_mosaic.version = 11 : i64} {
  func.func @_encoder_kernel(%arg0: i32, %arg1: memref<1x100x36xbf16, #tpu.memory_space<vmem>>, %arg2: memref<36x32xbf16, #tpu.memory_space<vmem>>, %arg3: memref<1x32xf32, #tpu.memory_space<vmem>>, %arg4: memref<9x32x32xbf16, #tpu.memory_space<vmem>>, %arg5: memref<1x32xf32, #tpu.memory_space<vmem>>, %arg6: memref<9x32x32xbf16, #tpu.memory_space<vmem>>, %arg7: memref<1x32xf32, #tpu.memory_space<vmem>>, %arg8: memref<9x32x32xbf16, #tpu.memory_space<vmem>>, %arg9: memref<1x32xf32, #tpu.memory_space<vmem>>, %arg10: memref<16x32x512xbf16, #tpu.memory_space<vmem>>, %arg11: memref<1x512xf32, #tpu.memory_space<vmem>>, %arg12: memref<1x512xf32, #tpu.memory_space<vmem>>, %arg13: memref<1x512xf32, #tpu.memory_space<vmem>>, %arg14: memref<1x1x512xf32, #tpu.memory_space<vmem>>) attributes {dimension_semantics = [#tpu.dimension_semantics<parallel>], iteration_bounds = array<i64: 2>, scalar_prefetch = 0 : i64, scratch_operands = 0 : i64, tpu.core_type = #tpu.core_type<tc>, window_params = [{transform_indices = @transform_0, window_bounds = array<i64: 1, 100, 36>}, {pipeline_mode = #tpu.pipeline_mode<synchronous>, transform_indices = @transform_1, window_bounds = array<i64: 36, 32>}, {pipeline_mode = #tpu.pipeline_mode<synchronous>, transform_indices = @transform_2, window_bounds = array<i64: 1, 32>}, {pipeline_mode = #tpu.pipeline_mode<synchronous>, transform_indices = @transform_3, window_bounds = array<i64: 9, 32, 32>}, {pipeline_mode = #tpu.pipeline_mode<synchronous>, transform_indices = @transform_4, window_bounds = array<i64: 1, 32>}, {pipeline_mode = #tpu.pipeline_mode<synchronous>, transform_indices = @transform_5, window_bounds = array<i64: 9, 32, 32>}, {pipeline_mode = #tpu.pipeline_mode<synchronous>, transform_indices = @transform_6, window_bounds = array<i64: 1, 32>}, {pipeline_mode = #tpu.pipeline_mode<synchronous>, transform_indices = @transform_7, window_bounds = array<i64: 9, 32, 32>}, {pipeline_mode = #tpu.pipeline_mode<synchronous>, transform_indices = @transform_8, window_bounds = array<i64: 1, 32>}, {pipeline_mode = #tpu.pipeline_mode<synchronous>, transform_indices = @transform_9, window_bounds = array<i64: 16, 32, 512>}, {pipeline_mode = #tpu.pipeline_mode<synchronous>, transform_indices = @transform_10, window_bounds = array<i64: 1, 512>}, {pipeline_mode = #tpu.pipeline_mode<synchronous>, transform_indices = @transform_11, window_bounds = array<i64: 1, 512>}, {pipeline_mode = #tpu.pipeline_mode<synchronous>, transform_indices = @transform_12, window_bounds = array<i64: 1, 512>}, {transform_indices = @transform_13, window_bounds = array<i64: 1, 1, 512>}]} {
    %c0 = arith.constant 0 : index
    %c0_0 = arith.constant 0 : index
    %c0_1 = arith.constant 0 : index
    %0 = vector.load %arg1[%c0, %c0_0, %c0_1] : memref<1x100x36xbf16, #tpu.memory_space<vmem>>, vector<1x100x36xbf16>
    %1 = vector.shape_cast %0 : vector<1x100x36xbf16> to vector<100x36xbf16>
    %c0_2 = arith.constant 0 : index
    %c0_3 = arith.constant 0 : index
    %2 = vector.load %arg2[%c0_2, %c0_3] : memref<36x32xbf16, #tpu.memory_space<vmem>>, vector<36x32xbf16>
    %cst = arith.constant dense<0.000000e+00> : vector<100x32xf32>
    %3 = tpu.matmul %1, %2, %cst {dimension_numbers = #tpu.dot_dimension_numbers<[1], [0], [0], [1], [0, 0, 1, 1], [], []>} : vector<100x36xbf16>, vector<36x32xbf16>, vector<100x32xf32> -> vector<100x32xf32>
    %c0_4 = arith.constant 0 : index
    %c0_5 = arith.constant 0 : index
    %4 = vector.load %arg3[%c0_4, %c0_5] : memref<1x32xf32, #tpu.memory_space<vmem>>, vector<1x32xf32>
    %5 = vector.broadcast %4 : vector<1x32xf32> to vector<100x32xf32>
    %6 = arith.addf %3, %5 : vector<100x32xf32>
    %cst_6 = arith.constant 0.000000e+00 : f32
    %7 = vector.broadcast %cst_6 : f32 to vector<100x32xf32>
    %8 = arith.maximumf %6, %7 : vector<100x32xf32>
    %9 = vector.extract_strided_slice %8 {offsets = [0, 0], sizes = [78, 32], strides = [1, 1]} : vector<100x32xf32> to vector<78x32xf32>
    %10 = arith.truncf %9 : vector<78x32xf32> to vector<78x32xbf16>
    %c0_7 = arith.constant 0 : index
    %c0_8 = arith.constant 0 : index
    %c0_9 = arith.constant 0 : index
    %11 = vector.load %arg4[%c0_7, %c0_8, %c0_9] : memref<9x32x32xbf16, #tpu.memory_space<vmem>>, vector<1x32x32xbf16>
    %12 = vector.shape_cast %11 : vector<1x32x32xbf16> to vector<32x32xbf16>
    %cst_10 = arith.constant dense<0.000000e+00> : vector<78x32xf32>
    %13 = tpu.matmul %10, %12, %cst_10 {dimension_numbers = #tpu.dot_dimension_numbers<[1], [0], [0], [1], [0, 0, 1, 1], [], []>} : vector<78x32xbf16>, vector<32x32xbf16>, vector<78x32xf32> -> vector<78x32xf32>
    %14 = vector.extract_strided_slice %8 {offsets = [1, 0], sizes = [78, 32], strides = [1, 1]} : vector<100x32xf32> to vector<78x32xf32>
    %15 = arith.truncf %14 : vector<78x32xf32> to vector<78x32xbf16>
    %c1 = arith.constant 1 : index
    %c0_11 = arith.constant 0 : index
    %c0_12 = arith.constant 0 : index
    %16 = vector.load %arg4[%c1, %c0_11, %c0_12] : memref<9x32x32xbf16, #tpu.memory_space<vmem>>, vector<1x32x32xbf16>
    %17 = vector.shape_cast %16 : vector<1x32x32xbf16> to vector<32x32xbf16>
    %cst_13 = arith.constant dense<0.000000e+00> : vector<78x32xf32>
    %18 = tpu.matmul %15, %17, %cst_13 {dimension_numbers = #tpu.dot_dimension_numbers<[1], [0], [0], [1], [0, 0, 1, 1], [], []>} : vector<78x32xbf16>, vector<32x32xbf16>, vector<78x32xf32> -> vector<78x32xf32>
    %19 = arith.addf %13, %18 : vector<78x32xf32>
    %20 = vector.extract_strided_slice %8 {offsets = [2, 0], sizes = [78, 32], strides = [1, 1]} : vector<100x32xf32> to vector<78x32xf32>
    %21 = arith.truncf %20 : vector<78x32xf32> to vector<78x32xbf16>
    %c2 = arith.constant 2 : index
    %c0_14 = arith.constant 0 : index
    %c0_15 = arith.constant 0 : index
    %22 = vector.load %arg4[%c2, %c0_14, %c0_15] : memref<9x32x32xbf16, #tpu.memory_space<vmem>>, vector<1x32x32xbf16>
    %23 = vector.shape_cast %22 : vector<1x32x32xbf16> to vector<32x32xbf16>
    %cst_16 = arith.constant dense<0.000000e+00> : vector<78x32xf32>
    %24 = tpu.matmul %21, %23, %cst_16 {dimension_numbers = #tpu.dot_dimension_numbers<[1], [0], [0], [1], [0, 0, 1, 1], [], []>} : vector<78x32xbf16>, vector<32x32xbf16>, vector<78x32xf32> -> vector<78x32xf32>
    %25 = arith.addf %19, %24 : vector<78x32xf32>
    %26 = vector.extract_strided_slice %8 {offsets = [10, 0], sizes = [78, 32], strides = [1, 1]} : vector<100x32xf32> to vector<78x32xf32>
    %27 = arith.truncf %26 : vector<78x32xf32> to vector<78x32xbf16>
    %c3 = arith.constant 3 : index
    %c0_17 = arith.constant 0 : index
    %c0_18 = arith.constant 0 : index
    %28 = vector.load %arg4[%c3, %c0_17, %c0_18] : memref<9x32x32xbf16, #tpu.memory_space<vmem>>, vector<1x32x32xbf16>
    %29 = vector.shape_cast %28 : vector<1x32x32xbf16> to vector<32x32xbf16>
    %cst_19 = arith.constant dense<0.000000e+00> : vector<78x32xf32>
    %30 = tpu.matmul %27, %29, %cst_19 {dimension_numbers = #tpu.dot_dimension_numbers<[1], [0], [0], [1], [0, 0, 1, 1], [], []>} : vector<78x32xbf16>, vector<32x32xbf16>, vector<78x32xf32> -> vector<78x32xf32>
    %31 = arith.addf %25, %30 : vector<78x32xf32>
    %32 = vector.extract_strided_slice %8 {offsets = [11, 0], sizes = [78, 32], strides = [1, 1]} : vector<100x32xf32> to vector<78x32xf32>
    %33 = arith.truncf %32 : vector<78x32xf32> to vector<78x32xbf16>
    %c4 = arith.constant 4 : index
    %c0_20 = arith.constant 0 : index
    %c0_21 = arith.constant 0 : index
    %34 = vector.load %arg4[%c4, %c0_20, %c0_21] : memref<9x32x32xbf16, #tpu.memory_space<vmem>>, vector<1x32x32xbf16>
    %35 = vector.shape_cast %34 : vector<1x32x32xbf16> to vector<32x32xbf16>
    %cst_22 = arith.constant dense<0.000000e+00> : vector<78x32xf32>
    %36 = tpu.matmul %33, %35, %cst_22 {dimension_numbers = #tpu.dot_dimension_numbers<[1], [0], [0], [1], [0, 0, 1, 1], [], []>} : vector<78x32xbf16>, vector<32x32xbf16>, vector<78x32xf32> -> vector<78x32xf32>
    %37 = arith.addf %31, %36 : vector<78x32xf32>
    %38 = vector.extract_strided_slice %8 {offsets = [12, 0], sizes = [78, 32], strides = [1, 1]} : vector<100x32xf32> to vector<78x32xf32>
    %39 = arith.truncf %38 : vector<78x32xf32> to vector<78x32xbf16>
    %c5 = arith.constant 5 : index
    %c0_23 = arith.constant 0 : index
    %c0_24 = arith.constant 0 : index
    %40 = vector.load %arg4[%c5, %c0_23, %c0_24] : memref<9x32x32xbf16, #tpu.memory_space<vmem>>, vector<1x32x32xbf16>
    %41 = vector.shape_cast %40 : vector<1x32x32xbf16> to vector<32x32xbf16>
    %cst_25 = arith.constant dense<0.000000e+00> : vector<78x32xf32>
    %42 = tpu.matmul %39, %41, %cst_25 {dimension_numbers = #tpu.dot_dimension_numbers<[1], [0], [0], [1], [0, 0, 1, 1], [], []>} : vector<78x32xbf16>, vector<32x32xbf16>, vector<78x32xf32> -> vector<78x32xf32>
    %43 = arith.addf %37, %42 : vector<78x32xf32>
    %44 = vector.extract_strided_slice %8 {offsets = [20, 0], sizes = [78, 32], strides = [1, 1]} : vector<100x32xf32> to vector<78x32xf32>
    %45 = arith.truncf %44 : vector<78x32xf32> to vector<78x32xbf16>
    %c6 = arith.constant 6 : index
    %c0_26 = arith.constant 0 : index
    %c0_27 = arith.constant 0 : index
    %46 = vector.load %arg4[%c6, %c0_26, %c0_27] : memref<9x32x32xbf16, #tpu.memory_space<vmem>>, vector<1x32x32xbf16>
    %47 = vector.shape_cast %46 : vector<1x32x32xbf16> to vector<32x32xbf16>
    %cst_28 = arith.constant dense<0.000000e+00> : vector<78x32xf32>
    %48 = tpu.matmul %45, %47, %cst_28 {dimension_numbers = #tpu.dot_dimension_numbers<[1], [0], [0], [1], [0, 0, 1, 1], [], []>} : vector<78x32xbf16>, vector<32x32xbf16>, vector<78x32xf32> -> vector<78x32xf32>
    %49 = arith.addf %43, %48 : vector<78x32xf32>
    %50 = vector.extract_strided_slice %8 {offsets = [21, 0], sizes = [78, 32], strides = [1, 1]} : vector<100x32xf32> to vector<78x32xf32>
    %51 = arith.truncf %50 : vector<78x32xf32> to vector<78x32xbf16>
    %c7 = arith.constant 7 : index
    %c0_29 = arith.constant 0 : index
    %c0_30 = arith.constant 0 : index
    %52 = vector.load %arg4[%c7, %c0_29, %c0_30] : memref<9x32x32xbf16, #tpu.memory_space<vmem>>, vector<1x32x32xbf16>
    %53 = vector.shape_cast %52 : vector<1x32x32xbf16> to vector<32x32xbf16>
    %cst_31 = arith.constant dense<0.000000e+00> : vector<78x32xf32>
    %54 = tpu.matmul %51, %53, %cst_31 {dimension_numbers = #tpu.dot_dimension_numbers<[1], [0], [0], [1], [0, 0, 1, 1], [], []>} : vector<78x32xbf16>, vector<32x32xbf16>, vector<78x32xf32> -> vector<78x32xf32>
    %55 = arith.addf %49, %54 : vector<78x32xf32>
    %56 = vector.extract_strided_slice %8 {offsets = [22, 0], sizes = [78, 32], strides = [1, 1]} : vector<100x32xf32> to vector<78x32xf32>
    %57 = arith.truncf %56 : vector<78x32xf32> to vector<78x32xbf16>
    %c8 = arith.constant 8 : index
    %c0_32 = arith.constant 0 : index
    %c0_33 = arith.constant 0 : index
    %58 = vector.load %arg4[%c8, %c0_32, %c0_33] : memref<9x32x32xbf16, #tpu.memory_space<vmem>>, vector<1x32x32xbf16>
    %59 = vector.shape_cast %58 : vector<1x32x32xbf16> to vector<32x32xbf16>
    %cst_34 = arith.constant dense<0.000000e+00> : vector<78x32xf32>
    %60 = tpu.matmul %57, %59, %cst_34 {dimension_numbers = #tpu.dot_dimension_numbers<[1], [0], [0], [1], [0, 0, 1, 1], [], []>} : vector<78x32xbf16>, vector<32x32xbf16>, vector<78x32xf32> -> vector<78x32xf32>
    %61 = arith.addf %55, %60 : vector<78x32xf32>
    %c0_35 = arith.constant 0 : index
    %c0_36 = arith.constant 0 : index
    %62 = vector.load %arg5[%c0_35, %c0_36] : memref<1x32xf32, #tpu.memory_space<vmem>>, vector<1x32xf32>
    %63 = vector.broadcast %62 : vector<1x32xf32> to vector<78x32xf32>
    %64 = arith.addf %61, %63 : vector<78x32xf32>
    %cst_37 = arith.constant 0.000000e+00 : f32
    %65 = vector.broadcast %cst_37 : f32 to vector<78x32xf32>
    %66 = arith.maximumf %64, %65 : vector<78x32xf32>
    %67 = vector.extract_strided_slice %66 {offsets = [0, 0], sizes = [56, 32], strides = [1, 1]} : vector<78x32xf32> to vector<56x32xf32>
    %68 = arith.truncf %67 : vector<56x32xf32> to vector<56x32xbf16>
    %c0_38 = arith.constant 0 : index
    %c0_39 = arith.constant 0 : index
    %c0_40 = arith.constant 0 : index
    %69 = vector.load %arg6[%c0_38, %c0_39, %c0_40] : memref<9x32x32xbf16, #tpu.memory_space<vmem>>, vector<1x32x32xbf16>
    %70 = vector.shape_cast %69 : vector<1x32x32xbf16> to vector<32x32xbf16>
    %cst_41 = arith.constant dense<0.000000e+00> : vector<56x32xf32>
    %71 = tpu.matmul %68, %70, %cst_41 {dimension_numbers = #tpu.dot_dimension_numbers<[1], [0], [0], [1], [0, 0, 1, 1], [], []>} : vector<56x32xbf16>, vector<32x32xbf16>, vector<56x32xf32> -> vector<56x32xf32>
    %72 = vector.extract_strided_slice %66 {offsets = [1, 0], sizes = [56, 32], strides = [1, 1]} : vector<78x32xf32> to vector<56x32xf32>
    %73 = arith.truncf %72 : vector<56x32xf32> to vector<56x32xbf16>
    %c1_42 = arith.constant 1 : index
    %c0_43 = arith.constant 0 : index
    %c0_44 = arith.constant 0 : index
    %74 = vector.load %arg6[%c1_42, %c0_43, %c0_44] : memref<9x32x32xbf16, #tpu.memory_space<vmem>>, vector<1x32x32xbf16>
    %75 = vector.shape_cast %74 : vector<1x32x32xbf16> to vector<32x32xbf16>
    %cst_45 = arith.constant dense<0.000000e+00> : vector<56x32xf32>
    %76 = tpu.matmul %73, %75, %cst_45 {dimension_numbers = #tpu.dot_dimension_numbers<[1], [0], [0], [1], [0, 0, 1, 1], [], []>} : vector<56x32xbf16>, vector<32x32xbf16>, vector<56x32xf32> -> vector<56x32xf32>
    %77 = arith.addf %71, %76 : vector<56x32xf32>
    %78 = vector.extract_strided_slice %66 {offsets = [2, 0], sizes = [56, 32], strides = [1, 1]} : vector<78x32xf32> to vector<56x32xf32>
    %79 = arith.truncf %78 : vector<56x32xf32> to vector<56x32xbf16>
    %c2_46 = arith.constant 2 : index
    %c0_47 = arith.constant 0 : index
    %c0_48 = arith.constant 0 : index
    %80 = vector.load %arg6[%c2_46, %c0_47, %c0_48] : memref<9x32x32xbf16, #tpu.memory_space<vmem>>, vector<1x32x32xbf16>
    %81 = vector.shape_cast %80 : vector<1x32x32xbf16> to vector<32x32xbf16>
    %cst_49 = arith.constant dense<0.000000e+00> : vector<56x32xf32>
    %82 = tpu.matmul %79, %81, %cst_49 {dimension_numbers = #tpu.dot_dimension_numbers<[1], [0], [0], [1], [0, 0, 1, 1], [], []>} : vector<56x32xbf16>, vector<32x32xbf16>, vector<56x32xf32> -> vector<56x32xf32>
    %83 = arith.addf %77, %82 : vector<56x32xf32>
    %84 = vector.extract_strided_slice %66 {offsets = [10, 0], sizes = [56, 32], strides = [1, 1]} : vector<78x32xf32> to vector<56x32xf32>
    %85 = arith.truncf %84 : vector<56x32xf32> to vector<56x32xbf16>
    %c3_50 = arith.constant 3 : index
    %c0_51 = arith.constant 0 : index
    %c0_52 = arith.constant 0 : index
    %86 = vector.load %arg6[%c3_50, %c0_51, %c0_52] : memref<9x32x32xbf16, #tpu.memory_space<vmem>>, vector<1x32x32xbf16>
    %87 = vector.shape_cast %86 : vector<1x32x32xbf16> to vector<32x32xbf16>
    %cst_53 = arith.constant dense<0.000000e+00> : vector<56x32xf32>
    %88 = tpu.matmul %85, %87, %cst_53 {dimension_numbers = #tpu.dot_dimension_numbers<[1], [0], [0], [1], [0, 0, 1, 1], [], []>} : vector<56x32xbf16>, vector<32x32xbf16>, vector<56x32xf32> -> vector<56x32xf32>
    %89 = arith.addf %83, %88 : vector<56x32xf32>
    %90 = vector.extract_strided_slice %66 {offsets = [11, 0], sizes = [56, 32], strides = [1, 1]} : vector<78x32xf32> to vector<56x32xf32>
    %91 = arith.truncf %90 : vector<56x32xf32> to vector<56x32xbf16>
    %c4_54 = arith.constant 4 : index
    %c0_55 = arith.constant 0 : index
    %c0_56 = arith.constant 0 : index
    %92 = vector.load %arg6[%c4_54, %c0_55, %c0_56] : memref<9x32x32xbf16, #tpu.memory_space<vmem>>, vector<1x32x32xbf16>
    %93 = vector.shape_cast %92 : vector<1x32x32xbf16> to vector<32x32xbf16>
    %cst_57 = arith.constant dense<0.000000e+00> : vector<56x32xf32>
    %94 = tpu.matmul %91, %93, %cst_57 {dimension_numbers = #tpu.dot_dimension_numbers<[1], [0], [0], [1], [0, 0, 1, 1], [], []>} : vector<56x32xbf16>, vector<32x32xbf16>, vector<56x32xf32> -> vector<56x32xf32>
    %95 = arith.addf %89, %94 : vector<56x32xf32>
    %96 = vector.extract_strided_slice %66 {offsets = [12, 0], sizes = [56, 32], strides = [1, 1]} : vector<78x32xf32> to vector<56x32xf32>
    %97 = arith.truncf %96 : vector<56x32xf32> to vector<56x32xbf16>
    %c5_58 = arith.constant 5 : index
    %c0_59 = arith.constant 0 : index
    %c0_60 = arith.constant 0 : index
    %98 = vector.load %arg6[%c5_58, %c0_59, %c0_60] : memref<9x32x32xbf16, #tpu.memory_space<vmem>>, vector<1x32x32xbf16>
    %99 = vector.shape_cast %98 : vector<1x32x32xbf16> to vector<32x32xbf16>
    %cst_61 = arith.constant dense<0.000000e+00> : vector<56x32xf32>
    %100 = tpu.matmul %97, %99, %cst_61 {dimension_numbers = #tpu.dot_dimension_numbers<[1], [0], [0], [1], [0, 0, 1, 1], [], []>} : vector<56x32xbf16>, vector<32x32xbf16>, vector<56x32xf32> -> vector<56x32xf32>
    %101 = arith.addf %95, %100 : vector<56x32xf32>
    %102 = vector.extract_strided_slice %66 {offsets = [20, 0], sizes = [56, 32], strides = [1, 1]} : vector<78x32xf32> to vector<56x32xf32>
    %103 = arith.truncf %102 : vector<56x32xf32> to vector<56x32xbf16>
    %c6_62 = arith.constant 6 : index
    %c0_63 = arith.constant 0 : index
    %c0_64 = arith.constant 0 : index
    %104 = vector.load %arg6[%c6_62, %c0_63, %c0_64] : memref<9x32x32xbf16, #tpu.memory_space<vmem>>, vector<1x32x32xbf16>
    %105 = vector.shape_cast %104 : vector<1x32x32xbf16> to vector<32x32xbf16>
    %cst_65 = arith.constant dense<0.000000e+00> : vector<56x32xf32>
    %106 = tpu.matmul %103, %105, %cst_65 {dimension_numbers = #tpu.dot_dimension_numbers<[1], [0], [0], [1], [0, 0, 1, 1], [], []>} : vector<56x32xbf16>, vector<32x32xbf16>, vector<56x32xf32> -> vector<56x32xf32>
    %107 = arith.addf %101, %106 : vector<56x32xf32>
    %108 = vector.extract_strided_slice %66 {offsets = [21, 0], sizes = [56, 32], strides = [1, 1]} : vector<78x32xf32> to vector<56x32xf32>
    %109 = arith.truncf %108 : vector<56x32xf32> to vector<56x32xbf16>
    %c7_66 = arith.constant 7 : index
    %c0_67 = arith.constant 0 : index
    %c0_68 = arith.constant 0 : index
    %110 = vector.load %arg6[%c7_66, %c0_67, %c0_68] : memref<9x32x32xbf16, #tpu.memory_space<vmem>>, vector<1x32x32xbf16>
    %111 = vector.shape_cast %110 : vector<1x32x32xbf16> to vector<32x32xbf16>
    %cst_69 = arith.constant dense<0.000000e+00> : vector<56x32xf32>
    %112 = tpu.matmul %109, %111, %cst_69 {dimension_numbers = #tpu.dot_dimension_numbers<[1], [0], [0], [1], [0, 0, 1, 1], [], []>} : vector<56x32xbf16>, vector<32x32xbf16>, vector<56x32xf32> -> vector<56x32xf32>
    %113 = arith.addf %107, %112 : vector<56x32xf32>
    %114 = vector.extract_strided_slice %66 {offsets = [22, 0], sizes = [56, 32], strides = [1, 1]} : vector<78x32xf32> to vector<56x32xf32>
    %115 = arith.truncf %114 : vector<56x32xf32> to vector<56x32xbf16>
    %c8_70 = arith.constant 8 : index
    %c0_71 = arith.constant 0 : index
    %c0_72 = arith.constant 0 : index
    %116 = vector.load %arg6[%c8_70, %c0_71, %c0_72] : memref<9x32x32xbf16, #tpu.memory_space<vmem>>, vector<1x32x32xbf16>
    %117 = vector.shape_cast %116 : vector<1x32x32xbf16> to vector<32x32xbf16>
    %cst_73 = arith.constant dense<0.000000e+00> : vector<56x32xf32>
    %118 = tpu.matmul %115, %117, %cst_73 {dimension_numbers = #tpu.dot_dimension_numbers<[1], [0], [0], [1], [0, 0, 1, 1], [], []>} : vector<56x32xbf16>, vector<32x32xbf16>, vector<56x32xf32> -> vector<56x32xf32>
    %119 = arith.addf %113, %118 : vector<56x32xf32>
    %c0_74 = arith.constant 0 : index
    %c0_75 = arith.constant 0 : index
    %120 = vector.load %arg7[%c0_74, %c0_75] : memref<1x32xf32, #tpu.memory_space<vmem>>, vector<1x32xf32>
    %121 = vector.broadcast %120 : vector<1x32xf32> to vector<56x32xf32>
    %122 = arith.addf %119, %121 : vector<56x32xf32>
    %cst_76 = arith.constant 0.000000e+00 : f32
    %123 = vector.broadcast %cst_76 : f32 to vector<56x32xf32>
    %124 = arith.maximumf %122, %123 : vector<56x32xf32>
    %125 = vector.extract_strided_slice %124 {offsets = [0, 0], sizes = [34, 32], strides = [1, 1]} : vector<56x32xf32> to vector<34x32xf32>
    %126 = arith.truncf %125 : vector<34x32xf32> to vector<34x32xbf16>
    %c0_77 = arith.constant 0 : index
    %c0_78 = arith.constant 0 : index
    %c0_79 = arith.constant 0 : index
    %127 = vector.load %arg8[%c0_77, %c0_78, %c0_79] : memref<9x32x32xbf16, #tpu.memory_space<vmem>>, vector<1x32x32xbf16>
    %128 = vector.shape_cast %127 : vector<1x32x32xbf16> to vector<32x32xbf16>
    %cst_80 = arith.constant dense<0.000000e+00> : vector<34x32xf32>
    %129 = tpu.matmul %126, %128, %cst_80 {dimension_numbers = #tpu.dot_dimension_numbers<[1], [0], [0], [1], [0, 0, 1, 1], [], []>} : vector<34x32xbf16>, vector<32x32xbf16>, vector<34x32xf32> -> vector<34x32xf32>
    %130 = vector.extract_strided_slice %124 {offsets = [1, 0], sizes = [34, 32], strides = [1, 1]} : vector<56x32xf32> to vector<34x32xf32>
    %131 = arith.truncf %130 : vector<34x32xf32> to vector<34x32xbf16>
    %c1_81 = arith.constant 1 : index
    %c0_82 = arith.constant 0 : index
    %c0_83 = arith.constant 0 : index
    %132 = vector.load %arg8[%c1_81, %c0_82, %c0_83] : memref<9x32x32xbf16, #tpu.memory_space<vmem>>, vector<1x32x32xbf16>
    %133 = vector.shape_cast %132 : vector<1x32x32xbf16> to vector<32x32xbf16>
    %cst_84 = arith.constant dense<0.000000e+00> : vector<34x32xf32>
    %134 = tpu.matmul %131, %133, %cst_84 {dimension_numbers = #tpu.dot_dimension_numbers<[1], [0], [0], [1], [0, 0, 1, 1], [], []>} : vector<34x32xbf16>, vector<32x32xbf16>, vector<34x32xf32> -> vector<34x32xf32>
    %135 = arith.addf %129, %134 : vector<34x32xf32>
    %136 = vector.extract_strided_slice %124 {offsets = [2, 0], sizes = [34, 32], strides = [1, 1]} : vector<56x32xf32> to vector<34x32xf32>
    %137 = arith.truncf %136 : vector<34x32xf32> to vector<34x32xbf16>
    %c2_85 = arith.constant 2 : index
    %c0_86 = arith.constant 0 : index
    %c0_87 = arith.constant 0 : index
    %138 = vector.load %arg8[%c2_85, %c0_86, %c0_87] : memref<9x32x32xbf16, #tpu.memory_space<vmem>>, vector<1x32x32xbf16>
    %139 = vector.shape_cast %138 : vector<1x32x32xbf16> to vector<32x32xbf16>
    %cst_88 = arith.constant dense<0.000000e+00> : vector<34x32xf32>
    %140 = tpu.matmul %137, %139, %cst_88 {dimension_numbers = #tpu.dot_dimension_numbers<[1], [0], [0], [1], [0, 0, 1, 1], [], []>} : vector<34x32xbf16>, vector<32x32xbf16>, vector<34x32xf32> -> vector<34x32xf32>
    %141 = arith.addf %135, %140 : vector<34x32xf32>
    %142 = vector.extract_strided_slice %124 {offsets = [10, 0], sizes = [34, 32], strides = [1, 1]} : vector<56x32xf32> to vector<34x32xf32>
    %143 = arith.truncf %142 : vector<34x32xf32> to vector<34x32xbf16>
    %c3_89 = arith.constant 3 : index
    %c0_90 = arith.constant 0 : index
    %c0_91 = arith.constant 0 : index
    %144 = vector.load %arg8[%c3_89, %c0_90, %c0_91] : memref<9x32x32xbf16, #tpu.memory_space<vmem>>, vector<1x32x32xbf16>
    %145 = vector.shape_cast %144 : vector<1x32x32xbf16> to vector<32x32xbf16>
    %cst_92 = arith.constant dense<0.000000e+00> : vector<34x32xf32>
    %146 = tpu.matmul %143, %145, %cst_92 {dimension_numbers = #tpu.dot_dimension_numbers<[1], [0], [0], [1], [0, 0, 1, 1], [], []>} : vector<34x32xbf16>, vector<32x32xbf16>, vector<34x32xf32> -> vector<34x32xf32>
    %147 = arith.addf %141, %146 : vector<34x32xf32>
    %148 = vector.extract_strided_slice %124 {offsets = [11, 0], sizes = [34, 32], strides = [1, 1]} : vector<56x32xf32> to vector<34x32xf32>
    %149 = arith.truncf %148 : vector<34x32xf32> to vector<34x32xbf16>
    %c4_93 = arith.constant 4 : index
    %c0_94 = arith.constant 0 : index
    %c0_95 = arith.constant 0 : index
    %150 = vector.load %arg8[%c4_93, %c0_94, %c0_95] : memref<9x32x32xbf16, #tpu.memory_space<vmem>>, vector<1x32x32xbf16>
    %151 = vector.shape_cast %150 : vector<1x32x32xbf16> to vector<32x32xbf16>
    %cst_96 = arith.constant dense<0.000000e+00> : vector<34x32xf32>
    %152 = tpu.matmul %149, %151, %cst_96 {dimension_numbers = #tpu.dot_dimension_numbers<[1], [0], [0], [1], [0, 0, 1, 1], [], []>} : vector<34x32xbf16>, vector<32x32xbf16>, vector<34x32xf32> -> vector<34x32xf32>
    %153 = arith.addf %147, %152 : vector<34x32xf32>
    %154 = vector.extract_strided_slice %124 {offsets = [12, 0], sizes = [34, 32], strides = [1, 1]} : vector<56x32xf32> to vector<34x32xf32>
    %155 = arith.truncf %154 : vector<34x32xf32> to vector<34x32xbf16>
    %c5_97 = arith.constant 5 : index
    %c0_98 = arith.constant 0 : index
    %c0_99 = arith.constant 0 : index
    %156 = vector.load %arg8[%c5_97, %c0_98, %c0_99] : memref<9x32x32xbf16, #tpu.memory_space<vmem>>, vector<1x32x32xbf16>
    %157 = vector.shape_cast %156 : vector<1x32x32xbf16> to vector<32x32xbf16>
    %cst_100 = arith.constant dense<0.000000e+00> : vector<34x32xf32>
    %158 = tpu.matmul %155, %157, %cst_100 {dimension_numbers = #tpu.dot_dimension_numbers<[1], [0], [0], [1], [0, 0, 1, 1], [], []>} : vector<34x32xbf16>, vector<32x32xbf16>, vector<34x32xf32> -> vector<34x32xf32>
    %159 = arith.addf %153, %158 : vector<34x32xf32>
    %160 = vector.extract_strided_slice %124 {offsets = [20, 0], sizes = [34, 32], strides = [1, 1]} : vector<56x32xf32> to vector<34x32xf32>
    %161 = arith.truncf %160 : vector<34x32xf32> to vector<34x32xbf16>
    %c6_101 = arith.constant 6 : index
    %c0_102 = arith.constant 0 : index
    %c0_103 = arith.constant 0 : index
    %162 = vector.load %arg8[%c6_101, %c0_102, %c0_103] : memref<9x32x32xbf16, #tpu.memory_space<vmem>>, vector<1x32x32xbf16>
    %163 = vector.shape_cast %162 : vector<1x32x32xbf16> to vector<32x32xbf16>
    %cst_104 = arith.constant dense<0.000000e+00> : vector<34x32xf32>
    %164 = tpu.matmul %161, %163, %cst_104 {dimension_numbers = #tpu.dot_dimension_numbers<[1], [0], [0], [1], [0, 0, 1, 1], [], []>} : vector<34x32xbf16>, vector<32x32xbf16>, vector<34x32xf32> -> vector<34x32xf32>
    %165 = arith.addf %159, %164 : vector<34x32xf32>
    %166 = vector.extract_strided_slice %124 {offsets = [21, 0], sizes = [34, 32], strides = [1, 1]} : vector<56x32xf32> to vector<34x32xf32>
    %167 = arith.truncf %166 : vector<34x32xf32> to vector<34x32xbf16>
    %c7_105 = arith.constant 7 : index
    %c0_106 = arith.constant 0 : index
    %c0_107 = arith.constant 0 : index
    %168 = vector.load %arg8[%c7_105, %c0_106, %c0_107] : memref<9x32x32xbf16, #tpu.memory_space<vmem>>, vector<1x32x32xbf16>
    %169 = vector.shape_cast %168 : vector<1x32x32xbf16> to vector<32x32xbf16>
    %cst_108 = arith.constant dense<0.000000e+00> : vector<34x32xf32>
    %170 = tpu.matmul %167, %169, %cst_108 {dimension_numbers = #tpu.dot_dimension_numbers<[1], [0], [0], [1], [0, 0, 1, 1], [], []>} : vector<34x32xbf16>, vector<32x32xbf16>, vector<34x32xf32> -> vector<34x32xf32>
    %171 = arith.addf %165, %170 : vector<34x32xf32>
    %172 = vector.extract_strided_slice %124 {offsets = [22, 0], sizes = [34, 32], strides = [1, 1]} : vector<56x32xf32> to vector<34x32xf32>
    %173 = arith.truncf %172 : vector<34x32xf32> to vector<34x32xbf16>
    %c8_109 = arith.constant 8 : index
    %c0_110 = arith.constant 0 : index
    %c0_111 = arith.constant 0 : index
    %174 = vector.load %arg8[%c8_109, %c0_110, %c0_111] : memref<9x32x32xbf16, #tpu.memory_space<vmem>>, vector<1x32x32xbf16>
    %175 = vector.shape_cast %174 : vector<1x32x32xbf16> to vector<32x32xbf16>
    %cst_112 = arith.constant dense<0.000000e+00> : vector<34x32xf32>
    %176 = tpu.matmul %173, %175, %cst_112 {dimension_numbers = #tpu.dot_dimension_numbers<[1], [0], [0], [1], [0, 0, 1, 1], [], []>} : vector<34x32xbf16>, vector<32x32xbf16>, vector<34x32xf32> -> vector<34x32xf32>
    %177 = arith.addf %171, %176 : vector<34x32xf32>
    %c0_113 = arith.constant 0 : index
    %c0_114 = arith.constant 0 : index
    %178 = vector.load %arg9[%c0_113, %c0_114] : memref<1x32xf32, #tpu.memory_space<vmem>>, vector<1x32xf32>
    %179 = vector.broadcast %178 : vector<1x32xf32> to vector<34x32xf32>
    %180 = arith.addf %177, %179 : vector<34x32xf32>
    %cst_115 = arith.constant 0.000000e+00 : f32
    %181 = vector.broadcast %cst_115 : f32 to vector<34x32xf32>
    %182 = arith.maximumf %180, %181 : vector<34x32xf32>
    %c0_116 = arith.constant 0 : index
    %c0_117 = arith.constant 0 : index
    %183 = vector.load %arg11[%c0_116, %c0_117] : memref<1x512xf32, #tpu.memory_space<vmem>>, vector<1x512xf32>
    %184 = vector.extract_strided_slice %182 {offsets = [0, 0], sizes = [1, 32], strides = [1, 1]} : vector<34x32xf32> to vector<1x32xf32>
    %185 = arith.truncf %184 : vector<1x32xf32> to vector<1x32xbf16>
    %c0_118 = arith.constant 0 : index
    %c0_119 = arith.constant 0 : index
    %c0_120 = arith.constant 0 : index
    %186 = vector.load %arg10[%c0_118, %c0_119, %c0_120] : memref<16x32x512xbf16, #tpu.memory_space<vmem>>, vector<1x32x512xbf16>
    %187 = vector.shape_cast %186 : vector<1x32x512xbf16> to vector<32x512xbf16>
    %cst_121 = arith.constant dense<0.000000e+00> : vector<1x512xf32>
    %188 = tpu.matmul %185, %187, %cst_121 {dimension_numbers = #tpu.dot_dimension_numbers<[1], [0], [0], [1], [0, 0, 1, 1], [], []>} : vector<1x32xbf16>, vector<32x512xbf16>, vector<1x512xf32> -> vector<1x512xf32>
    %189 = arith.addf %183, %188 : vector<1x512xf32>
    %190 = vector.extract_strided_slice %182 {offsets = [1, 0], sizes = [1, 32], strides = [1, 1]} : vector<34x32xf32> to vector<1x32xf32>
    %191 = arith.truncf %190 : vector<1x32xf32> to vector<1x32xbf16>
    %c1_122 = arith.constant 1 : index
    %c0_123 = arith.constant 0 : index
    %c0_124 = arith.constant 0 : index
    %192 = vector.load %arg10[%c1_122, %c0_123, %c0_124] : memref<16x32x512xbf16, #tpu.memory_space<vmem>>, vector<1x32x512xbf16>
    %193 = vector.shape_cast %192 : vector<1x32x512xbf16> to vector<32x512xbf16>
    %cst_125 = arith.constant dense<0.000000e+00> : vector<1x512xf32>
    %194 = tpu.matmul %191, %193, %cst_125 {dimension_numbers = #tpu.dot_dimension_numbers<[1], [0], [0], [1], [0, 0, 1, 1], [], []>} : vector<1x32xbf16>, vector<32x512xbf16>, vector<1x512xf32> -> vector<1x512xf32>
    %195 = arith.addf %189, %194 : vector<1x512xf32>
    %196 = vector.extract_strided_slice %182 {offsets = [2, 0], sizes = [1, 32], strides = [1, 1]} : vector<34x32xf32> to vector<1x32xf32>
    %197 = arith.truncf %196 : vector<1x32xf32> to vector<1x32xbf16>
    %c2_126 = arith.constant 2 : index
    %c0_127 = arith.constant 0 : index
    %c0_128 = arith.constant 0 : index
    %198 = vector.load %arg10[%c2_126, %c0_127, %c0_128] : memref<16x32x512xbf16, #tpu.memory_space<vmem>>, vector<1x32x512xbf16>
    %199 = vector.shape_cast %198 : vector<1x32x512xbf16> to vector<32x512xbf16>
    %cst_129 = arith.constant dense<0.000000e+00> : vector<1x512xf32>
    %200 = tpu.matmul %197, %199, %cst_129 {dimension_numbers = #tpu.dot_dimension_numbers<[1], [0], [0], [1], [0, 0, 1, 1], [], []>} : vector<1x32xbf16>, vector<32x512xbf16>, vector<1x512xf32> -> vector<1x512xf32>
    %201 = arith.addf %195, %200 : vector<1x512xf32>
    %202 = vector.extract_strided_slice %182 {offsets = [3, 0], sizes = [1, 32], strides = [1, 1]} : vector<34x32xf32> to vector<1x32xf32>
    %203 = arith.truncf %202 : vector<1x32xf32> to vector<1x32xbf16>
    %c3_130 = arith.constant 3 : index
    %c0_131 = arith.constant 0 : index
    %c0_132 = arith.constant 0 : index
    %204 = vector.load %arg10[%c3_130, %c0_131, %c0_132] : memref<16x32x512xbf16, #tpu.memory_space<vmem>>, vector<1x32x512xbf16>
    %205 = vector.shape_cast %204 : vector<1x32x512xbf16> to vector<32x512xbf16>
    %cst_133 = arith.constant dense<0.000000e+00> : vector<1x512xf32>
    %206 = tpu.matmul %203, %205, %cst_133 {dimension_numbers = #tpu.dot_dimension_numbers<[1], [0], [0], [1], [0, 0, 1, 1], [], []>} : vector<1x32xbf16>, vector<32x512xbf16>, vector<1x512xf32> -> vector<1x512xf32>
    %207 = arith.addf %201, %206 : vector<1x512xf32>
    %208 = vector.extract_strided_slice %182 {offsets = [10, 0], sizes = [1, 32], strides = [1, 1]} : vector<34x32xf32> to vector<1x32xf32>
    %209 = arith.truncf %208 : vector<1x32xf32> to vector<1x32xbf16>
    %c4_134 = arith.constant 4 : index
    %c0_135 = arith.constant 0 : index
    %c0_136 = arith.constant 0 : index
    %210 = vector.load %arg10[%c4_134, %c0_135, %c0_136] : memref<16x32x512xbf16, #tpu.memory_space<vmem>>, vector<1x32x512xbf16>
    %211 = vector.shape_cast %210 : vector<1x32x512xbf16> to vector<32x512xbf16>
    %cst_137 = arith.constant dense<0.000000e+00> : vector<1x512xf32>
    %212 = tpu.matmul %209, %211, %cst_137 {dimension_numbers = #tpu.dot_dimension_numbers<[1], [0], [0], [1], [0, 0, 1, 1], [], []>} : vector<1x32xbf16>, vector<32x512xbf16>, vector<1x512xf32> -> vector<1x512xf32>
    %213 = arith.addf %207, %212 : vector<1x512xf32>
    %214 = vector.extract_strided_slice %182 {offsets = [11, 0], sizes = [1, 32], strides = [1, 1]} : vector<34x32xf32> to vector<1x32xf32>
    %215 = arith.truncf %214 : vector<1x32xf32> to vector<1x32xbf16>
    %c5_138 = arith.constant 5 : index
    %c0_139 = arith.constant 0 : index
    %c0_140 = arith.constant 0 : index
    %216 = vector.load %arg10[%c5_138, %c0_139, %c0_140] : memref<16x32x512xbf16, #tpu.memory_space<vmem>>, vector<1x32x512xbf16>
    %217 = vector.shape_cast %216 : vector<1x32x512xbf16> to vector<32x512xbf16>
    %cst_141 = arith.constant dense<0.000000e+00> : vector<1x512xf32>
    %218 = tpu.matmul %215, %217, %cst_141 {dimension_numbers = #tpu.dot_dimension_numbers<[1], [0], [0], [1], [0, 0, 1, 1], [], []>} : vector<1x32xbf16>, vector<32x512xbf16>, vector<1x512xf32> -> vector<1x512xf32>
    %219 = arith.addf %213, %218 : vector<1x512xf32>
    %220 = vector.extract_strided_slice %182 {offsets = [12, 0], sizes = [1, 32], strides = [1, 1]} : vector<34x32xf32> to vector<1x32xf32>
    %221 = arith.truncf %220 : vector<1x32xf32> to vector<1x32xbf16>
    %c6_142 = arith.constant 6 : index
    %c0_143 = arith.constant 0 : index
    %c0_144 = arith.constant 0 : index
    %222 = vector.load %arg10[%c6_142, %c0_143, %c0_144] : memref<16x32x512xbf16, #tpu.memory_space<vmem>>, vector<1x32x512xbf16>
    %223 = vector.shape_cast %222 : vector<1x32x512xbf16> to vector<32x512xbf16>
    %cst_145 = arith.constant dense<0.000000e+00> : vector<1x512xf32>
    %224 = tpu.matmul %221, %223, %cst_145 {dimension_numbers = #tpu.dot_dimension_numbers<[1], [0], [0], [1], [0, 0, 1, 1], [], []>} : vector<1x32xbf16>, vector<32x512xbf16>, vector<1x512xf32> -> vector<1x512xf32>
    %225 = arith.addf %219, %224 : vector<1x512xf32>
    %226 = vector.extract_strided_slice %182 {offsets = [13, 0], sizes = [1, 32], strides = [1, 1]} : vector<34x32xf32> to vector<1x32xf32>
    %227 = arith.truncf %226 : vector<1x32xf32> to vector<1x32xbf16>
    %c7_146 = arith.constant 7 : index
    %c0_147 = arith.constant 0 : index
    %c0_148 = arith.constant 0 : index
    %228 = vector.load %arg10[%c7_146, %c0_147, %c0_148] : memref<16x32x512xbf16, #tpu.memory_space<vmem>>, vector<1x32x512xbf16>
    %229 = vector.shape_cast %228 : vector<1x32x512xbf16> to vector<32x512xbf16>
    %cst_149 = arith.constant dense<0.000000e+00> : vector<1x512xf32>
    %230 = tpu.matmul %227, %229, %cst_149 {dimension_numbers = #tpu.dot_dimension_numbers<[1], [0], [0], [1], [0, 0, 1, 1], [], []>} : vector<1x32xbf16>, vector<32x512xbf16>, vector<1x512xf32> -> vector<1x512xf32>
    %231 = arith.addf %225, %230 : vector<1x512xf32>
    %232 = vector.extract_strided_slice %182 {offsets = [20, 0], sizes = [1, 32], strides = [1, 1]} : vector<34x32xf32> to vector<1x32xf32>
    %233 = arith.truncf %232 : vector<1x32xf32> to vector<1x32xbf16>
    %c8_150 = arith.constant 8 : index
    %c0_151 = arith.constant 0 : index
    %c0_152 = arith.constant 0 : index
    %234 = vector.load %arg10[%c8_150, %c0_151, %c0_152] : memref<16x32x512xbf16, #tpu.memory_space<vmem>>, vector<1x32x512xbf16>
    %235 = vector.shape_cast %234 : vector<1x32x512xbf16> to vector<32x512xbf16>
    %cst_153 = arith.constant dense<0.000000e+00> : vector<1x512xf32>
    %236 = tpu.matmul %233, %235, %cst_153 {dimension_numbers = #tpu.dot_dimension_numbers<[1], [0], [0], [1], [0, 0, 1, 1], [], []>} : vector<1x32xbf16>, vector<32x512xbf16>, vector<1x512xf32> -> vector<1x512xf32>
    %237 = arith.addf %231, %236 : vector<1x512xf32>
    %238 = vector.extract_strided_slice %182 {offsets = [21, 0], sizes = [1, 32], strides = [1, 1]} : vector<34x32xf32> to vector<1x32xf32>
    %239 = arith.truncf %238 : vector<1x32xf32> to vector<1x32xbf16>
    %c9 = arith.constant 9 : index
    %c0_154 = arith.constant 0 : index
    %c0_155 = arith.constant 0 : index
    %240 = vector.load %arg10[%c9, %c0_154, %c0_155] : memref<16x32x512xbf16, #tpu.memory_space<vmem>>, vector<1x32x512xbf16>
    %241 = vector.shape_cast %240 : vector<1x32x512xbf16> to vector<32x512xbf16>
    %cst_156 = arith.constant dense<0.000000e+00> : vector<1x512xf32>
    %242 = tpu.matmul %239, %241, %cst_156 {dimension_numbers = #tpu.dot_dimension_numbers<[1], [0], [0], [1], [0, 0, 1, 1], [], []>} : vector<1x32xbf16>, vector<32x512xbf16>, vector<1x512xf32> -> vector<1x512xf32>
    %243 = arith.addf %237, %242 : vector<1x512xf32>
    %244 = vector.extract_strided_slice %182 {offsets = [22, 0], sizes = [1, 32], strides = [1, 1]} : vector<34x32xf32> to vector<1x32xf32>
    %245 = arith.truncf %244 : vector<1x32xf32> to vector<1x32xbf16>
    %c10 = arith.constant 10 : index
    %c0_157 = arith.constant 0 : index
    %c0_158 = arith.constant 0 : index
    %246 = vector.load %arg10[%c10, %c0_157, %c0_158] : memref<16x32x512xbf16, #tpu.memory_space<vmem>>, vector<1x32x512xbf16>
    %247 = vector.shape_cast %246 : vector<1x32x512xbf16> to vector<32x512xbf16>
    %cst_159 = arith.constant dense<0.000000e+00> : vector<1x512xf32>
    %248 = tpu.matmul %245, %247, %cst_159 {dimension_numbers = #tpu.dot_dimension_numbers<[1], [0], [0], [1], [0, 0, 1, 1], [], []>} : vector<1x32xbf16>, vector<32x512xbf16>, vector<1x512xf32> -> vector<1x512xf32>
    %249 = arith.addf %243, %248 : vector<1x512xf32>
    %250 = vector.extract_strided_slice %182 {offsets = [23, 0], sizes = [1, 32], strides = [1, 1]} : vector<34x32xf32> to vector<1x32xf32>
    %251 = arith.truncf %250 : vector<1x32xf32> to vector<1x32xbf16>
    %c11 = arith.constant 11 : index
    %c0_160 = arith.constant 0 : index
    %c0_161 = arith.constant 0 : index
    %252 = vector.load %arg10[%c11, %c0_160, %c0_161] : memref<16x32x512xbf16, #tpu.memory_space<vmem>>, vector<1x32x512xbf16>
    %253 = vector.shape_cast %252 : vector<1x32x512xbf16> to vector<32x512xbf16>
    %cst_162 = arith.constant dense<0.000000e+00> : vector<1x512xf32>
    %254 = tpu.matmul %251, %253, %cst_162 {dimension_numbers = #tpu.dot_dimension_numbers<[1], [0], [0], [1], [0, 0, 1, 1], [], []>} : vector<1x32xbf16>, vector<32x512xbf16>, vector<1x512xf32> -> vector<1x512xf32>
    %255 = arith.addf %249, %254 : vector<1x512xf32>
    %256 = vector.extract_strided_slice %182 {offsets = [30, 0], sizes = [1, 32], strides = [1, 1]} : vector<34x32xf32> to vector<1x32xf32>
    %257 = arith.truncf %256 : vector<1x32xf32> to vector<1x32xbf16>
    %c12 = arith.constant 12 : index
    %c0_163 = arith.constant 0 : index
    %c0_164 = arith.constant 0 : index
    %258 = vector.load %arg10[%c12, %c0_163, %c0_164] : memref<16x32x512xbf16, #tpu.memory_space<vmem>>, vector<1x32x512xbf16>
    %259 = vector.shape_cast %258 : vector<1x32x512xbf16> to vector<32x512xbf16>
    %cst_165 = arith.constant dense<0.000000e+00> : vector<1x512xf32>
    %260 = tpu.matmul %257, %259, %cst_165 {dimension_numbers = #tpu.dot_dimension_numbers<[1], [0], [0], [1], [0, 0, 1, 1], [], []>} : vector<1x32xbf16>, vector<32x512xbf16>, vector<1x512xf32> -> vector<1x512xf32>
    %261 = arith.addf %255, %260 : vector<1x512xf32>
    %262 = vector.extract_strided_slice %182 {offsets = [31, 0], sizes = [1, 32], strides = [1, 1]} : vector<34x32xf32> to vector<1x32xf32>
    %263 = arith.truncf %262 : vector<1x32xf32> to vector<1x32xbf16>
    %c13 = arith.constant 13 : index
    %c0_166 = arith.constant 0 : index
    %c0_167 = arith.constant 0 : index
    %264 = vector.load %arg10[%c13, %c0_166, %c0_167] : memref<16x32x512xbf16, #tpu.memory_space<vmem>>, vector<1x32x512xbf16>
    %265 = vector.shape_cast %264 : vector<1x32x512xbf16> to vector<32x512xbf16>
    %cst_168 = arith.constant dense<0.000000e+00> : vector<1x512xf32>
    %266 = tpu.matmul %263, %265, %cst_168 {dimension_numbers = #tpu.dot_dimension_numbers<[1], [0], [0], [1], [0, 0, 1, 1], [], []>} : vector<1x32xbf16>, vector<32x512xbf16>, vector<1x512xf32> -> vector<1x512xf32>
    %267 = arith.addf %261, %266 : vector<1x512xf32>
    %268 = vector.extract_strided_slice %182 {offsets = [32, 0], sizes = [1, 32], strides = [1, 1]} : vector<34x32xf32> to vector<1x32xf32>
    %269 = arith.truncf %268 : vector<1x32xf32> to vector<1x32xbf16>
    %c14 = arith.constant 14 : index
    %c0_169 = arith.constant 0 : index
    %c0_170 = arith.constant 0 : index
    %270 = vector.load %arg10[%c14, %c0_169, %c0_170] : memref<16x32x512xbf16, #tpu.memory_space<vmem>>, vector<1x32x512xbf16>
    %271 = vector.shape_cast %270 : vector<1x32x512xbf16> to vector<32x512xbf16>
    %cst_171 = arith.constant dense<0.000000e+00> : vector<1x512xf32>
    %272 = tpu.matmul %269, %271, %cst_171 {dimension_numbers = #tpu.dot_dimension_numbers<[1], [0], [0], [1], [0, 0, 1, 1], [], []>} : vector<1x32xbf16>, vector<32x512xbf16>, vector<1x512xf32> -> vector<1x512xf32>
    %273 = arith.addf %267, %272 : vector<1x512xf32>
    %274 = vector.extract_strided_slice %182 {offsets = [33, 0], sizes = [1, 32], strides = [1, 1]} : vector<34x32xf32> to vector<1x32xf32>
    %275 = arith.truncf %274 : vector<1x32xf32> to vector<1x32xbf16>
    %c15 = arith.constant 15 : index
    %c0_172 = arith.constant 0 : index
    %c0_173 = arith.constant 0 : index
    %276 = vector.load %arg10[%c15, %c0_172, %c0_173] : memref<16x32x512xbf16, #tpu.memory_space<vmem>>, vector<1x32x512xbf16>
    %277 = vector.shape_cast %276 : vector<1x32x512xbf16> to vector<32x512xbf16>
    %cst_174 = arith.constant dense<0.000000e+00> : vector<1x512xf32>
    %278 = tpu.matmul %275, %277, %cst_174 {dimension_numbers = #tpu.dot_dimension_numbers<[1], [0], [0], [1], [0, 0, 1, 1], [], []>} : vector<1x32xbf16>, vector<32x512xbf16>, vector<1x512xf32> -> vector<1x512xf32>
    %279 = arith.addf %273, %278 : vector<1x512xf32>
    %cst_175 = arith.constant dense<0.000000e+00> : vector<1xf32>
    %280 = vector.multi_reduction <add>, %279, %cst_175 [1] : vector<1x512xf32> to vector<1xf32>
    %281 = vector.shape_cast %280 : vector<1xf32> to vector<1x1xf32>
    %cst_176 = arith.constant 5.120000e+02 : f32
    %282 = vector.broadcast %cst_176 : f32 to vector<1x1xf32>
    %283 = arith.divf %281, %282 : vector<1x1xf32>
    %284 = vector.broadcast %283 : vector<1x1xf32> to vector<1x512xf32>
    %285 = arith.subf %279, %284 : vector<1x512xf32>
    %286 = arith.mulf %285, %285 : vector<1x512xf32>
    %cst_177 = arith.constant dense<0.000000e+00> : vector<1xf32>
    %287 = vector.multi_reduction <add>, %286, %cst_177 [1] : vector<1x512xf32> to vector<1xf32>
    %288 = vector.shape_cast %287 : vector<1xf32> to vector<1x1xf32>
    %cst_178 = arith.constant 5.120000e+02 : f32
    %289 = vector.broadcast %cst_178 : f32 to vector<1x1xf32>
    %290 = arith.divf %288, %289 : vector<1x1xf32>
    %291 = vector.broadcast %283 : vector<1x1xf32> to vector<1x512xf32>
    %292 = arith.subf %279, %291 : vector<1x512xf32>
    %cst_179 = arith.constant 9.99999974E-6 : f32
    %293 = vector.broadcast %cst_179 : f32 to vector<1x1xf32>
    %294 = arith.addf %290, %293 : vector<1x1xf32>
    %295 = math.rsqrt %294 : vector<1x1xf32>
    %296 = vector.broadcast %295 : vector<1x1xf32> to vector<1x512xf32>
    %297 = arith.mulf %292, %296 : vector<1x512xf32>
    %c0_180 = arith.constant 0 : index
    %c0_181 = arith.constant 0 : index
    %298 = vector.load %arg12[%c0_180, %c0_181] : memref<1x512xf32, #tpu.memory_space<vmem>>, vector<1x512xf32>
    %299 = arith.mulf %297, %298 : vector<1x512xf32>
    %c0_182 = arith.constant 0 : index
    %c0_183 = arith.constant 0 : index
    %300 = vector.load %arg13[%c0_182, %c0_183] : memref<1x512xf32, #tpu.memory_space<vmem>>, vector<1x512xf32>
    %301 = arith.addf %299, %300 : vector<1x512xf32>
    %302 = math.tanh %301 : vector<1x512xf32>
    %c0_184 = arith.constant 0 : index
    %c0_185 = arith.constant 0 : index
    %c0_186 = arith.constant 0 : index
    %303 = vector.load %arg14[%c0_184, %c0_185, %c0_186] : memref<1x1x512xf32, #tpu.memory_space<vmem>>, vector<1x1x512xf32>
    %304 = vector.shape_cast %303 : vector<1x1x512xf32> to vector<1x512xf32>
    %305 = vector.shape_cast %302 : vector<1x512xf32> to vector<1x1x512xf32>
    tpu.vector_store %arg14[%c0_184, %c0_185, %c0_186], %305 {strides = array<i32>} : memref<1x1x512xf32, #tpu.memory_space<vmem>>, vector<1x1x512xf32>,
    return
  }
  func.func @transform_0(%arg0: i32) -> (i32, i32, i32) {
    %c0_i32 = arith.constant 0 : i32
    %c0_i32_0 = arith.constant 0 : i32
    %c0_i32_1 = arith.constant 0 : i32
    return %arg0, %c0_i32, %c0_i32_0 : i32, i32, i32
  }
  func.func @transform_1(%arg0: i32) -> (i32, i32) {
    %c0_i32 = arith.constant 0 : i32
    %c0_i32_0 = arith.constant 0 : i32
    %c0_i32_1 = arith.constant 0 : i32
    return %c0_i32, %c0_i32_0 : i32, i32
  }
  func.func @transform_2(%arg0: i32) -> (i32, i32) {
    %c0_i32 = arith.constant 0 : i32
    %c0_i32_0 = arith.constant 0 : i32
    %c0_i32_1 = arith.constant 0 : i32
    return %c0_i32, %c0_i32_0 : i32, i32
  }
  func.func @transform_3(%arg0: i32) -> (i32, i32, i32) {
    %c0_i32 = arith.constant 0 : i32
    %c0_i32_0 = arith.constant 0 : i32
    %c0_i32_1 = arith.constant 0 : i32
    %c0_i32_2 = arith.constant 0 : i32
    return %c0_i32, %c0_i32_0, %c0_i32_1 : i32, i32, i32
  }
  func.func @transform_4(%arg0: i32) -> (i32, i32) {
    %c0_i32 = arith.constant 0 : i32
    %c0_i32_0 = arith.constant 0 : i32
    %c0_i32_1 = arith.constant 0 : i32
    return %c0_i32, %c0_i32_0 : i32, i32
  }
  func.func @transform_5(%arg0: i32) -> (i32, i32, i32) {
    %c0_i32 = arith.constant 0 : i32
    %c0_i32_0 = arith.constant 0 : i32
    %c0_i32_1 = arith.constant 0 : i32
    %c0_i32_2 = arith.constant 0 : i32
    return %c0_i32, %c0_i32_0, %c0_i32_1 : i32, i32, i32
  }
  func.func @transform_6(%arg0: i32) -> (i32, i32) {
    %c0_i32 = arith.constant 0 : i32
    %c0_i32_0 = arith.constant 0 : i32
    %c0_i32_1 = arith.constant 0 : i32
    return %c0_i32, %c0_i32_0 : i32, i32
  }
  func.func @transform_7(%arg0: i32) -> (i32, i32, i32) {
    %c0_i32 = arith.constant 0 : i32
    %c0_i32_0 = arith.constant 0 : i32
    %c0_i32_1 = arith.constant 0 : i32
    %c0_i32_2 = arith.constant 0 : i32
    return %c0_i32, %c0_i32_0, %c0_i32_1 : i32, i32, i32
  }
  func.func @transform_8(%arg0: i32) -> (i32, i32) {
    %c0_i32 = arith.constant 0 : i32
    %c0_i32_0 = arith.constant 0 : i32
    %c0_i32_1 = arith.constant 0 : i32
    return %c0_i32, %c0_i32_0 : i32, i32
  }
  func.func @transform_9(%arg0: i32) -> (i32, i32, i32) {
    %c0_i32 = arith.constant 0 : i32
    %c0_i32_0 = arith.constant 0 : i32
    %c0_i32_1 = arith.constant 0 : i32
    %c0_i32_2 = arith.constant 0 : i32
    return %c0_i32, %c0_i32_0, %c0_i32_1 : i32, i32, i32
  }
  func.func @transform_10(%arg0: i32) -> (i32, i32) {
    %c0_i32 = arith.constant 0 : i32
    %c0_i32_0 = arith.constant 0 : i32
    %c0_i32_1 = arith.constant 0 : i32
    return %c0_i32, %c0_i32_0 : i32, i32
  }
  func.func @transform_11(%arg0: i32) -> (i32, i32) {
    %c0_i32 = arith.constant 0 : i32
    %c0_i32_0 = arith.constant 0 : i32
    %c0_i32_1 = arith.constant 0 : i32
    return %c0_i32, %c0_i32_0 : i32, i32
  }
  func.func @transform_12(%arg0: i32) -> (i32, i32) {
    %c0_i32 = arith.constant 0 : i32
    %c0_i32_0 = arith.constant 0 : i32
    %c0_i32_1 = arith.constant 0 : i32
    return %c0_i32, %c0_i32_0 : i32, i32
  }
  func.func @transform_13(%arg0: i32) -> (i32, i32, i32) {
    %c0_i32 = arith.constant 0 : i32
    %c0_i32_0 = arith.constant 0 : i32
    %c0_i32_1 = arith.constant 0 : i32
    return %arg0, %c0_i32, %c0_i32_0 : i32, i32, i32
  }
}

</mosaic_0001>

<bundles_post_ra>
// kernel: encoder_v2_forward.1
= control target key start
LH: loop header
LB: loop body
LE: loop exit
PB: predicated region body
PF: predicated region fallthrough
CT: control target
= control target key end

     0   :  { %s8252_s25 = smov 0   ;;  %s10006_s0 = inlined_call_operand.vmem [shape: bf16[2,100,36], index: 0, kind: input, shape index: {}]   ;;  %s10007_s1 = inlined_call_operand.vmem [shape: bf16[36,32], index: 1, kind: input, shape index: {}]   ;;  %s10008_s2 = inlined_call_operand.vmem [shape: f32[1,32], index: 2, kind: input, shape index: {}]   ;;  %s10009_s3 = inlined_call_operand.vmem [shape: bf16[9,32,32], index: 3, kind: input, shape index: {}]   ;;  %s10010_s4 = inlined_call_operand.vmem [shape: f32[1,32], index: 4, kind: input, shape index: {}]   ;;  %s10011_s5 = inlined_call_operand.vmem [shape: bf16[9,32,32], index: 5, kind: input, shape index: {}]   ;;  %s10012_s6 = inlined_call_operand.vmem [shape: f32[1,32], index: 6, kind: input, shape index: {}]   ;;  %s10013_s7 = inlined_call_operand.vmem [shape: bf16[9,32,32], index: 7, kind: input, shape index: {}]   ;;  %s10014_s8 = inlined_call_operand.vmem [shape: f32[1,32], index: 8, kind: input, shape index: {}]   ;;  %s10015_s9 = inlined_call_operand.vmem [shape: bf16[16,32,512], index: 9, kind: input, shape index: {}]   ;;  %s10016_s10 = inlined_call_operand.vmem [shape: f32[1,512], index: 10, kind: input, shape index: {}]   ;;  %s10017_s11 = inlined_call_operand.vmem [shape: f32[1,512], index: 11, kind: input, shape index: {}]   ;;  %s10018_s12 = inlined_call_operand.vmem [shape: f32[1,512], index: 12, kind: input, shape index: {}]   ;;  %s10019_s13 = inlined_call_operand.vmem [shape: f32[2,1,512], index: 13, kind: output, shape index: {}]  }
   0x1 LB: > { %s6623_s26 = sadd.s32 4294967295, %s8176_s25   ;;  %p6627_p0 = scmp.ge.s32.totalorder %s8176_s25, 1  ;;  %s8176_s25 = sphi %s8252_s25, %s23_s25  }
   0x2   : > { %p387_p1 = scmp.lt.s32.totalorder %s8176_s25, 3 }
   0x4   : > { %p388_p2 = pnand %p6627_p0, %p387_p1 }
   0x5   : > { %v7910_v0 = vld [vmem:[%s10007_s1] sm:$0xff] (!%p388_p2)   ;;  %v8178_v1 = vmov (!%p388_p2), 0.0   ;;  %v7911_v2 = vld [vmem:[%s10007_s1 + $0x8] sm:$0xff] (!%p388_p2)   ;;  %vm535_vm0 = vcmask (!%p388_p2), 1041408   ;;  %vm8179_vm1 = vmmov (!%p388_p2), 0   ;;  %p430_p3 = scmp.lt.s32.totalorder (!%p388_p2), %s6623_s26, 1 }
   0x6   : > { %391 = sbr.rel (%p388_p2) target bundleno = 2068 (0x814), region = 72  ;;  %7363 = vmatprep.subr.bf16.mxu0 (!%p388_p2), %v8178_v1  ;;  %7397 = vmatprep.subr.bf16.mxu1 (!%p388_p2), %v8178_v1  ;;  %v7912_v3 = vld [vmem:[%s10007_s1 + $0x10] ss:$0 sps:$4 sm:$0x33] (!%p388_p2)   ;;  %vm513_vm2 = vcmask (!%p388_p2), 293888   ;;  %v7920_v12 = vld [vmem:[%s10009_s3 + $0x20] sm:$0xff] (!%p388_p2)  }
   0x7   : > { %7364 = vmatpush3.bf16.msra.mxu0 (!%p388_p2), %v7910_v0  ;;  %7369 = vmatprep.mubr.msk.bf16.mxu0 (!%p388_p2), %vm8179_vm1, %v8178_v1  ;;  %v537_v4 = vsel (!%p388_p2), %vm535_vm0, %v7912_v3, 0  ;;  %v7921_v13 = vld [vmem:[%s10009_s3 + $0x10] sm:$0xff] (!%p388_p2)   ;;  %v7922_v14 = vld [vmem:[%s10009_s3 + $0x28] sm:$0xff] (!%p388_p2)   ;;  %v7923_v15 = vld [vmem:[%s10009_s3 + $0x18] sm:$0xff] (!%p388_p2)   ;;  %vm900_vm3 = vcmask (!%p388_p2), 1046528   ;;  %vm706_vm4 = vcmask (!%p388_p2), 261120  }
   0x8   : > { %7365 = vmatprep.subr.bf16.mxu0 (!%p388_p2), %v8178_v1  ;;  %7401 = vmatprep.mubr.msk.bf16.mxu1 (!%p388_p2), %vm8179_vm1, %v8178_v1  ;;  %v8324_v16 = vld [vmem:[%s10008_s2] ss:$0 sm:$0xff] (!%p388_p2)  ;;  %vm654_vm5 = vsmask.f32 (!%p388_p2), 7424  ;;  %vm1326_vm6 = vcmask (!%p388_p2), 1045504   ;;  %vm1732_vm7 = vcmask (!%p388_p2), 1044480  }
   0x9   : > { %7398 = vmatpush3.bf16.msra.mxu1 (!%p388_p2), %v7921_v13  ;;  %v7926_v50 = vld [vmem:[%s10009_s3 + $0x40] sm:$0xff] (!%p388_p2)   ;;  %vm1160_vm8 = vsmask.f32 (!%p388_p2), 6400  ;;  %v7927_v3 = vld [vmem:[%s10009_s3 + $0x48] sm:$0xff] (!%p388_p2)   ;;  %vm1583_vm9 = vsmask.f32 (!%p388_p2), 5376 }
   0xa   : > { %7399 = vmatprep.subr.bf16.mxu1 (!%p388_p2), %v8178_v1  ;;  %v7924_v59 = vld [vmem:[%s10009_s3] sm:$0xff] (!%p388_p2)   ;;  %vm6500_vm10 = vcmask (!%p388_p2), 1040384  }
   0xb   : > { %7366 = vmatpush3.bf16.msra.mxu0 (!%p388_p2), %v7911_v2 }
   0xc   : > { %7367 = vmatprep.subr.bf16.mxu0 (!%p388_p2), %v8178_v1 }
   0xd   : > { %s10021_s26 = smov (!%p430_p3, %s6623_s26), 1  ;;  %7400 = vmatpush3.bf16.msra.mxu1 %v7923_v15 }
   0xe   : > { %s7897_s16 = smul.u32 52, %s10021_s26  ;;  %7421 = vmatprep.subr.bf16.mxu1 %v8178_v1  ;;  %s6629_s23 = sshll.u32 %s10021_s26, 2 }
   0xf   : > { %7368 = vmatpush3.bf16.msra.mxu0 %v537_v4  ;;  %s438_s28 = scalar_lea.vmem %s10019_s13, %s6629_s23 }
  0x10   : > { %s434_s19 = scalar_lea.vmem %s10006_s0, %s7897_s16  ;;  %7445 = vmatprep.subr.bf16.mxu0 %v8178_v1 }
  0x11   : > { %v7913_v5 = vld [vmem:[%s434_s19] sm:$0xff]   ;;  %v7914_v6 = vld [vmem:[%s434_s19 + $0x8] sm:$0xff]   ;;  %v7915_v7 = vld [vmem:[%s434_s19 + $0x10] sm:$0xff]  }
  0x12   : > { %7370 = vmatmul.mubr.msk.bf16.vlgmr.msra.gmra.mrb[0].mxu0 %vm513_vm2, %v7913_v5  ;;  %v7916_v8 = vld [vmem:[%s434_s19 + $0x18] sm:$0xff]   ;;  %v7917_v9 = vld [vmem:[%s434_s19 + $0x20] sm:$0xff]   ;;  %v7918_v10 = vld [vmem:[%s434_s19 + $0x28] sm:$0xff]  }
  0x13   : > { %7373 = vmatprep.mubr.msk.bf16.mxu0 %vm8179_vm1, %v8178_v1  ;;  %v7919_v11 = vld [vmem:[%s434_s19 + $0x30] ss:$0 sps:$4 sm:$0x33]   ;;  %7446 = vmatpush3.bf16.msra.mxu0 %v7920_v12 }
  0x14   : > { %7447 = vmatprep.subr.bf16.mxu0 %v8178_v1 }
  0x17   : > { %7448 = vmatpush3.bf16.msra.mxu0 %v7922_v14  ;;  %v7925_v14 = vld [vmem:[%s10009_s3 + $0x8] sm:$0xff]  }
  0x18   : > { %7493 = vmatprep.subr.bf16.mxu0 %v8178_v1 }
  0x1a   : > { %7374 = vmatmul.mubr.msk.bf16.gmra.mrb[4].mxu0 %vm513_vm2, %v7914_v6 }
  0x1b   : > { %7377 = vmatprep.mubr.msk.bf16.mxu0 %vm8179_vm1, %v8178_v1 }
  0x22   : > { %7378 = vmatmul.mubr.msk.bf16.gmra.mrb[8].mxu0 %vm513_vm2, %v7915_v7 }
  0x23   : > { %7381 = vmatprep.mubr.msk.bf16.mxu0 %vm8179_vm1, %v8178_v1 }
  0x2a   : > { %7382 = vmatmul.mubr.msk.bf16.gmra.mrb[12].mxu0 %vm513_vm2, %v7916_v8 }
  0x2b   : > { %7385 = vmatprep.mubr.msk.bf16.mxu0 %vm8179_vm1, %v8178_v1 }
  0x32   : > { %7386 = vmatmul.mubr.msk.bf16.gmra.mrb[16].mxu0 %vm513_vm2, %v7917_v9 }
  0x33   : > { %7389 = vmatprep.mubr.msk.bf16.mxu0 %vm8179_vm1, %v8178_v1 }
  0x3a   : > { %7390 = vmatmul.mubr.msk.bf16.gmra.mrb[20].mxu0 %vm513_vm2, %v7918_v10 }
  0x3b   : > { %7393 = vmatprep.mubr.msk.bf16.mxu0 %vm8179_vm1, %v8178_v1 }
  0x42   : > { %7394 = vmatmul.mubr.msk.bf16.gmra.mrb[24].mxu0 %vm513_vm2, %v7919_v11 }
  0x43   : > { %7449 = vmatprep.mubr.msk.bf16.mxu0 %vm8179_vm1, %v8178_v1 }
  0xe5   : > { %v573_v17 = vpop.f32.mrb[0].mxu0 }
  0xe6   : > { %v574_v18 = vadd.f32 %v8324_v16, %v573_v17  ;;  %v7371_v19 = vpop.f32.mrb[1].mxu0 }
  0xe7   : > { %v576_v20 = vpop.f32.mrb[2].mxu0 }
  0xe8   : > { %v577_v21 = vadd.f32 %v8324_v16, %v576_v20  ;;  %v7372_v22 = vpop.f32.mrb[3].mxu0  ;;  %v627_v23 = vmax.f32 %v574_v18, 0.0 }
  0xea   : > { %v628_v24 = vmax.f32 %v577_v21, 0.0 }
  0xec   : > { %v8328_v25 = vpack.c.bf16 %v628_v24, %v627_v23 }
  0xed   : > { %v581_v26 = vpop.f32.mrb[4].mxu0 }
  0xee   : > { %v582_v27 = vadd.f32 %v8324_v16, %v581_v26  ;;  %v7375_v28 = vpop.f32.mrb[5].mxu0  ;;  %v658_v30 = vshll.u32 %v8328_v25, 16  ;;  %v656_v41 = vshrl.u32 %v8328_v25, 16  ;;  %v901_v42 = vrot.slane %v8328_v25, 1 }
  0xef   : > { %v584_v29 = vpop.f32.mrb[6].mxu0 }
  0xf0   : > { %v629_v31 = vmax.f32 %v582_v27, 0.0  ;;  %v585_v32 = vadd.f32 %v8324_v16, %v584_v29  ;;  %v7376_v33 = vpop.f32.mrb[7].mxu0  ;;  %v660_v36 = vrot.slane %v658_v30, 1 }
  0xf2   : > { %v8333_v34 = vpack.c.bf16 %v629_v31, %v628_v24  ;;  %v630_v35 = vmax.f32 %v585_v32, 0.0  ;;  %v661_v47 = vor.u32 %v660_v36, %v656_v41 }
  0xf4   : > { %v1162_v37 = vshrl.u32 %v8333_v34, 16  ;;  %v1165_v38 = vshll.u32 %v8333_v34, 16  ;;  %v8337_v39 = vpack.c.bf16 %v630_v35, %v629_v31  ;;  %v1035_v61 = vrot.slane %v8333_v34, 1 }
  0xf5   : > { %v589_v40 = vpop.f32.mrb[8].mxu0  ;;  %v1327_v0 = vrot.slane %v8333_v34, 2 }
  0xf6   : > { %v590_v43 = vadd.f32 %v8324_v16, %v589_v40  ;;  %v7379_v44 = vpop.f32.mrb[9].mxu0  ;;  %v902_v46 = vrot.slane %v8337_v39, 1  ;;  %v663_v48 = vshll.u32 %v8337_v39, 16  ;;  %v667_v49 = vshrl.u32 %v8337_v39, 16 }
  0xf7   : > { %v592_v45 = vpop.f32.mrb[10].mxu0  ;;  %v8348_v51 = vrot.slane %v1162_v37, 1  ;;  %v8350_v52 = vrot.slane %v1165_v38, 2  ;;  %v1457_v4 = vrot.slane %v8337_v39, 2  ;;  %v1733_v15 = vrot.slane %v8337_v39, 3 }
  0xf8   : > { %v631_v53 = vmax.f32 %v590_v43, 0.0  ;;  %v593_v54 = vadd.f32 %v8324_v16, %v592_v45  ;;  %v7380_v55 = vpop.f32.mrb[11].mxu0  ;;  %v903_v56 = vsel %vm900_vm3, %v901_v42, %v902_v46  ;;  %v665_v57 = vrot.slane %v663_v48, 1 }
  0xf9   : > { %v8354_v58 = vrot.slane %v663_v48, 3  ;;  %v8359_v60 = vrot.slane %v667_v49, 2  ;;  %7450 = vmatmul.mubr.msk.bf16.vlgmr.msra.gmra.mrb[28].mxu0 %vm706_vm4, %v903_v56  ;;  %v1168_v9 = vor.u32 %v8350_v52, %v8348_v51 }
  0xfa   : > { %v8362_v62 = vpack.c.bf16 %v631_v53, %v630_v35  ;;  %v632_v63 = vmax.f32 %v593_v54, 0.0  ;;  %v666_v2 = vsel %vm654_vm5, %v661_v47, %v665_v57  ;;  %7453 = vmatprep.mubr.msk.bf16.mxu0 %vm8179_vm1, %v8178_v1  ;;  %7494 = vmatpush3.bf16.msra.mxu0 %v7926_v50  ;;  %v669_v13 = vor.u32 %v667_v49, %v665_v57 }
  0xfb   : > { %v1586_v5 = vor.u32 %v8354_v58, %v8359_v60  ;;  %7402 = vmatmul.mubr.msk.bf16.vlgmr.msra.gmra.mrb[0].mxu1 %vm706_vm4, %v666_v2  ;;  %7495 = vmatprep.subr.bf16.mxu0 %v8178_v1 }
  0xfc   : > { %v1036_v6 = vrot.slane %v8362_v62, 1  ;;  %v1170_v7 = vshrl.u32 %v8362_v62, 16  ;;  %v1173_v8 = vshll.u32 %v8362_v62, 16  ;;  %v1328_v10 = vrot.slane %v8362_v62, 2  ;;  %7422 = vmatpush3.bf16.msra.mxu1 %v7924_v59  ;;  %7405 = vmatprep.mubr.msk.bf16.mxu1 %vm8179_vm1, %v8178_v1 }
  0xfd   : > { %v8383_v11 = vpack.c.bf16 %v632_v63, %v631_v53  ;;  %v597_v12 = vpop.f32.mrb[12].mxu0  ;;  %7423 = vmatprep.subr.bf16.mxu1 %v8178_v1 }
  0xfe   : > { %v1172_v17 = vrot.slane %v1170_v7, 1  ;;  %v1175_v18 = vrot.slane %v1173_v8, 2  ;;  %v598_v19 = vadd.f32 %v8324_v16, %v597_v12  ;;  %v7383_v20 = vpop.f32.mrb[13].mxu0  ;;  %v8396_v21 = vsel %vm900_vm3, %v1035_v61, %v1036_v6  ;;  %7496 = vmatpush3.bf16.msra.mxu0 %v7927_v3 }
  0xff   : > { %v600_v22 = vpop.f32.mrb[14].mxu0  ;;  %v904_v23 = vrot.slane %v8383_v11, 1  ;;  %v671_v24 = vshll.u32 %v8383_v11, 16  ;;  %v675_v26 = vshrl.u32 %v8383_v11, 16  ;;  %v1458_v27 = vrot.slane %v8383_v11, 2  ;;  %7541 = vmatprep.subr.bf16.mxu0 %v8178_v1 }
 0x100   : > { %v633_v28 = vmax.f32 %v598_v19, 0.0  ;;  %v601_v29 = vadd.f32 %v8324_v16, %v600_v22  ;;  %v7384_v30 = vpop.f32.mrb[15].mxu0  ;;  %v1176_v31 = vor.u32 %v1175_v18, %v1172_v17  ;;  %v1734_v32 = vrot.slane %v8383_v11, 3  ;;  %7424 = vmatpush3.bf16.msra.mxu1 %v7925_v14 }
 0x101   : > { %v905_v33 = vsel %vm900_vm3, %v902_v46, %v904_v23  ;;  %v673_v34 = vrot.slane %v671_v24, 1  ;;  %v1588_v35 = vrot.slane %v671_v24, 3  ;;  %v1587_v36 = vrot.slane %v675_v26, 2  ;;  %7469 = vmatprep.subr.bf16.mxu1 %v8178_v1 }
 0x102   : > { %v8406_v37 = vpack.c.bf16 %v633_v28, %v632_v63  ;;  %v634_v38 = vmax.f32 %v601_v29, 0.0  ;;  %7454 = vmatmul.mubr.msk.bf16.gmra.mrb[32].mxu0 %vm706_vm4, %v905_v33  ;;  %v8410_v40 = vsel %vm1160_vm8, %v1168_v9, %v1176_v31  ;;  %v8414_v41 = vsel %vm1326_vm6, %v1457_v4, %v1458_v27 }
 0x103   : > { %v674_v42 = vsel %vm654_vm5, %v669_v13, %v673_v34  ;;  %7457 = vmatprep.mubr.msk.bf16.mxu0 %vm8179_vm1, %v8178_v1  ;;  %v8420_v43 = vsel %vm1732_vm7, %v1733_v15, %v1734_v32  ;;  %v8425_v44 = vsel %vm1326_vm6, %v1327_v0, %v1328_v10  ;;  %v677_v50 = vor.u32 %v675_v26, %v673_v34 }
 0x104   : > { %v8427_v45 = vpack.c.bf16 %v634_v38, %v633_v28  ;;  %7406 = vmatmul.mubr.msk.bf16.gmra.mrb[4].mxu1 %vm706_vm4, %v674_v42  ;;  %v1179_v46 = vshrl.u32 %v8406_v37, 16  ;;  %v1182_v47 = vshll.u32 %v8406_v37, 16  ;;  %v1038_v48 = vrot.slane %v8406_v37, 1 }
 0x105   : > { %v605_v49 = vpop.f32.mrb[16].mxu0  ;;  %7409 = vmatprep.mubr.msk.bf16.mxu1 %vm8179_vm1, %v8178_v1  ;;  %v1330_v51 = vrot.slane %v8406_v37, 2  ;;  %v8436_v52 = vor.u32 %v1588_v35, %v1587_v36 }
 0x106   : > { %v606_v53 = vadd.f32 %v8324_v16, %v605_v49  ;;  %v7387_v54 = vpop.f32.mrb[17].mxu0  ;;  %v906_v55 = vrot.slane %v8427_v45, 1  ;;  %v679_v56 = vshll.u32 %v8427_v45, 16  ;;  %v683_v57 = vshrl.u32 %v8427_v45, 16 }
 0x107   : > { %v608_v59 = vpop.f32.mrb[18].mxu0  ;;  %v1181_v61 = vrot.slane %v1179_v46, 1  ;;  %v1184_v63 = vrot.slane %v1182_v47, 2  ;;  %v1460_v0 = vrot.slane %v8427_v45, 2  ;;  %v8446_v2 = vsel %vm900_vm3, %v1036_v6, %v1038_v48 }
 0x108   : > { %v635_v3 = vmax.f32 %v606_v53, 0.0  ;;  %v609_v4 = vadd.f32 %v8324_v16, %v608_v59  ;;  %v7388_v7 = vpop.f32.mrb[19].mxu0  ;;  %v907_v8 = vsel %vm900_vm3, %v904_v23, %v906_v55  ;;  %v681_v9 = vrot.slane %v679_v56, 1 }
 0x109   : > { %v1185_v12 = vor.u32 %v1184_v63, %v1181_v61  ;;  %v8451_v13 = vsel %vm1326_vm6, %v1458_v27, %v1460_v0  ;;  %v1736_v14 = vrot.slane %v8427_v45, 3  ;;  %v8457_v15 = vsel %vm1326_vm6, %v1328_v10, %v1330_v51 }
 0x10a   : > { %v8459_v6 = vpack.c.bf16 %v635_v3, %v634_v38  ;;  %v636_v17 = vmax.f32 %v609_v4, 0.0  ;;  %7458 = vmatmul.mubr.msk.bf16.gmra.mrb[36].mxu0 %vm706_vm4, %v907_v8  ;;  %v682_v18 = vsel %vm654_vm5, %v677_v50, %v681_v9  ;;  %v8476_v62 = vsel %vm1583_vm9, %v1586_v5, %v8436_v52 }
 0x10b   : > { %7461 = vmatprep.mubr.msk.bf16.mxu0 %vm8179_vm1, %v8178_v1  ;;  %v8466_v19 = vsel %vm1160_vm8, %v1176_v31, %v1185_v12  ;;  %v8469_v20 = vsel %vm1732_vm7, %v1734_v32, %v1736_v14  ;;  %v685_v27 = vor.u32 %v683_v57, %v681_v9  ;;  %v1591_v60 = vrot.slane %v683_v57, 2 }
 0x10c   : > { %v8478_v10 = vpack.c.bf16 %v636_v17, %v635_v3  ;;  %7410 = vmatmul.mubr.msk.bf16.gmra.mrb[8].mxu1 %vm706_vm4, %v682_v18  ;;  %v1188_v22 = vshrl.u32 %v8459_v6, 16  ;;  %v1191_v23 = vshll.u32 %v8459_v6, 16  ;;  %v1040_v24 = vrot.slane %v8459_v6, 1 }
 0x10d   : > { %v613_v26 = vpop.f32.mrb[20].mxu0  ;;  %7413 = vmatprep.mubr.msk.bf16.mxu1 %vm8179_vm1, %v8178_v1  ;;  %v1332_v58 = vrot.slane %v8459_v6, 2  ;;  %v1592_v5 = vrot.slane %v679_v56, 3 }
 0x10e   : > { %v614_v28 = vadd.f32 %v8324_v16, %v613_v26  ;;  %v7391_v29 = vpop.f32.mrb[21].mxu0  ;;  %v908_v30 = vrot.slane %v8478_v10, 1  ;;  %v687_v31 = vshll.u32 %v8478_v10, 16  ;;  %v691_v32 = vshrl.u32 %v8478_v10, 16 }
 0x10f   : > { %v616_v33 = vpop.f32.mrb[22].mxu0  ;;  %v1190_v34 = vrot.slane %v1188_v22, 1  ;;  %v1193_v35 = vrot.slane %v1191_v23, 2  ;;  %v1462_v36 = vrot.slane %v8478_v10, 2  ;;  %v8493_v37 = vsel %vm900_vm3, %v1038_v48, %v1040_v24 }
 0x110   : > { %v637_v38 = vmax.f32 %v614_v28, 0.0  ;;  %v617_v42 = vadd.f32 %v8324_v16, %v616_v33  ;;  %v909_v46 = vsel %vm900_vm3, %v906_v55, %v908_v30  ;;  %v689_v47 = vrot.slane %v687_v31, 1  ;;  %v7392_v49 = vpop.f32.mrb[23].mxu0 }
 0x111   : > { %v1194_v50 = vor.u32 %v1193_v35, %v1190_v34  ;;  %v8498_v53 = vsel %vm1326_vm6, %v1460_v0, %v1462_v36  ;;  %v1738_v54 = vrot.slane %v8478_v10, 3  ;;  %v8502_v56 = vsel %vm1326_vm6, %v1330_v51, %v1332_v58 }
 0x112   : > { %v8504_v57 = vpack.c.bf16 %v637_v38, %v636_v17  ;;  %v638_v48 = vmax.f32 %v617_v42, 0.0  ;;  %7462 = vmatmul.mubr.msk.bf16.gmra.mrb[40].mxu0 %vm706_vm4, %v909_v46  ;;  %v690_v59 = vsel %vm654_vm5, %v685_v27, %v689_v47  ;;  %v693_v61 = vor.u32 %v691_v32, %v689_v47 }
 0x113   : > { %7465 = vmatprep.mubr.msk.bf16.mxu0 %vm8179_vm1, %v8178_v1  ;;  %v8511_v55 = vsel %vm1160_vm8, %v1185_v12, %v1194_v50  ;;  %v8514_v63 = vsel %vm1732_vm7, %v1736_v14, %v1738_v54  ;;  %v1593_v0 = vor.u32 %v1592_v5, %v1591_v60  ;;  %v1595_v51 = vrot.slane %v691_v32, 2 }
 0x114   : > { %v1154_v3 = vpack.c.bf16 %v638_v48, %v638_v48  ;;  %v1448_v4 = vpack.c.bf16 %v638_v48, %v637_v38  ;;  %7414 = vmatmul.mubr.msk.bf16.gmra.mrb[12].mxu1 %vm706_vm4, %v690_v59  ;;  %v1197_v7 = vshrl.u32 %v8504_v57, 16  ;;  %v1200_v8 = vshll.u32 %v8504_v57, 16 }
 0x115   : > { %7417 = vmatprep.mubr.msk.bf16.mxu1 %vm8179_vm1, %v8178_v1  ;;  %v621_v9 = vpop.f32.mrb[24].mxu0  ;;  %v1042_v12 = vrot.slane %v8504_v57, 1  ;;  %v1334_v6 = vrot.slane %v8504_v57, 2  ;;  %v8525_v14 = vsel %vm1583_vm9, %v8436_v52, %v1593_v0  ;;  %v1596_v17 = vrot.slane %v687_v31, 3 }
 0x116   : > { %v1206_v18 = vshll.u32 %v1154_v3, 16  ;;  %v1336_v22 = vrot.slane %v1154_v3, 2  ;;  %v1199_v23 = vrot.slane %v1197_v7, 1  ;;  %v1202_v26 = vrot.slane %v1200_v8, 2  ;;  %v7395_v27 = vpop.f32.mrb[25].mxu0 }
 0x117   : > { %v622_v60 = vadd.f32 %v8324_v16, %v621_v9  ;;  %v1464_v5 = vrot.slane %v1448_v4, 2  ;;  %v8531_v28 = vsel %vm900_vm3, %v1040_v24, %v1042_v12  ;;  %v1740_v29 = vrot.slane %v1448_v4, 3  ;;  %v624_v32 = vpop.f32.mrb[26].mxu0 }
 0x118   : > { %v1208_v33 = vrot.slane %v1206_v18, 2  ;;  %v1203_v34 = vor.u32 %v1202_v26, %v1199_v23  ;;  %v7396_v52 = vpop.f32.mrb[27].mxu0  ;;  %v8534_v31 = vsel %vm1326_vm6, %v1332_v58, %v1334_v6  ;;  %v8537_v35 = vsel %vm1326_vm6, %v1334_v6, %v1336_v22  ;;  %v7931_v22 = vld [vmem:[%s10009_s3 + $0x68] sm:$0xff]  }
 0x119   : > { %v639_v38 = vmax.f32 %v622_v60, 0.0  ;;  %v8540_v16 = vsel %vm1326_vm6, %v1462_v36, %v1464_v5  ;;  %v8543_v42 = vsel %vm1732_vm7, %v1738_v54, %v1740_v29  ;;  %v1597_v24 = vor.u32 %v1596_v17, %v1595_v51  ;;  %v7928_v17 = vld [vmem:[%s10009_s3 + $0x30] sm:$0xff]  }
 0x11a   : > { %7466 = vmatmul.mubr.msk.bf16.gmra.mrb[44].mxu0 %vm706_vm4, %v908_v30  ;;  %v1204_v46 = vsel %vm1160_vm8, %v1194_v50, %v1203_v34  ;;  %v1209_v47 = vsel %vm1160_vm8, %v1203_v34, %v1208_v33  ;;  %v1600_v49 = vshrl.u32 %v1448_v4, 16  ;;  %v1603_v58 = vshll.u32 %v1448_v4, 16  ;;  %v7930_v4 = vld [vmem:[%s10009_s3 + $0x60] sm:$0xff]  }
 0x11b   : > { %7497 = vmatprep.mubr.msk.bf16.mxu0 %vm8179_vm1, %v8178_v1  ;;  %v1449_v48 = vpack.c.bf16 %v639_v38, %v639_v38  ;;  %v8551_v59 = vsel %vm1583_vm9, %v1593_v0, %v1597_v24 }
 0x11c   : > { %7418 = vmatmul.mubr.msk.bf16.gmra.mrb[16].mxu1 %vm706_vm4, %v693_v61  ;;  %v1602_v36 = vrot.slane %v1600_v49, 2  ;;  %v1605_v54 = vrot.slane %v1603_v58, 3 }
 0x11d   : > { %7425 = vmatprep.mubr.msk.bf16.mxu1 %vm8179_vm1, %v8178_v1  ;;  %v1609_v30 = vshrl.u32 %v1449_v48, 16  ;;  %v1612_v50 = vshll.u32 %v1449_v48, 16  ;;  %v1466_v51 = vrot.slane %v1449_v48, 2  ;;  %v1742_v3 = vrot.slane %v1449_v48, 3 }
 0x11e   : > { %v1606_v7 = vor.u32 %v1605_v54, %v1602_v36 }
 0x11f   : > { %v8560_v8 = vsel %vm1326_vm6, %v1464_v5, %v1466_v51  ;;  %v8563_v0 = vsel %vm1732_vm7, %v1740_v29, %v1742_v3  ;;  %v1611_v61 = vrot.slane %v1609_v30, 2  ;;  %v1614_v9 = vrot.slane %v1612_v50, 3 }
 0x120   : > { %v8566_v6 = vsel %vm1583_vm9, %v1597_v24, %v1606_v7  ;;  %v7938_v24 = vld [vmem:[%s10011_s5 + $0x10] sm:$0xff]  }
 0x121   : > { %v1615_v18 = vor.u32 %v1614_v9, %v1611_v61 }
 0x122   : > { %7498 = vmatmul.mubr.msk.bf16.vlgmr.msra.gmra.mrb[48].mxu0 %vm706_vm4, %v8410_v40  ;;  %v7929_v40 = vld [vmem:[%s10009_s3 + $0x38] sm:$0xff]  }
 0x123   : > { %7501 = vmatprep.mubr.msk.bf16.mxu0 %vm8179_vm1, %v8178_v1  ;;  %7542 = vmatpush3.bf16.msra.mxu0 %v7930_v4  ;;  %v8579_v23 = vsel %vm1583_vm9, %v1606_v7, %v1615_v18 }
 0x124   : > { %7426 = vmatmul.mubr.msk.bf16.vlgmr.msra.gmra.mrb[20].mxu1 %vm706_vm4, %v8328_v25  ;;  %7543 = vmatprep.subr.bf16.mxu0 %v8178_v1  ;;  %v7934_v25 = vld [vmem:[%s10009_s3 + $0x80] sm:$0xff]  }
 0x125   : > { %7470 = vmatpush3.bf16.msra.mxu1 %v7928_v17  ;;  %7429 = vmatprep.mubr.msk.bf16.mxu1 %vm8179_vm1, %v8178_v1 }
 0x126   : > { %7471 = vmatprep.subr.bf16.mxu1 %v8178_v1 }
 0x127   : > { %7544 = vmatpush3.bf16.msra.mxu0 %v7931_v22 }
 0x128   : > { %7589 = vmatprep.subr.bf16.mxu0 %v8178_v1 }
 0x129   : > { %7472 = vmatpush3.bf16.msra.mxu1 %v7929_v40 }
 0x12a   : > { %7502 = vmatmul.mubr.msk.bf16.gmra.mrb[52].mxu0 %vm706_vm4, %v8466_v19  ;;  %7517 = vmatprep.subr.bf16.mxu1 %v8178_v1 }
 0x12b   : > { %7505 = vmatprep.mubr.msk.bf16.mxu0 %vm8179_vm1, %v8178_v1 }
 0x12c   : > { %7430 = vmatmul.mubr.msk.bf16.gmra.mrb[24].mxu1 %vm706_vm4, %v8337_v39  ;;  %v7932_v39 = vld [vmem:[%s10009_s3 + $0x50] sm:$0xff]  }
 0x12d   : > { %7433 = vmatprep.mubr.msk.bf16.mxu1 %vm8179_vm1, %v8178_v1 }
 0x132   : > { %7506 = vmatmul.mubr.msk.bf16.gmra.mrb[56].mxu0 %vm706_vm4, %v8511_v55 }
 0x133   : > { %7509 = vmatprep.mubr.msk.bf16.mxu0 %vm8179_vm1, %v8178_v1 }
 0x134   : > { %7434 = vmatmul.mubr.msk.bf16.gmra.mrb[28].mxu1 %vm706_vm4, %v8383_v11  ;;  %v7935_v11 = vld [vmem:[%s10009_s3 + $0x88] sm:$0xff]  }
 0x135   : > { %7437 = vmatprep.mubr.msk.bf16.mxu1 %vm8179_vm1, %v8178_v1 }
 0x13a   : > { %7510 = vmatmul.mubr.msk.bf16.gmra.mrb[60].mxu0 %vm706_vm4, %v1204_v46 }
 0x13b   : > { %7513 = vmatprep.mubr.msk.bf16.mxu0 %vm8179_vm1, %v8178_v1 }
 0x13c   : > { %7438 = vmatmul.mubr.msk.bf16.gmra.mrb[32].mxu1 %vm706_vm4, %v8427_v45  ;;  %v7937_v45 = vld [vmem:[%s10009_s3 + $0x78] sm:$0xff]  }
 0x13d   : > { %7441 = vmatprep.mubr.msk.bf16.mxu1 %vm8179_vm1, %v8178_v1 }
 0x142   : > { %7514 = vmatmul.mubr.msk.bf16.gmra.mrb[64].mxu0 %vm706_vm4, %v1209_v47 }
 0x143   : > { %7545 = vmatprep.mubr.msk.bf16.mxu0 %vm8179_vm1, %v8178_v1 }
 0x144   : > { %7442 = vmatmul.mubr.msk.bf16.gmra.mrb[36].mxu1 %vm706_vm4, %v8478_v10 }
 0x145   : > { %7473 = vmatprep.mubr.msk.bf16.mxu1 %vm8179_vm1, %v8178_v1 }
 0x14a   : > { %7546 = vmatmul.mubr.msk.bf16.vlgmr.msra.gmra.mrb[68].mxu0 %vm706_vm4, %v8414_v41  ;;  %v7933_v41 = vld [vmem:[%s10009_s3 + $0x58] sm:$0xff]  }
 0x14b   : > { %7549 = vmatprep.mubr.msk.bf16.mxu0 %vm8179_vm1, %v8178_v1  ;;  %7590 = vmatpush3.bf16.msra.mxu0 %v7934_v25 }
 0x14c   : > { %7474 = vmatmul.mubr.msk.bf16.vlgmr.msra.gmra.mrb[40].mxu1 %vm706_vm4, %v8396_v21  ;;  %7591 = vmatprep.subr.bf16.mxu0 %v8178_v1  ;;  %v7936_v21 = vld [vmem:[%s10009_s3 + $0x70] sm:$0xff]  }
 0x14d   : > { %7518 = vmatpush3.bf16.msra.mxu1 %v7932_v39  ;;  %7477 = vmatprep.mubr.msk.bf16.mxu1 %vm8179_vm1, %v8178_v1 }
 0x14e   : > { %7519 = vmatprep.subr.bf16.mxu1 %v8178_v1 }
 0x14f   : > { %7592 = vmatpush3.bf16.msra.mxu0 %v7935_v11 }
 0x150   : > { %7721 = vmatprep.subr.bf16.mxu0 %v8178_v1 }
 0x151   : > { %7520 = vmatpush3.bf16.msra.mxu1 %v7933_v41 }
 0x152   : > { %7550 = vmatmul.mubr.msk.bf16.gmra.mrb[72].mxu0 %vm706_vm4, %v8451_v13  ;;  %7565 = vmatprep.subr.bf16.mxu1 %v8178_v1 }
 0x153   : > { %7553 = vmatprep.mubr.msk.bf16.mxu0 %vm8179_vm1, %v8178_v1 }
 0x154   : > { %7478 = vmatmul.mubr.msk.bf16.gmra.mrb[44].mxu1 %vm706_vm4, %v8446_v2 }
 0x155   : > { %7481 = vmatprep.mubr.msk.bf16.mxu1 %vm8179_vm1, %v8178_v1 }
 0x15a   : > { %7554 = vmatmul.mubr.msk.bf16.gmra.mrb[76].mxu0 %vm706_vm4, %v8498_v53 }
 0x15b   : > { %7557 = vmatprep.mubr.msk.bf16.mxu0 %vm8179_vm1, %v8178_v1 }
 0x15c   : > { %7482 = vmatmul.mubr.msk.bf16.gmra.mrb[48].mxu1 %vm706_vm4, %v8493_v37 }
 0x15d   : > { %7485 = vmatprep.mubr.msk.bf16.mxu1 %vm8179_vm1, %v8178_v1 }
 0x162   : > { %7558 = vmatmul.mubr.msk.bf16.gmra.mrb[80].mxu0 %vm706_vm4, %v8540_v16 }
 0x163   : > { %7561 = vmatprep.mubr.msk.bf16.mxu0 %vm8179_vm1, %v8178_v1 }
 0x164   : > { %7486 = vmatmul.mubr.msk.bf16.gmra.mrb[52].mxu1 %vm706_vm4, %v8531_v28 }
 0x165   : > { %7489 = vmatprep.mubr.msk.bf16.mxu1 %vm8179_vm1, %v8178_v1 }
 0x16a   : > { %7562 = vmatmul.mubr.msk.bf16.gmra.mrb[84].mxu0 %vm706_vm4, %v8560_v8 }
 0x16b   : > { %7593 = vmatprep.mubr.msk.bf16.mxu0 %vm8179_vm1, %v8178_v1 }
 0x16c   : > { %7490 = vmatmul.mubr.msk.bf16.gmra.mrb[56].mxu1 %vm706_vm4, %v1042_v12 }
 0x16d   : > { %7521 = vmatprep.mubr.msk.bf16.mxu1 %vm8179_vm1, %v8178_v1 }
 0x172   : > { %7594 = vmatmul.mubr.msk.bf16.vlgmr.msra.gmra.mrb[88].mxu0 %vm706_vm4, %v8420_v43 }
 0x173   : > { %7597 = vmatprep.mubr.msk.bf16.mxu0 %vm8179_vm1, %v8178_v1 }
 0x174   : > { %7522 = vmatmul.mubr.msk.bf16.vlgmr.msra.gmra.mrb[60].mxu1 %vm706_vm4, %v8425_v44 }
 0x175   : > { %7566 = vmatpush3.bf16.msra.mxu1 %v7936_v21  ;;  %7525 = vmatprep.mubr.msk.bf16.mxu1 %vm8179_vm1, %v8178_v1 }
 0x176   : > { %7567 = vmatprep.subr.bf16.mxu1 %v8178_v1 }
 0x179   : > { %7568 = vmatpush3.bf16.msra.mxu1 %v7937_v45 }
 0x17a   : > { %7598 = vmatmul.mubr.msk.bf16.gmra.mrb[92].mxu0 %vm706_vm4, %v8469_v20  ;;  %7613 = vmatprep.subr.bf16.mxu1 %v7938_v24 }
 0x17b   : > { %7601 = vmatprep.mubr.msk.bf16.mxu0 %vm8179_vm1, %v8178_v1 }
 0x17c   : > { %7526 = vmatmul.mubr.msk.bf16.gmra.mrb[64].mxu1 %vm706_vm4, %v8457_v15 }
 0x17d   : > { %7529 = vmatprep.mubr.msk.bf16.mxu1 %vm8179_vm1, %v8178_v1 }
 0x182   : > { %7602 = vmatmul.mubr.msk.bf16.gmra.mrb[96].mxu0 %vm706_vm4, %v8514_v63 }
 0x183   : > { %7605 = vmatprep.mubr.msk.bf16.mxu0 %vm8179_vm1, %v8178_v1 }
 0x184   : > { %7530 = vmatmul.mubr.msk.bf16.gmra.mrb[68].mxu1 %vm706_vm4, %v8502_v56 }
 0x185   : > { %7533 = vmatprep.mubr.msk.bf16.mxu1 %vm8179_vm1, %v8178_v1 }
 0x18a   : > { %7606 = vmatmul.mubr.msk.bf16.gmra.mrb[100].mxu0 %vm706_vm4, %v8543_v42 }
 0x18b   : > { %7609 = vmatprep.mubr.msk.bf16.mxu0 %vm8179_vm1, %v8178_v1 }
 0x18c   : > { %7534 = vmatmul.mubr.msk.bf16.gmra.mrb[72].mxu1 %vm706_vm4, %v8534_v31 }
 0x18d   : > { %7537 = vmatprep.mubr.msk.bf16.mxu1 %vm8179_vm1, %v8178_v1 }
 0x192   : > { %7610 = vmatmul.mubr.msk.bf16.gmra.mrb[104].mxu0 %vm706_vm4, %v8563_v0 }
 0x193   : > { %7725 = vmatprep.mubr.msk.bf16.mxu0 %vm8179_vm1, %v8178_v1 }
 0x194   : > { %7538 = vmatmul.mubr.msk.bf16.gmra.mrb[76].mxu1 %vm706_vm4, %v8537_v35 }
 0x195   : > { %7569 = vmatprep.mubr.msk.bf16.mxu1 %vm8179_vm1, %v8178_v1 }
 0x19c   : > { %7570 = vmatmul.mubr.msk.bf16.vlgmr.msra.gmra.mrb[80].mxu1 %vm706_vm4, %v8476_v62 }
 0x19d   : > { %7573 = vmatprep.mubr.msk.bf16.mxu1 %vm8179_vm1, %v8178_v1  ;;  %7614 = vmatpush3.bf16.msra.mxu1 %v7938_v24 }
 0x1a4   : > { %7574 = vmatmul.mubr.msk.bf16.gmra.mrb[84].mxu1 %vm706_vm4, %v8525_v14 }
 0x1a5   : > { %7577 = vmatprep.mubr.msk.bf16.mxu1 %vm8179_vm1, %v8178_v1 }
 0x1ac   : > { %7578 = vmatmul.mubr.msk.bf16.gmra.mrb[88].mxu1 %vm706_vm4, %v8551_v59 }
 0x1ad   : > { %7581 = vmatprep.mubr.msk.bf16.mxu1 %vm8179_vm1, %v8178_v1 }
 0x1b4   : > { %7582 = vmatmul.mubr.msk.bf16.gmra.mrb[92].mxu1 %vm706_vm4, %v8566_v6 }
 0x1b5   : > { %7585 = vmatprep.mubr.msk.bf16.mxu1 %vm8179_vm1, %v8178_v1 }
 0x1bc   : > { %7586 = vmatmul.mubr.msk.bf16.gmra.mrb[96].mxu1 %vm706_vm4, %v8579_v23 }
 0x1cc   : > { %v971_v43 = vpop.f32.mrb[28].mxu0 }
 0x1cd   : > { %v7451_v44 = vpop.f32.mrb[29].mxu0 }
 0x1ce   : > { %v756_v2 = vpop.f32.mrb[0].mxu1  ;;  %v974_v13 = vpop.f32.mrb[30].mxu0 }
 0x1cf   : > { %v7403_v15 = vpop.f32.mrb[1].mxu1  ;;  %v7452_v19 = vpop.f32.mrb[31].mxu0 }
 0x1d0   : > { %v759_v20 = vpop.f32.mrb[2].mxu1 }
 0x1d1   : > { %v7404_v62 = vpop.f32.mrb[3].mxu1 }
 0x1d5   : > { %v979_v10 = vpop.f32.mrb[32].mxu0 }
 0x1d6   : > { %v7455_v37 = vpop.f32.mrb[33].mxu0 }
 0x1d7   : > { %v764_v53 = vpop.f32.mrb[4].mxu1  ;;  %v982_v56 = vpop.f32.mrb[34].mxu0 }
 0x1d8   : > { %v7407_v57 = vpop.f32.mrb[5].mxu1  ;;  %v7456_v55 = vpop.f32.mrb[35].mxu0 }
 0x1d9   : > { %v767_v63 = vpop.f32.mrb[6].mxu1 }
 0x1da   : > { %v7408_v12 = vpop.f32.mrb[7].mxu1 }
 0x1dd   : > { %v8744_v14 = vpop.f32.mrb[36].mxu0 }
 0x1de   : > { %v7459_v26 = vpop.f32.mrb[37].mxu0 }
 0x1df   : > { %v772_v27 = vpop.f32.mrb[8].mxu1  ;;  %v990_v60 = vpop.f32.mrb[38].mxu0 }
 0x1e0   : > { %v7411_v5 = vpop.f32.mrb[9].mxu1  ;;  %v7460_v28 = vpop.f32.mrb[39].mxu0 }
 0x1e1   : > { %v775_v29 = vpop.f32.mrb[10].mxu1 }
 0x1e2   : > { %v7412_v32 = vpop.f32.mrb[11].mxu1 }
 0x1e5   : > { %v8746_v33 = vpop.f32.mrb[40].mxu0 }
 0x1e6   : > { %v7463_v34 = vpop.f32.mrb[41].mxu0 }
 0x1e7   : > { %v780_v52 = vpop.f32.mrb[12].mxu1  ;;  %v8748_v31 = vpop.f32.mrb[42].mxu0 }
 0x1e8   : > { %v7415_v35 = vpop.f32.mrb[13].mxu1  ;;  %v7464_v38 = vpop.f32.mrb[43].mxu0 }
 0x1e9   : > { %v783_v16 = vpop.f32.mrb[14].mxu1 }
 0x1ea   : > { %v7416_v42 = vpop.f32.mrb[15].mxu1 }
 0x1ed   : > { %v8753_v46 = vpop.f32.mrb[44].mxu0 }
 0x1ee   : > { %v7467_v47 = vpop.f32.mrb[45].mxu0 }
 0x1ef   : > { %v788_v49 = vpop.f32.mrb[16].mxu1  ;;  %v8755_v58 = vpop.f32.mrb[46].mxu0 }
 0x1f0   : > { %v7419_v48 = vpop.f32.mrb[17].mxu1  ;;  %v7468_v59 = vpop.f32.mrb[47].mxu0 }
 0x1f1   : > { %v791_v36 = vpop.f32.mrb[18].mxu1 }
 0x1f2   : > { %v7420_v54 = vpop.f32.mrb[19].mxu1 }
 0x1f5   : > { %v8757_v30 = vpop.f32.mrb[48].mxu0 }
 0x1f6   : > { %v7499_v50 = vpop.f32.mrb[49].mxu0 }
 0x1f7   : > { %v851_v51 = vpop.f32.mrb[20].mxu1  ;;  %v8759_v3 = vpop.f32.mrb[50].mxu0 }
 0x1f8   : > { %v852_v7 = vadd.f32 %v851_v51, %v756_v2  ;;  %v7427_v4 = vpop.f32.mrb[21].mxu1  ;;  %v7500_v8 = vpop.f32.mrb[51].mxu0  ;;  %v7939_v2 = vld [vmem:[%s10011_s5 + $0x18] sm:$0xff]  }
 0x1f9   : > { %v854_v0 = vpop.f32.mrb[22].mxu1  ;;  %7615 = vmatprep.subr.bf16.mxu1 %v7939_v2 }
 0x1fa   : > { %v855_v61 = vadd.f32 %v854_v0, %v759_v20  ;;  %v7428_v9 = vpop.f32.mrb[23].mxu1  ;;  %v1010_v6 = vadd.f32 %v971_v43, %v852_v7  ;;  %7616 = vmatpush3.bf16.msra.mxu1 %v7939_v2 }
 0x1fc   : > { %v1011_v17 = vadd.f32 %v974_v13, %v855_v61 }
 0x1fd   : > { %v8761_v18 = vpop.f32.mrb[52].mxu0 }
 0x1fe   : > { %v7503_v22 = vpop.f32.mrb[53].mxu0 }
 0x1ff   : > { %v859_v23 = vpop.f32.mrb[24].mxu1  ;;  %v8763_v40 = vpop.f32.mrb[54].mxu0 }
 0x200   : > { %v860_v25 = vadd.f32 %v859_v23, %v764_v53  ;;  %v7431_v39 = vpop.f32.mrb[25].mxu1  ;;  %v7504_v11 = vpop.f32.mrb[55].mxu0 }
 0x201   : > { %v862_v41 = vpop.f32.mrb[26].mxu1 }
 0x202   : > { %v863_v21 = vadd.f32 %v862_v41, %v767_v63  ;;  %v7432_v45 = vpop.f32.mrb[27].mxu1  ;;  %v1012_v44 = vadd.f32 %v979_v10, %v860_v25 }
 0x204   : > { %v1013_v15 = vadd.f32 %v982_v56, %v863_v21 }
 0x205   : > { %v8768_v43 = vpop.f32.mrb[56].mxu0 }
 0x206   : > { %v7507_v13 = vpop.f32.mrb[57].mxu0 }
 0x207   : > { %v867_v19 = vpop.f32.mrb[28].mxu1  ;;  %v8770_v20 = vpop.f32.mrb[58].mxu0 }
 0x208   : > { %v868_v62 = vadd.f32 %v867_v19, %v772_v27  ;;  %v7435_v37 = vpop.f32.mrb[29].mxu1  ;;  %v7508_v53 = vpop.f32.mrb[59].mxu0 }
 0x209   : > { %v870_v57 = vpop.f32.mrb[30].mxu1 }
 0x20a   : > { %v871_v55 = vadd.f32 %v870_v57, %v775_v29  ;;  %v7436_v63 = vpop.f32.mrb[31].mxu1  ;;  %v1014_v10 = vadd.f32 %v8744_v14, %v868_v62 }
 0x20c   : > { %v1015_v12 = vadd.f32 %v990_v60, %v871_v55 }
 0x20d   : > { %v8773_v26 = vpop.f32.mrb[60].mxu0 }
 0x20e   : > { %v7511_v56 = vpop.f32.mrb[61].mxu0 }
 0x20f   : > { %v875_v5 = vpop.f32.mrb[32].mxu1  ;;  %v8775_v28 = vpop.f32.mrb[62].mxu0 }
 0x210   : > { %v876_v32 = vadd.f32 %v875_v5, %v780_v52  ;;  %v7439_v34 = vpop.f32.mrb[33].mxu1  ;;  %v7512_v35 = vpop.f32.mrb[63].mxu0 }
 0x211   : > { %v878_v38 = vpop.f32.mrb[34].mxu1 }
 0x212   : > { %v879_v42 = vadd.f32 %v878_v38, %v783_v16  ;;  %v7440_v27 = vpop.f32.mrb[35].mxu1  ;;  %v1016_v24 = vadd.f32 %v8746_v33, %v876_v32  ;;  %v8787_v33 = vld [vmem:[%s10011_s5] sm:$0xff]  }
 0x213   : > { %7625 = vmatprep.subr.bf16.mxu1 %v8787_v33 }
 0x214   : > { %v1017_v29 = vadd.f32 %v8748_v31, %v879_v42 }
 0x215   : > { %v8779_v47 = vpop.f32.mrb[64].mxu0 }
 0x216   : > { %v7515_v14 = vpop.f32.mrb[65].mxu0 }
 0x217   : > { %v883_v60 = vpop.f32.mrb[36].mxu1  ;;  %v8781_v48 = vpop.f32.mrb[66].mxu0 }
 0x218   : > { %v884_v59 = vadd.f32 %v883_v60, %v788_v49  ;;  %v7443_v54 = vpop.f32.mrb[37].mxu1  ;;  %v7516_v50 = vpop.f32.mrb[67].mxu0 }
 0x219   : > { %v886_v51 = vpop.f32.mrb[38].mxu1 }
 0x21a   : > { %v887_v52 = vadd.f32 %v886_v51, %v791_v36  ;;  %v7444_v7 = vpop.f32.mrb[39].mxu1  ;;  %v1018_v4 = vadd.f32 %v8753_v46, %v884_v59 }
 0x21c   : > { %v1019_v31 = vadd.f32 %v8755_v58, %v887_v52 }
 0x21d   : > { %v8791_v16 = vpop.f32.mrb[68].mxu0 }
 0x21e   : > { %v7547_v8 = vpop.f32.mrb[69].mxu0 }
 0x21f   : > { %v1105_v49 = vpop.f32.mrb[40].mxu1  ;;  %v8793_v0 = vpop.f32.mrb[70].mxu0 }
 0x220   : > { %v1144_v61 = vadd.f32 %v1105_v49, %v1010_v6  ;;  %v7475_v36 = vpop.f32.mrb[41].mxu1  ;;  %v7548_v9 = vpop.f32.mrb[71].mxu0 }
 0x221   : > { %v1108_v22 = vpop.f32.mrb[42].mxu1 }
 0x222   : > { %v1145_v46 = vadd.f32 %v1108_v22, %v1011_v17  ;;  %v7476_v23 = vpop.f32.mrb[43].mxu1  ;;  %v1310_v25 = vadd.f32 %v8757_v30, %v1144_v61 }
 0x224   : > { %v1311_v39 = vadd.f32 %v8759_v3, %v1145_v46 }
 0x225   : > { %v8797_v11 = vpop.f32.mrb[72].mxu0 }
 0x226   : > { %v7551_v58 = vpop.f32.mrb[73].mxu0 }
 0x227   : > { %v1113_v41 = vpop.f32.mrb[44].mxu1  ;;  %v8799_v21 = vpop.f32.mrb[74].mxu0 }
 0x228   : > { %v1146_v45 = vadd.f32 %v1113_v41, %v1012_v44  ;;  %v7479_v2 = vpop.f32.mrb[45].mxu1  ;;  %v7552_v13 = vpop.f32.mrb[75].mxu0 }
 0x229   : > { %v1116_v19 = vpop.f32.mrb[46].mxu1 }
 0x22a   : > { %v1147_v6 = vadd.f32 %v1116_v19, %v1013_v15  ;;  %v7480_v62 = vpop.f32.mrb[47].mxu1  ;;  %v1312_v37 = vadd.f32 %v8761_v18, %v1146_v45 }
 0x22c   : > { %v1313_v17 = vadd.f32 %v8763_v40, %v1147_v6 }
 0x22d   : > { %v8803_v53 = vpop.f32.mrb[76].mxu0 }
 0x22e   : > { %v7555_v30 = vpop.f32.mrb[77].mxu0 }
 0x22f   : > { %v1121_v3 = vpop.f32.mrb[48].mxu1  ;;  %v8805_v57 = vpop.f32.mrb[78].mxu0 }
 0x230   : > { %v1148_v55 = vadd.f32 %v1121_v3, %v1014_v10  ;;  %v7483_v63 = vpop.f32.mrb[49].mxu1  ;;  %v7556_v56 = vpop.f32.mrb[79].mxu0 }
 0x231   : > { %v1124_v5 = vpop.f32.mrb[50].mxu1 }
 0x232   : > { %v1149_v44 = vadd.f32 %v1124_v5, %v1015_v12  ;;  %v7484_v32 = vpop.f32.mrb[51].mxu1  ;;  %v1314_v34 = vadd.f32 %v8768_v43, %v1148_v55 }
 0x234   : > { %v1315_v15 = vadd.f32 %v8770_v20, %v1149_v44 }
 0x235   : > { %v8809_v35 = vpop.f32.mrb[80].mxu0 }
 0x236   : > { %v7559_v18 = vpop.f32.mrb[81].mxu0 }
 0x237   : > { %v1129_v40 = vpop.f32.mrb[52].mxu1  ;;  %v8811_v38 = vpop.f32.mrb[82].mxu0 }
 0x238   : > { %v1150_v42 = vadd.f32 %v1129_v40, %v1016_v24  ;;  %v7487_v27 = vpop.f32.mrb[53].mxu1  ;;  %v7560_v14 = vpop.f32.mrb[83].mxu0 }
 0x239   : > { %v1132_v60 = vpop.f32.mrb[54].mxu1 }
 0x23a   : > { %v1151_v10 = vadd.f32 %v1132_v60, %v1017_v29  ;;  %v7488_v59 = vpop.f32.mrb[55].mxu1  ;;  %v1316_v54 = vadd.f32 %v8773_v26, %v1150_v42 }
 0x23c   : > { %v1317_v12 = vadd.f32 %v8775_v28, %v1151_v10 }
 0x23d   : > { %v8815_v50 = vpop.f32.mrb[84].mxu0 }
 0x23e   : > { %v7563_v43 = vpop.f32.mrb[85].mxu0 }
 0x23f   : > { %v1137_v20 = vpop.f32.mrb[56].mxu1  ;;  %v8817_v51 = vpop.f32.mrb[86].mxu0 }
 0x240   : > { %v1152_v52 = vadd.f32 %v1137_v20, %v1018_v4  ;;  %v7491_v7 = vpop.f32.mrb[57].mxu1  ;;  %v7564_v8 = vpop.f32.mrb[87].mxu0 }
 0x241   : > { %v1140_v49 = vpop.f32.mrb[58].mxu1 }
 0x242   : > { %v1153_v24 = vadd.f32 %v1140_v49, %v1019_v31  ;;  %v7492_v61 = vpop.f32.mrb[59].mxu1  ;;  %v1318_v36 = vadd.f32 %v8779_v47, %v1152_v52 }
 0x244   : > { %v1319_v29 = vadd.f32 %v8781_v48, %v1153_v24 }
 0x245   : > { %v8821_v9 = vpop.f32.mrb[88].mxu0 }
 0x246   : > { %v7595_v26 = vpop.f32.mrb[89].mxu0 }
 0x247   : > { %v1399_v28 = vpop.f32.mrb[60].mxu1  ;;  %v8823_v22 = vpop.f32.mrb[90].mxu0 }
 0x248   : > { %v1438_v46 = vadd.f32 %v1399_v28, %v1310_v25  ;;  %v7523_v23 = vpop.f32.mrb[61].mxu1  ;;  %v7596_v58 = vpop.f32.mrb[91].mxu0 }
 0x249   : > { %v1402_v41 = vpop.f32.mrb[62].mxu1 }
 0x24a   : > { %v1439_v4 = vadd.f32 %v1402_v41, %v1311_v39  ;;  %v7524_v45 = vpop.f32.mrb[63].mxu1  ;;  %v1568_v2 = vadd.f32 %v8791_v16, %v1438_v46  ;;  %v8862_v41 = vld [vmem:[%s10010_s4] ss:$0 sm:$0xff] }
 0x24c   : > { %v1569_v31 = vadd.f32 %v8793_v0, %v1439_v4 }
 0x24d   : > { %v8827_v13 = vpop.f32.mrb[92].mxu0 }
 0x24e   : > { %v7599_v47 = vpop.f32.mrb[93].mxu0 }
 0x24f   : > { %v1407_v48 = vpop.f32.mrb[64].mxu1  ;;  %v8829_v19 = vpop.f32.mrb[94].mxu0 }
 0x250   : > { %v1440_v6 = vadd.f32 %v1407_v48, %v1312_v37  ;;  %v7527_v62 = vpop.f32.mrb[65].mxu1  ;;  %v7600_v30 = vpop.f32.mrb[95].mxu0 }
 0x251   : > { %v1410_v3 = vpop.f32.mrb[66].mxu1 }
 0x252   : > { %v1441_v25 = vadd.f32 %v1410_v3, %v1313_v17  ;;  %v7528_v55 = vpop.f32.mrb[67].mxu1  ;;  %v1570_v63 = vadd.f32 %v8797_v11, %v1440_v6 }
 0x254   : > { %v1571_v39 = vadd.f32 %v8799_v21, %v1441_v25 }
 0x255   : > { %v8833_v56 = vpop.f32.mrb[96].mxu0 }
 0x256   : > { %v7603_v16 = vpop.f32.mrb[97].mxu0 }
 0x257   : > { %v1415_v0 = vpop.f32.mrb[68].mxu1  ;;  %v8835_v5 = vpop.f32.mrb[98].mxu0 }
 0x258   : > { %v1442_v44 = vadd.f32 %v1415_v0, %v1314_v34  ;;  %v7531_v32 = vpop.f32.mrb[69].mxu1  ;;  %v7604_v18 = vpop.f32.mrb[99].mxu0 }
 0x259   : > { %v1418_v40 = vpop.f32.mrb[70].mxu1 }
 0x25a   : > { %v1443_v37 = vadd.f32 %v1418_v40, %v1315_v15  ;;  %v7532_v42 = vpop.f32.mrb[71].mxu1  ;;  %v1572_v27 = vadd.f32 %v8803_v53, %v1442_v44 }
 0x25c   : > { %v1573_v17 = vadd.f32 %v8805_v57, %v1443_v37 }
 0x25d   : > { %v8839_v14 = vpop.f32.mrb[100].mxu0 }
 0x25e   : > { %v7607_v11 = vpop.f32.mrb[101].mxu0 }
 0x25f   : > { %v1423_v21 = vpop.f32.mrb[72].mxu1  ;;  %v8841_v60 = vpop.f32.mrb[102].mxu0 }
 0x260   : > { %v1444_v10 = vadd.f32 %v1423_v21, %v1316_v54  ;;  %v7535_v59 = vpop.f32.mrb[73].mxu1  ;;  %v7608_v43 = vpop.f32.mrb[103].mxu0 }
 0x261   : > { %v1426_v20 = vpop.f32.mrb[74].mxu1 }
 0x262   : > { %v1445_v34 = vadd.f32 %v1426_v20, %v1317_v12  ;;  %v7536_v52 = vpop.f32.mrb[75].mxu1  ;;  %v8844_v7 = vadd.f32 %v8809_v35, %v1444_v10 }
 0x264   : > { %v8847_v15 = vadd.f32 %v8811_v38, %v1445_v34 }
 0x265   : > { %v8849_v53 = vpop.f32.mrb[104].mxu0 }
 0x266   : > { %v7611_v57 = vpop.f32.mrb[105].mxu0 }
 0x267   : > { %v1431_v8 = vpop.f32.mrb[76].mxu1  ;;  %v8851_v49 = vpop.f32.mrb[106].mxu0 }
 0x268   : > { %v1446_v24 = vadd.f32 %v1431_v8, %v1318_v36  ;;  %v7539_v61 = vpop.f32.mrb[77].mxu1  ;;  %v7612_v54 = vpop.f32.mrb[107].mxu0 }
 0x269   : > { %v1434_v26 = vpop.f32.mrb[78].mxu1 }
 0x26a   : > { %v1447_v28 = vadd.f32 %v1434_v26, %v1319_v29  ;;  %v7540_v46 = vpop.f32.mrb[79].mxu1  ;;  %v8854_v12 = vadd.f32 %v8815_v50, %v1446_v24 }
 0x26c   : > { %v8857_v35 = vadd.f32 %v8817_v51, %v1447_v28 }
 0x26f   : > { %v1678_v38 = vpop.f32.mrb[80].mxu1 }
 0x270   : > { %v1717_v23 = vadd.f32 %v1678_v38, %v1568_v2  ;;  %v7571_v58 = vpop.f32.mrb[81].mxu1 }
 0x271   : > { %v1681_v36 = vpop.f32.mrb[82].mxu1 }
 0x272   : > { %v1844_v4 = vadd.f32 %v8821_v9, %v1717_v23  ;;  %v1718_v45 = vadd.f32 %v1681_v36, %v1569_v31  ;;  %v7572_v29 = vpop.f32.mrb[83].mxu1 }
 0x274   : > { %v1861_v47 = vadd.f32 %v8862_v41, %v1844_v4  ;;  %v1845_v50 = vadd.f32 %v8823_v22, %v1718_v45 }
 0x276   : > { %v1862_v51 = vadd.f32 %v8862_v41, %v1845_v50  ;;  %v1871_v6 = vmax.f32 %v1861_v47, 0.0 }
 0x277   : > { %v1686_v48 = vpop.f32.mrb[84].mxu1 }
 0x278   : > { %v1872_v2 = vmax.f32 %v1862_v51, 0.0  ;;  %v1719_v62 = vadd.f32 %v1686_v48, %v1570_v63  ;;  %v7575_v30 = vpop.f32.mrb[85].mxu1 }
 0x279   : > { %v1689_v3 = vpop.f32.mrb[86].mxu1 }
 0x27a   : > { %v8868_v25 = vpack.c.bf16 %v1872_v2, %v1871_v6  ;;  %v1846_v55 = vadd.f32 %v8827_v13, %v1719_v62  ;;  %v1720_v16 = vadd.f32 %v1689_v3, %v1571_v39  ;;  %v7576_v9 = vpop.f32.mrb[87].mxu1 }
 0x27c   : > { %v1863_v31 = vadd.f32 %v8862_v41, %v1846_v55  ;;  %v1847_v0 = vadd.f32 %v8829_v19, %v1720_v16  ;;  %v1898_v22 = vshll.u32 %v8868_v25, 16  ;;  %v1896_v19 = vshrl.u32 %v8868_v25, 16 }
 0x27d   : > { %v2108_v43 = vrot.slane %v8868_v25, 1 }
 0x27e   : > { %v1873_v44 = vmax.f32 %v1863_v31, 0.0  ;;  %v1864_v32 = vadd.f32 %v8862_v41, %v1847_v0  ;;  %v1900_v21 = vrot.slane %v1898_v22, 1 }
 0x27f   : > { %v1694_v18 = vpop.f32.mrb[88].mxu1 }
 0x280   : > { %v8875_v40 = vpack.c.bf16 %v1873_v44, %v1872_v2  ;;  %v1874_v63 = vmax.f32 %v1864_v32, 0.0  ;;  %v1721_v37 = vadd.f32 %v1694_v18, %v1572_v27  ;;  %v7579_v42 = vpop.f32.mrb[89].mxu1  ;;  %v1901_v24 = vor.u32 %v1900_v21, %v1896_v19 }
 0x281   : > { %v1697_v11 = vpop.f32.mrb[90].mxu1 }
 0x282   : > { %v8877_v13 = vpack.c.bf16 %v1874_v63, %v1873_v44  ;;  %v1848_v39 = vadd.f32 %v8833_v56, %v1721_v37  ;;  %v1722_v10 = vadd.f32 %v1697_v11, %v1573_v17  ;;  %v7580_v59 = vpop.f32.mrb[91].mxu1  ;;  %v2331_v20 = vshrl.u32 %v8875_v40, 16 }
 0x283   : > { %v2334_v34 = vshll.u32 %v8875_v40, 16  ;;  %v2465_v48 = vrot.slane %v8875_v40, 2 }
 0x284   : > { %v1865_v52 = vadd.f32 %v8862_v41, %v1848_v39  ;;  %v1849_v27 = vadd.f32 %v8835_v5, %v1722_v10  ;;  %v1903_v57 = vshll.u32 %v8877_v13, 16  ;;  %v1907_v8 = vshrl.u32 %v8877_v13, 16  ;;  %v7941_v39 = vld [vmem:[%s10011_s5 + $0x8] sm:$0xff]  }
 0x285   : > { %v2109_v56 = vrot.slane %v8877_v13, 1  ;;  %v2333_v17 = vrot.slane %v2331_v20, 1  ;;  %v2336_v61 = vrot.slane %v2334_v34, 2  ;;  %v2223_v5 = vrot.slane %v8875_v40, 1 }
 0x286   : > { %v1875_v54 = vmax.f32 %v1865_v52, 0.0  ;;  %v1866_v26 = vadd.f32 %v8862_v41, %v1849_v27  ;;  %v1905_v28 = vrot.slane %v1903_v57, 1  ;;  %v8890_v46 = vrot.slane %v1907_v8, 2 }
 0x287   : > { %v1702_v38 = vpop.f32.mrb[92].mxu1  ;;  %v8893_v23 = vsel %vm900_vm3, %v2108_v43, %v2109_v56  ;;  %v8896_v58 = vrot.slane %v1903_v57, 3  ;;  %v2337_v51 = vor.u32 %v2336_v61, %v2333_v17  ;;  %v2574_v6 = vrot.slane %v8877_v13, 2 }
 0x288   : > { %v8898_v36 = vpack.c.bf16 %v1875_v54, %v1874_v63  ;;  %v1876_v4 = vmax.f32 %v1866_v26, 0.0  ;;  %v1723_v45 = vadd.f32 %v1702_v38, %v8844_v7  ;;  %v7583_v29 = vpop.f32.mrb[93].mxu1  ;;  %v1906_v47 = vsel %vm654_vm5, %v1901_v24, %v1905_v28 }
 0x289   : > { %v1705_v50 = vpop.f32.mrb[94].mxu1  ;;  %7617 = vmatprep.mubr.msk.bf16.mxu1 %vm706_vm4, %v1906_v47  ;;  %v2683_v2 = vor.u32 %v8896_v58, %v8890_v46  ;;  %v1909_v16 = vor.u32 %v1907_v8, %v1905_v28  ;;  %v2801_v43 = vrot.slane %v8877_v13, 3 }
 0x28a   : > { %v8907_v62 = vpack.c.bf16 %v1876_v4, %v1875_v54  ;;  %v1850_v30 = vadd.f32 %v8839_v14, %v1723_v45  ;;  %v1724_v7 = vadd.f32 %v1705_v50, %v8847_v15  ;;  %v7584_v3 = vpop.f32.mrb[95].mxu1  ;;  %v2224_v55 = vrot.slane %v8898_v36, 1 }
 0x28b   : > { %v2339_v9 = vshrl.u32 %v8898_v36, 16  ;;  %v2342_v31 = vshll.u32 %v8898_v36, 16  ;;  %v2466_v0 = vrot.slane %v8898_v36, 2 }
 0x28c   : > { %v1867_v22 = vadd.f32 %v8862_v41, %v1850_v30  ;;  %v1851_v44 = vadd.f32 %v8841_v60, %v1724_v7  ;;  %v1911_v32 = vshll.u32 %v8907_v62, 16  ;;  %v1915_v14 = vshrl.u32 %v8907_v62, 16 }
 0x28d   : > { %v2111_v15 = vrot.slane %v8907_v62, 1  ;;  %v8921_v18 = vsel %vm900_vm3, %v2223_v5, %v2224_v55  ;;  %v2341_v40 = vrot.slane %v2339_v9, 1  ;;  %v2344_v63 = vrot.slane %v2342_v31, 2  ;;  %v8959_v5 = vld [vmem:[%s10011_s5 + $0x20] sm:$0xff]  }
 0x28e   : > { %v8923_v37 = vmax.f32 %v1867_v22, 0.0  ;;  %v1868_v42 = vadd.f32 %v8862_v41, %v1851_v44  ;;  %v1913_v11 = vrot.slane %v1911_v32, 1  ;;  %v8927_v21 = vsel %vm1326_vm6, %v2465_v48, %v2466_v0 }
 0x28f   : > { %v1710_v60 = vpop.f32.mrb[96].mxu1  ;;  %v8933_v10 = vsel %vm900_vm3, %v2109_v56, %v2111_v15  ;;  %v2345_v59 = vor.u32 %v2344_v63, %v2341_v40  ;;  %v2575_v19 = vrot.slane %v8907_v62, 2  ;;  %v2684_v61 = vrot.slane %v1915_v14, 2 }
 0x290   : > { %v8938_v20 = vpack.c.bf16 %v8923_v37, %v1876_v4  ;;  %v1878_v34 = vmax.f32 %v1868_v42, 0.0  ;;  %v1725_v52 = vadd.f32 %v1710_v60, %v8854_v12  ;;  %v7587_v27 = vpop.f32.mrb[97].mxu1  ;;  %v1914_v57 = vsel %vm654_vm5, %v1909_v16, %v1913_v11 }
 0x291   : > { %v1713_v8 = vpop.f32.mrb[98].mxu1  ;;  %7618 = vmatmul.mubr.msk.bf16.vlgmr.msra.gmra.mrb[100].mxu1 %vm706_vm4, %v1914_v57  ;;  %v1917_v24 = vor.u32 %v1915_v14, %v1913_v11  ;;  %v8944_v56 = vsel %vm1160_vm8, %v2337_v51, %v2345_v59  ;;  %v8947_v17 = vsel %vm1326_vm6, %v2574_v6, %v2575_v19  ;;  %v2802_v58 = vrot.slane %v8907_v62, 3 }
 0x292   : > { %v8950_v54 = vpack.c.bf16 %v1878_v34, %v8923_v37  ;;  %v1852_v26 = vadd.f32 %v8849_v53, %v1725_v52  ;;  %v1726_v12 = vadd.f32 %v1713_v8, %v8857_v35  ;;  %v7588_v28 = vpop.f32.mrb[99].mxu1  ;;  %7626 = vmatpush3.bf16.msra.mxu1 %v8787_v33  ;;  %v2226_v38 = vrot.slane %v8938_v20, 1 }
 0x293   : > { %7627 = vmatprep.subr.bf16.mxu1 %v7941_v39  ;;  %v2348_v36 = vshrl.u32 %v8938_v20, 16  ;;  %v2351_v4 = vshll.u32 %v8938_v20, 16  ;;  %v2468_v45 = vrot.slane %v8938_v20, 2  ;;  %v2685_v53 = vrot.slane %v1911_v32, 3 }
 0x294   : > { %v1869_v35 = vadd.f32 %v8862_v41, %v1852_v26  ;;  %v1853_v29 = vadd.f32 %v8851_v49, %v1726_v12  ;;  %v1919_v33 = vshll.u32 %v8950_v54, 16  ;;  %v1923_v47 = vshrl.u32 %v8950_v54, 16 }
 0x295   : > { %v2113_v50 = vrot.slane %v8950_v54, 1  ;;  %v8970_v51 = vsel %vm900_vm3, %v2224_v55, %v2226_v38  ;;  %v2350_v48 = vrot.slane %v2348_v36, 1  ;;  %v2353_v6 = vrot.slane %v2351_v4, 2  ;;  %v7943_v36 = vld [vmem:[%s10011_s5 + $0x28] sm:$0xff]  }
 0x296   : > { %v1879_v30 = vmax.f32 %v1869_v35, 0.0  ;;  %v1870_v7 = vadd.f32 %v8862_v41, %v1853_v29  ;;  %v1921_v3 = vrot.slane %v1919_v33, 1  ;;  %v2689_v16 = vrot.slane %v1919_v33, 3  ;;  %7628 = vmatpush3.bf16.msra.mxu1 %v7941_v39  ;;  %v7944_v29 = vld [vmem:[%s10011_s5 + $0x30] sm:$0xff]  }
 0x297   : > { %v2688_v9 = vrot.slane %v1923_v47, 2  ;;  %7637 = vmatprep.subr.bf16.mxu1 %v8959_v5  ;;  %v2114_v49 = vsel %vm900_vm3, %v2111_v15, %v2113_v50  ;;  %v2354_v31 = vor.u32 %v2353_v6, %v2350_v48  ;;  %v8978_v22 = vsel %vm1326_vm6, %v2466_v0, %v2468_v45 }
 0x298   : > { %v8980_v55 = vpack.c.bf16 %v1879_v30, %v1878_v34  ;;  %v1880_v44 = vmax.f32 %v1870_v7, 0.0  ;;  %v1922_v32 = vsel %vm654_vm5, %v1917_v24, %v1921_v3  ;;  %v1925_v41 = vor.u32 %v1923_v47, %v1921_v3  ;;  %v7956_v47 = vld [vmem:[%s10013_s7 + $0x10] sm:$0xff]   ;;  %v7958_v7 = vld [vmem:[%s10013_s7 + $0x60] sm:$0xff]  }
 0x299   : > { %7621 = vmatprep.mubr.msk.bf16.mxu1 %vm706_vm4, %v1922_v32  ;;  %v8985_v14 = vsel %vm1160_vm8, %v2345_v59, %v2354_v31  ;;  %v2577_v40 = vrot.slane %v8950_v54, 2  ;;  %v2686_v63 = vor.u32 %v2685_v53, %v2684_v61  ;;  %v2690_v42 = vor.u32 %v2689_v16, %v2688_v9  ;;  %7722 = vmatpush3.bf16.msra.mxu0 %v7956_v47  ;;  %v7960_v16 = vld [vmem:[%s10013_s7 + $0x68] sm:$0xff]  }
 0x29a   : > { %v8988_v15 = vpack.c.bf16 %v1880_v44, %v1879_v30  ;;  %7622 = vmatmul.mubr.msk.bf16.gmra.mrb[104].mxu1 %vm706_vm4, %v1925_v41  ;;  %v2228_v0 = vrot.slane %v8980_v55, 1  ;;  %v2357_v11 = vshrl.u32 %v8980_v55, 16  ;;  %v2360_v60 = vshll.u32 %v8980_v55, 16  ;;  %7723 = vmatprep.subr.bf16.mxu0 %v8178_v1 }
 0x29b   : > { %7629 = vmatprep.mubr.msk.bf16.mxu1 %vm706_vm4, %v8868_v25  ;;  %v2470_v39 = vrot.slane %v8980_v55, 2  ;;  %v8998_v59 = vsel %vm1326_vm6, %v2575_v19, %v2577_v40  ;;  %v9004_v20 = vsel %vm1583_vm9, %v2683_v2, %v2686_v63  ;;  %v9007_v34 = vsel %vm1583_vm9, %v2686_v63, %v2690_v42 }
 0x29c   : > { %v2229_v52 = vsel %vm900_vm3, %v2226_v38, %v2228_v0  ;;  %v2359_v27 = vrot.slane %v2357_v11, 1  ;;  %v2362_v57 = vrot.slane %v2360_v60, 2  ;;  %v2579_v25 = vrot.slane %v8988_v15, 2 }
 0x29d   : > { %v2471_v19 = vsel %vm1326_vm6, %v2468_v45, %v2470_v39  ;;  %v2693_v8 = vshrl.u32 %v8988_v15, 16  ;;  %v2696_v46 = vshll.u32 %v8988_v15, 16  ;;  %v2804_v61 = vrot.slane %v8950_v54, 3  ;;  %v7952_v54 = vld [vmem:[%s10011_s5 + $0x70] sm:$0xff]  }
 0x29e   : > { %v2363_v2 = vor.u32 %v2362_v57, %v2359_v27  ;;  %v9020_v24 = vsel %vm1326_vm6, %v2577_v40, %v2579_v25  ;;  %v2806_v26 = vrot.slane %v8988_v15, 3  ;;  %v9027_v38 = vsel %vm1732_vm7, %v2801_v43, %v2802_v58 }
 0x29f   : > { %v2695_v12 = vrot.slane %v2693_v8, 2  ;;  %v2698_v28 = vrot.slane %v2696_v46, 3  ;;  %v9034_v45 = vsel %vm1732_vm7, %v2802_v58, %v2804_v61  ;;  %v1884_v33 = vpack.c.bf16 %v8923_v37, %v8923_v37  ;;  %v7948_v37 = vld [vmem:[%s10011_s5 + $0x50] sm:$0xff]  }
 0x2a0   : > { %v2364_v4 = vsel %vm1160_vm8, %v2354_v31, %v2363_v2  ;;  %v9039_v53 = vsel %vm1732_vm7, %v2804_v61, %v2806_v26 }
 0x2a1   : > { %v9041_v35 = vor.u32 %v2698_v28, %v2695_v12 }
 0x2a2   : > { %7630 = vmatmul.mubr.msk.bf16.vlgmr.msra.gmra.mrb[100].mxu1 %vm706_vm4, %v8877_v13  ;;  %v7945_v13 = vld [vmem:[%s10011_s5 + $0x38] sm:$0xff]  }
 0x2a3   : > { %7638 = vmatpush3.bf16.msra.mxu1 %v8959_v5  ;;  %7633 = vmatprep.mubr.msk.bf16.mxu1 %vm706_vm4, %v8907_v62  ;;  %v2700_v43 = vsel %vm1583_vm9, %v2690_v42, %v9041_v35  ;;  %v7946_v62 = vld [vmem:[%s10011_s5 + $0x40] sm:$0xff]  }
 0x2a4   : > { %7639 = vmatprep.subr.bf16.mxu1 %v7943_v36  ;;  %v7954_v5 = vld [vmem:[%s10011_s5 + $0x80] sm:$0xff]  }
 0x2a7   : > { %7640 = vmatpush3.bf16.msra.mxu1 %v7943_v36 }
 0x2a8   : > { %7649 = vmatprep.subr.bf16.mxu1 %v7944_v29 }
 0x2aa   : > { %7634 = vmatmul.mubr.msk.bf16.gmra.mrb[108].mxu1 %vm706_vm4, %v1884_v33 }
 0x2ab   : > { %7641 = vmatprep.mubr.msk.bf16.mxu1 %vm706_vm4, %v8893_v23  ;;  %v7947_v23 = vld [vmem:[%s10011_s5 + $0x48] sm:$0xff]  }
 0x2b2   : > { %7642 = vmatmul.mubr.msk.bf16.vlgmr.msra.gmra.mrb[100].mxu1 %vm706_vm4, %v8933_v10  ;;  %v7950_v10 = vld [vmem:[%s10011_s5 + $0x60] sm:$0xff]  }
 0x2b3   : > { %7650 = vmatpush3.bf16.msra.mxu1 %v7944_v29  ;;  %7645 = vmatprep.mubr.msk.bf16.mxu1 %vm706_vm4, %v2114_v49 }
 0x2b4   : > { %7651 = vmatprep.subr.bf16.mxu1 %v7945_v13 }
 0x2b7   : > { %7652 = vmatpush3.bf16.msra.mxu1 %v7945_v13 }
 0x2b8   : > { %7661 = vmatprep.subr.bf16.mxu1 %v7946_v62 }
 0x2ba   : > { %7646 = vmatmul.mubr.msk.bf16.gmra.mrb[112].mxu1 %vm706_vm4, %v2113_v50  ;;  %v7957_v50 = vld [vmem:[%s10013_s7 + $0x18] sm:$0xff]  }
 0x2bb   : > { %7653 = vmatprep.mubr.msk.bf16.mxu1 %vm706_vm4, %v8921_v18  ;;  %v7949_v18 = vld [vmem:[%s10011_s5 + $0x58] sm:$0xff]   ;;  %7724 = vmatpush3.bf16.msra.mxu0 %v7957_v50 }
 0x2bc   : > { %7737 = vmatprep.subr.bf16.mxu0 %v8178_v1 }
 0x2c2   : > { %7654 = vmatmul.mubr.msk.bf16.vlgmr.msra.gmra.mrb[100].mxu1 %vm706_vm4, %v8970_v51 }
 0x2c3   : > { %7662 = vmatpush3.bf16.msra.mxu1 %v7946_v62  ;;  %7657 = vmatprep.mubr.msk.bf16.mxu1 %vm706_vm4, %v2229_v52 }
 0x2c4   : > { %7663 = vmatprep.subr.bf16.mxu1 %v7947_v23 }
 0x2c7   : > { %7664 = vmatpush3.bf16.msra.mxu1 %v7947_v23 }
 0x2c8   : > { %7673 = vmatprep.subr.bf16.mxu1 %v7948_v37 }
 0x2ca   : > { %7658 = vmatmul.mubr.msk.bf16.gmra.mrb[116].mxu1 %vm706_vm4, %v2228_v0 }
 0x2cb   : > { %7665 = vmatprep.mubr.msk.bf16.mxu1 %vm706_vm4, %v8944_v56  ;;  %v7951_v56 = vld [vmem:[%s10011_s5 + $0x68] sm:$0xff]  }
 0x2d2   : > { %7666 = vmatmul.mubr.msk.bf16.vlgmr.msra.gmra.mrb[100].mxu1 %vm706_vm4, %v8985_v14 }
 0x2d3   : > { %7674 = vmatpush3.bf16.msra.mxu1 %v7948_v37  ;;  %7669 = vmatprep.mubr.msk.bf16.mxu1 %vm706_vm4, %v2364_v4 }
 0x2d4   : > { %7675 = vmatprep.subr.bf16.mxu1 %v7949_v18 }
 0x2d7   : > { %7676 = vmatpush3.bf16.msra.mxu1 %v7949_v18 }
 0x2d8   : > { %7685 = vmatprep.subr.bf16.mxu1 %v7950_v10 }
 0x2da   : > { %7670 = vmatmul.mubr.msk.bf16.gmra.mrb[120].mxu1 %vm706_vm4, %v2363_v2 }
 0x2db   : > { %7677 = vmatprep.mubr.msk.bf16.mxu1 %vm706_vm4, %v8927_v21  ;;  %v7953_v21 = vld [vmem:[%s10011_s5 + $0x78] sm:$0xff]  }
 0x2e2   : > { %7678 = vmatmul.mubr.msk.bf16.vlgmr.msra.gmra.mrb[100].mxu1 %vm706_vm4, %v8978_v22 }
 0x2e3   : > { %7686 = vmatpush3.bf16.msra.mxu1 %v7950_v10  ;;  %7681 = vmatprep.mubr.msk.bf16.mxu1 %vm706_vm4, %v2471_v19  ;;  %v6830_v10 = vld [vmem:[%s10012_s6] ss:$0 sm:$0xff] }
 0x2e4   : > { %7687 = vmatprep.subr.bf16.mxu1 %v7951_v56 }
 0x2e7   : > { %7688 = vmatpush3.bf16.msra.mxu1 %v7951_v56 }
 0x2e8   : > { %7697 = vmatprep.subr.bf16.mxu1 %v7952_v54 }
 0x2ea   : > { %7682 = vmatmul.mubr.msk.bf16.gmra.mrb[124].mxu1 %vm706_vm4, %v2470_v39 }
 0x2eb   : > { %7689 = vmatprep.mubr.msk.bf16.mxu1 %vm706_vm4, %v8947_v17  ;;  %v7955_v17 = vld [vmem:[%s10011_s5 + $0x88] sm:$0xff]  }
 0x2f2   : > { %7690 = vmatmul.mubr.msk.bf16.vlgmr.msra.gmra.mrb[100].mxu1 %vm706_vm4, %v8998_v59 }
 0x2f3   : > { %7698 = vmatpush3.bf16.msra.mxu1 %v7952_v54  ;;  %7693 = vmatprep.mubr.msk.bf16.mxu1 %vm706_vm4, %v9020_v24 }
 0x2f4   : > { %7699 = vmatprep.subr.bf16.mxu1 %v7953_v21 }
 0x2f7   : > { %7700 = vmatpush3.bf16.msra.mxu1 %v7953_v21 }
 0x2f8   : > { %7709 = vmatprep.subr.bf16.mxu1 %v7954_v5 }
 0x2fa   : > { %7694 = vmatmul.mubr.msk.bf16.gmra.mrb[128].mxu1 %vm706_vm4, %v2579_v25 }
 0x2fb   : > { %7701 = vmatprep.mubr.msk.bf16.mxu1 %vm706_vm4, %v9004_v20 }
 0x302   : > { %7702 = vmatmul.mubr.msk.bf16.vlgmr.msra.gmra.mrb[100].mxu1 %vm706_vm4, %v9007_v34 }
 0x303   : > { %7710 = vmatpush3.bf16.msra.mxu1 %v7954_v5  ;;  %7705 = vmatprep.mubr.msk.bf16.mxu1 %vm706_vm4, %v2700_v43 }
 0x304   : > { %7711 = vmatprep.subr.bf16.mxu1 %v7955_v17 }
 0x307   : > { %7712 = vmatpush3.bf16.msra.mxu1 %v7955_v17 }
 0x308   : > { %7817 = vmatprep.subr.bf16.mxu1 %v8178_v1 }
 0x30a   : > { %7706 = vmatmul.mubr.msk.bf16.gmra.mrb[132].mxu1 %vm706_vm4, %v9041_v35 }
 0x30b   : > { %7713 = vmatprep.mubr.msk.bf16.mxu1 %vm706_vm4, %v9027_v38 }
 0x312   : > { %7714 = vmatmul.mubr.msk.bf16.vlgmr.msra.gmra.mrb[100].mxu1 %vm706_vm4, %v9034_v45 }
 0x313   : > { %7717 = vmatprep.mubr.msk.bf16.mxu1 %vm706_vm4, %v9039_v53  ;;  %7818 = vmatpush3.bf16.msra.mxu1 %v7958_v7 }
 0x314   : > { %7819 = vmatprep.subr.bf16.mxu1 %v8178_v1 }
 0x317   : > { %7820 = vmatpush3.bf16.msra.mxu1 %v7960_v16 }
 0x318   : > { %7849 = vmatprep.subr.bf16.mxu1 %v8178_v1 }
 0x31a   : > { %7718 = vmatmul.mubr.msk.bf16.gmra.mrb[136].mxu1 %vm706_vm4, %v2806_v26 }
 0x31b   : > { %7821 = vmatprep.mubr.msk.bf16.mxu1 %vm8179_vm1, %v8178_v1 }
 0x36d   : > { %v7623_v51 = vpop.f32.mrb[104].mxu1 }
 0x36e   : > { %v2000_v48 = vpop.f32.mrb[105].mxu1 }
 0x36f   : > { %v7624_v6 = vpop.f32.mrb[106].mxu1 }
 0x370   : > { %v2003_v30 = vpop.f32.mrb[107].mxu1 }
 0x37d   : > { %v7635_v3 = vpop.f32.mrb[108].mxu1 }
 0x37e   : > { %v2094_v9 = vadd.f32 %v7635_v3, %v7623_v51  ;;  %v2085_v49 = vpop.f32.mrb[109].mxu1 }
 0x37f   : > { %v2086_v31 = vadd.f32 %v2085_v49, %v2000_v48  ;;  %v7636_v22 = vpop.f32.mrb[110].mxu1 }
 0x380   : > { %v2088_v55 = vpop.f32.mrb[111].mxu1 }
 0x381   : > { %v2089_v44 = vadd.f32 %v2088_v55, %v2003_v30 }
 0x38d   : > { %v7647_v32 = vpop.f32.mrb[112].mxu1 }
 0x38e   : > { %v2209_v41 = vadd.f32 %v7647_v32, %v2094_v9  ;;  %v2189_v14 = vpop.f32.mrb[113].mxu1 }
 0x38f   : > { %v2207_v40 = vadd.f32 %v2189_v14, %v2086_v31  ;;  %v7648_v63 = vpop.f32.mrb[114].mxu1 }
 0x390   : > { %v2192_v42 = vpop.f32.mrb[115].mxu1 }
 0x391   : > { %v2208_v15 = vadd.f32 %v2192_v42, %v2089_v44 }
 0x39d   : > { %v7659_v0 = vpop.f32.mrb[116].mxu1 }
 0x39e   : > { %v2324_v11 = vadd.f32 %v7659_v0, %v2209_v41  ;;  %v2304_v60 = vpop.f32.mrb[117].mxu1 }
 0x39f   : > { %v2322_v39 = vadd.f32 %v2304_v60, %v2207_v40  ;;  %v7660_v59 = vpop.f32.mrb[118].mxu1 }
 0x3a0   : > { %v2307_v20 = vpop.f32.mrb[119].mxu1 }
 0x3a1   : > { %v2323_v34 = vadd.f32 %v2307_v20, %v2208_v15 }
 0x3ad   : > { %v7671_v52 = vpop.f32.mrb[120].mxu1 }
 0x3ae   : > { %v2459_v27 = vadd.f32 %v7671_v52, %v2324_v11  ;;  %v2439_v57 = vpop.f32.mrb[121].mxu1 }
 0x3af   : > { %v2457_v25 = vadd.f32 %v2439_v57, %v2322_v39  ;;  %v7672_v19 = vpop.f32.mrb[122].mxu1 }
 0x3b0   : > { %v2442_v8 = vpop.f32.mrb[123].mxu1 }
 0x3b1   : > { %v2458_v46 = vadd.f32 %v2442_v8, %v2323_v34  ;;  %v7959_v8 = vld [vmem:[%s10013_s7] sm:$0xff]  }
 0x3bd   : > { %v7683_v58 = vpop.f32.mrb[124].mxu1 }
 0x3be   : > { %v2566_v2 = vadd.f32 %v7683_v58, %v2459_v27  ;;  %v2546_v24 = vpop.f32.mrb[125].mxu1 }
 0x3bf   : > { %v2564_v61 = vadd.f32 %v2546_v24, %v2457_v25  ;;  %v7684_v26 = vpop.f32.mrb[126].mxu1 }
 0x3c0   : > { %v2549_v12 = vpop.f32.mrb[127].mxu1 }
 0x3c1   : > { %v2565_v28 = vadd.f32 %v2549_v12, %v2458_v46 }
 0x3cd   : > { %v7695_v38 = vpop.f32.mrb[128].mxu1 }
 0x3ce   : > { %v2675_v36 = vadd.f32 %v7695_v38, %v2566_v2  ;;  %v2655_v4 = vpop.f32.mrb[129].mxu1 }
 0x3cf   : > { %v2673_v45 = vadd.f32 %v2655_v4, %v2564_v61  ;;  %v7696_v53 = vpop.f32.mrb[130].mxu1 }
 0x3d0   : > { %v2658_v35 = vpop.f32.mrb[131].mxu1 }
 0x3d1   : > { %v2674_v43 = vadd.f32 %v2658_v35, %v2565_v28 }
 0x3dd   : > { %v7707_v29 = vpop.f32.mrb[132].mxu1 }
 0x3de   : > { %v2795_v33 = vadd.f32 %v7707_v29, %v2675_v36  ;;  %v2775_v13 = vpop.f32.mrb[133].mxu1  ;;  %v7961_v29 = vld [vmem:[%s10013_s7 + $0x8] sm:$0xff]  }
 0x3df   : > { %v2793_v62 = vadd.f32 %v2775_v13, %v2673_v45  ;;  %v7708_v23 = vpop.f32.mrb[134].mxu1 }
 0x3e0   : > { %v2778_v37 = vpop.f32.mrb[135].mxu1 }
 0x3e1   : > { %v2794_v18 = vadd.f32 %v2778_v37, %v2674_v43 }
 0x3e5   : > { %v7715_v56 = vpop.f32.mrb[100].mxu1 }
 0x3e6   : > { %v2912_v54 = vadd.f32 %v7715_v56, %v6830_v10  ;;  %v2866_v21 = vpop.f32.mrb[101].mxu1 }
 0x3e7   : > { %v2910_v5 = vadd.f32 %v6830_v10, %v2866_v21  ;;  %v7716_v17 = vpop.f32.mrb[102].mxu1  ;;  %v7962_v21 = vld [vmem:[%s10013_s7 + $0x80] sm:$0xff]  }
 0x3e8   : > { %v2913_v47 = vadd.f32 %v7716_v17, %v6830_v10  ;;  %v2869_v50 = vpop.f32.mrb[103].mxu1  ;;  %v2919_v48 = vmax.f32 %v2912_v54, 0.0 }
 0x3e9   : > { %v2911_v51 = vadd.f32 %v6830_v10, %v2869_v50  ;;  %v2917_v30 = vmax.f32 %v2910_v5, 0.0 }
 0x3ea   : > { %v2920_v6 = vmax.f32 %v2913_v47, 0.0 }
 0x3eb   : > { %v2918_v7 = vmax.f32 %v2911_v51, 0.0 }
 0x3ec   : > { %v9164_v3 = vpack.c.bf16 %v2920_v6, %v2919_v48 }
 0x3ed   : > { %v9166_v16 = vpack.c.bf16 %v2918_v7, %v2917_v30  ;;  %v9168_v9 = vpack.c.bf16 %v2919_v48, %v2918_v7  ;;  %v7719_v49 = vpop.f32.mrb[136].mxu1 }
 0x3ee   : > { %v2902_v31 = vadd.f32 %v7719_v49, %v2795_v33  ;;  %v2882_v22 = vpop.f32.mrb[137].mxu1  ;;  %v2944_v55 = vshll.u32 %v9164_v3, 16  ;;  %v3517_v41 = vrot.slane %v9164_v3, 2  ;;  %v2948_v15 = vshrl.u32 %v9164_v3, 16 }
 0x3ef   : > { %v2939_v44 = vshll.u32 %v9166_v16, 16  ;;  %v7720_v32 = vpop.f32.mrb[138].mxu1  ;;  %v2937_v14 = vshrl.u32 %v9166_v16, 16  ;;  %v3309_v40 = vshrl.u32 %v9168_v9, 16  ;;  %v3118_v11 = vrot.slane %v9166_v16, 1 }
 0x3f0   : > { %v2916_v63 = vadd.f32 %v6830_v10, %v2902_v31  ;;  %v2885_v42 = vpop.f32.mrb[139].mxu1  ;;  %v2900_v60 = vadd.f32 %v2882_v22, %v2793_v62  ;;  %v3216_v59 = vrot.slane %v9168_v9, 1  ;;  %v3312_v20 = vshll.u32 %v9168_v9, 16 }
 0x3f1   : > { %v2941_v0 = vrot.slane %v2939_v44, 1  ;;  %v2901_v39 = vadd.f32 %v2885_v42, %v2794_v18  ;;  %v2946_v52 = vrot.slane %v2944_v55, 1  ;;  %v3421_v27 = vrot.slane %v9168_v9, 2  ;;  %v7964_v44 = vld [vmem:[%s10013_s7 + $0x88] sm:$0xff]  }
 0x3f2   : > { %v2923_v34 = vmax.f32 %v2916_v63, 0.0  ;;  %v2914_v57 = vadd.f32 %v6830_v10, %v2900_v60  ;;  %v9183_v46 = vrot.slane %v3309_v40, 1  ;;  %v9187_v2 = vrot.slane %v2948_v15, 2 }
 0x3f3   : > { %v2915_v25 = vadd.f32 %v6830_v10, %v2901_v39  ;;  %v2942_v19 = vor.u32 %v2941_v0, %v2937_v14  ;;  %v3119_v24 = vrot.slane %v9164_v3, 1  ;;  %v9191_v28 = vrot.slane %v2944_v55, 3 }
 0x3f4   : > { %v9185_v58 = vpack.c.bf16 %v2923_v34, %v2923_v34  ;;  %v2921_v61 = vmax.f32 %v2914_v57, 0.0  ;;  %v9193_v38 = vrot.slane %v3312_v20, 2  ;;  %v2950_v36 = vor.u32 %v2948_v15, %v2946_v52 }
 0x3f5   : > { %v2922_v26 = vmax.f32 %v2915_v25, 0.0  ;;  %v2947_v12 = vsel %vm654_vm5, %v2942_v19, %v2946_v52  ;;  %v3717_v4 = vrot.slane %v9164_v3, 3  ;;  %v9198_v45 = vsel %vm900_vm3, %v3118_v11, %v3119_v24 }
 0x3f6   : > { %7726 = vmatmul.mubr.msk.bf16.vlgmr.msra.gmra.mrb[108].mxu0 %vm706_vm4, %v2947_v12  ;;  %v9200_v53 = vpack.c.bf16 %v2921_v61, %v2921_v61  ;;  %v3206_v35 = vpack.c.bf16 %v2921_v61, %v2920_v6  ;;  %v3520_v33 = vrot.slane %v9185_v58, 2  ;;  %v3720_v62 = vrot.slane %v9185_v58, 3 }
 0x3f7   : > { %v3508_v43 = vpack.c.bf16 %v2922_v26, %v2921_v61  ;;  %7738 = vmatpush3.bf16.msra.mxu0 %v7959_v8  ;;  %v9206_v13 = vpack.c.bf16 %v2922_v26, %v2922_v26  ;;  %7729 = vmatprep.mubr.msk.bf16.mxu0 %vm8179_vm1, %v8178_v1  ;;  %v3611_v23 = vor.u32 %v9191_v28, %v9187_v2  ;;  %v3622_v37 = vshrl.u32 %v9185_v58, 16 }
 0x3f8   : > { %7739 = vmatprep.subr.bf16.mxu0 %v8178_v1  ;;  %v2952_v54 = vshll.u32 %v9200_v53, 16  ;;  %v3121_v17 = vrot.slane %v9200_v53, 1  ;;  %v3217_v47 = vrot.slane %v3206_v35, 1  ;;  %v3625_v50 = vshll.u32 %v9185_v58, 16  ;;  %v7968_v58 = vld [vmem:[%s10013_s7 + $0x40] sm:$0xff]  }
 0x3f9   : > { %v3613_v18 = vshrl.u32 %v3508_v43, 16  ;;  %v3616_v10 = vshll.u32 %v3508_v43, 16  ;;  %v3518_v56 = vrot.slane %v3508_v43, 2  ;;  %v3718_v5 = vrot.slane %v3508_v43, 3  ;;  %v7973_v43 = vld [vmem:[%s10013_s7 + $0x78] sm:$0xff]  }
 0x3fa   : > { %v2954_v30 = vrot.slane %v2952_v54, 1  ;;  %v3219_v22 = vrot.slane %v9206_v13, 1  ;;  %v9241_v32 = vsel %vm900_vm3, %v3119_v24, %v3121_v17  ;;  %v3624_v14 = vrot.slane %v3622_v37, 2  ;;  %v7976_v37 = vld [vmem:[%s10015_s9 + $0x4] ss:$16 sps:$4 sm:$0xff]  }
 0x3fb   : > { %v3615_v51 = vrot.slane %v3613_v18, 2  ;;  %v3618_v48 = vrot.slane %v3616_v10, 3  ;;  %v3519_v6 = vsel %vm1326_vm6, %v3517_v41, %v3518_v56  ;;  %7740 = vmatpush3.bf16.msra.mxu0 %v7961_v29  ;;  %v3521_v7 = vsel %vm1326_vm6, %v3518_v56, %v3520_v33  ;;  %v7977_v18 = vld [vmem:[%s10015_s9 + $0x8] ss:$16 sps:$4 sm:$0xff]  }
 0x3fc   : > { %7822 = vmatmul.mubr.msk.bf16.vlgmr.msra.gmra.mrb[140].mxu1 %vm706_vm4, %v3519_v6  ;;  %7753 = vmatprep.subr.bf16.mxu0 %v8178_v1  ;;  %v3719_v49 = vsel %vm1732_vm7, %v3717_v4, %v3718_v5  ;;  %v3721_v31 = vsel %vm1732_vm7, %v3718_v5, %v3720_v62  ;;  %v2955_v55 = vsel %vm654_vm5, %v2950_v36, %v2954_v30  ;;  %v3317_v41 = vshrl.u32 %v3206_v35, 16  ;;  %v7965_v36 = vld [vmem:[%s10013_s7 + $0x28] sm:$0xff]  }
 0x3fd   : > { %7825 = vmatprep.mubr.msk.bf16.mxu1 %vm8179_vm1, %v8178_v1  ;;  %7850 = vmatpush3.bf16.msra.mxu1 %v7962_v21  ;;  %v9248_v40 = vsel %vm900_vm3, %v3216_v59, %v3217_v47  ;;  %v9253_v63 = vsel %vm900_vm3, %v3217_v47, %v3219_v22  ;;  %v3320_v42 = vshll.u32 %v3206_v35, 16  ;;  %v3326_v15 = vshrl.u32 %v9206_v13, 16  ;;  %v7969_v4 = vld [vmem:[%s10013_s7 + $0x48] sm:$0xff]  }
 0x3fe   : > { %7730 = vmatmul.mubr.msk.bf16.gmra.mrb[112].mxu0 %vm706_vm4, %v2955_v55  ;;  %7851 = vmatprep.subr.bf16.mxu1 %v8178_v1  ;;  %v3319_v0 = vrot.slane %v3317_v41, 1  ;;  %v3329_v11 = vshll.u32 %v9206_v13, 16  ;;  %v3422_v60 = vrot.slane %v3206_v35, 2  ;;  %v3424_v39 = vrot.slane %v9206_v13, 2  ;;  %v7972_v35 = vld [vmem:[%s10013_s7 + $0x70] sm:$0xff]  }
 0x3ff   : > { %7733 = vmatprep.mubr.msk.bf16.mxu0 %vm8179_vm1, %v8178_v1  ;;  %v3322_v20 = vrot.slane %v3320_v42, 2  ;;  %v3328_v59 = vrot.slane %v3326_v15, 1  ;;  %v3619_v34 = vor.u32 %v3618_v48, %v3615_v51  ;;  %v3627_v52 = vrot.slane %v3625_v50, 3  ;;  %v7980_v51 = vld [vmem:[%s10015_s9 + $0x20] ss:$16 sps:$4 sm:$0xff]  }
 0x400   : > { %v3315_v57 = vor.u32 %v9193_v38, %v9183_v46  ;;  %v3331_v25 = vrot.slane %v3329_v11, 2  ;;  %v9265_v19 = vsel %vm1326_vm6, %v3421_v27, %v3422_v60  ;;  %v9270_v8 = vsel %vm1326_vm6, %v3422_v60, %v3424_v39  ;;  %v7963_v38 = vld [vmem:[%s10013_s7 + $0x20] sm:$0xff]   ;;  %v7983_v6 = vld [vmem:[%s10015_s9 + $0x28] ss:$16 sps:$4 sm:$0xff]  }
 0x401   : > { %7852 = vmatpush3.bf16.msra.mxu1 %v7964_v44  ;;  %v2956_v2 = vshrl.u32 %v9200_v53, 16  ;;  %v3323_v24 = vor.u32 %v3322_v20, %v3319_v0  ;;  %v9274_v61 = vsel %vm1583_vm9, %v3611_v23, %v3619_v34  ;;  %v9276_v26 = vor.u32 %v3627_v52, %v3624_v14  ;;  %v7974_v23 = vld [vmem:[%s10015_s9] ss:$16 sps:$4 sm:$0xff]   ;;  %v7982_v48 = vld [vmem:[%s10015_s9 + $0x24] ss:$16 sps:$4 sm:$0xff]  }
 0x402   : > { %v3332_v46 = vor.u32 %v3331_v25, %v3328_v59 }
 0x403   : > { %v2958_v9 = vor.u32 %v2956_v2, %v2954_v30  ;;  %v3324_v27 = vsel %vm1160_vm8, %v3315_v57, %v3323_v24  ;;  %v9282_v12 = vsel %vm1583_vm9, %v3619_v34, %v9276_v26  ;;  %v7985_v30 = vld [vmem:[%s10015_s9 + $0x2c] ss:$16 sps:$4 sm:$0xff]  }
 0x404   : > { %7826 = vmatmul.mubr.msk.bf16.gmra.mrb[144].mxu1 %vm706_vm4, %v3521_v7  ;;  %v3333_v28 = vsel %vm1160_vm8, %v3323_v24, %v3332_v46 }
 0x405   : > { %7829 = vmatprep.mubr.msk.bf16.mxu1 %vm8179_vm1, %v8178_v1 }
 0x406   : > { %7734 = vmatmul.mubr.msk.bf16.gmra.mrb[116].mxu0 %vm706_vm4, %v2958_v9 }
 0x407   : > { %7741 = vmatprep.mubr.msk.bf16.mxu0 %vm8179_vm1, %v8178_v1 }
 0x40c   : > { %7830 = vmatmul.mubr.msk.bf16.gmra.mrb[148].mxu1 %vm706_vm4, %v3520_v33 }
 0x40d   : > { %7853 = vmatprep.mubr.msk.bf16.mxu1 %vm8179_vm1, %v8178_v1 }
 0x40e   : > { %7742 = vmatmul.mubr.msk.bf16.vlgmr.msra.gmra.mrb[120].mxu0 %vm706_vm4, %v9166_v16  ;;  %v7966_v16 = vld [vmem:[%s10013_s7 + $0x30] sm:$0xff]  }
 0x40f   : > { %7754 = vmatpush3.bf16.msra.mxu0 %v7963_v38  ;;  %7745 = vmatprep.mubr.msk.bf16.mxu0 %vm8179_vm1, %v8178_v1 }
 0x410   : > { %7755 = vmatprep.subr.bf16.mxu0 %v8178_v1 }
 0x413   : > { %7756 = vmatpush3.bf16.msra.mxu0 %v7965_v36  ;;  %v8180_v36 = vmov 0  }
 0x414   : > { %7854 = vmatmul.mubr.msk.bf16.vlgmr.msra.gmra.mrb[152].mxu1 %vm706_vm4, %v3719_v49  ;;  %7769 = vmatprep.subr.bf16.mxu0 %v8178_v1 }
 0x415   : > { %7857 = vmatprep.mubr.msk.bf16.mxu1 %vm8179_vm1, %v8178_v1 }
 0x416   : > { %7746 = vmatmul.mubr.msk.bf16.gmra.mrb[124].mxu0 %vm706_vm4, %v9164_v3  ;;  %v7967_v3 = vld [vmem:[%s10013_s7 + $0x38] sm:$0xff]  }
 0x417   : > { %7749 = vmatprep.mubr.msk.bf16.mxu0 %vm8179_vm1, %v8178_v1 }
 0x41c   : > { %7858 = vmatmul.mubr.msk.bf16.gmra.mrb[156].mxu1 %vm706_vm4, %v3721_v31 }
 0x41d   : > { %7861 = vmatprep.mubr.msk.bf16.mxu1 %vm8179_vm1, %v8178_v1 }
 0x41e   : > { %7750 = vmatmul.mubr.msk.bf16.gmra.mrb[128].mxu0 %vm706_vm4, %v9200_v53  ;;  %v7971_v53 = vld [vmem:[%s10013_s7 + $0x58] sm:$0xff]  }
 0x41f   : > { %7757 = vmatprep.mubr.msk.bf16.mxu0 %vm8179_vm1, %v8178_v1 }
 0x424   : > { %7862 = vmatmul.mubr.msk.bf16.gmra.mrb[160].mxu1 %vm706_vm4, %v3720_v62 }
 0x425   : > { %3947 = vmatprep.mubr.bf16.mxu1 %v8180_v36 }
 0x426   : > { %7758 = vmatmul.mubr.msk.bf16.vlgmr.msra.gmra.mrb[132].mxu0 %vm706_vm4, %v9198_v45  ;;  %v7970_v45 = vld [vmem:[%s10013_s7 + $0x50] sm:$0xff]  }
 0x427   : > { %7770 = vmatpush3.bf16.msra.mxu0 %v7966_v16  ;;  %7761 = vmatprep.mubr.msk.bf16.mxu0 %vm8179_vm1, %v8178_v1  ;;  %v7988_v16 = vld [vmem:[%s10015_s9 + $0x44] ss:$16 sps:$4 sm:$0xff]  }
 0x428   : > { %7771 = vmatprep.subr.bf16.mxu0 %v8178_v1 }
 0x42b   : > { %7772 = vmatpush3.bf16.msra.mxu0 %v7967_v3 }
 0x42c   : > { %7785 = vmatprep.subr.bf16.mxu0 %v8178_v1 }
 0x42e   : > { %7762 = vmatmul.mubr.msk.bf16.gmra.mrb[136].mxu0 %vm706_vm4, %v9241_v32 }
 0x42f   : > { %7765 = vmatprep.mubr.msk.bf16.mxu0 %vm8179_vm1, %v8178_v1 }
 0x436   : > { %7766 = vmatmul.mubr.msk.bf16.gmra.mrb[140].mxu0 %vm706_vm4, %v3121_v17 }
 0x437   : > { %7773 = vmatprep.mubr.msk.bf16.mxu0 %vm8179_vm1, %v8178_v1 }
 0x43e   : > { %7774 = vmatmul.mubr.msk.bf16.vlgmr.msra.gmra.mrb[144].mxu0 %vm706_vm4, %v9248_v40 }
 0x43f   : > { %7786 = vmatpush3.bf16.msra.mxu0 %v7968_v58  ;;  %7777 = vmatprep.mubr.msk.bf16.mxu0 %vm8179_vm1, %v8178_v1  ;;  %v7991_v58 = vld [vmem:[%s10015_s9 + $0x4c] ss:$16 sps:$4 sm:$0xff]  }
 0x440   : > { %7787 = vmatprep.subr.bf16.mxu0 %v8178_v1 }
 0x443   : > { %7788 = vmatpush3.bf16.msra.mxu0 %v7969_v4 }
 0x444   : > { %7801 = vmatprep.subr.bf16.mxu0 %v8178_v1 }
 0x446   : > { %7778 = vmatmul.mubr.msk.bf16.gmra.mrb[148].mxu0 %vm706_vm4, %v9253_v63 }
 0x447   : > { %7781 = vmatprep.mubr.msk.bf16.mxu0 %vm8179_vm1, %v8178_v1 }
 0x44e   : > { %7782 = vmatmul.mubr.msk.bf16.gmra.mrb[152].mxu0 %vm706_vm4, %v3219_v22 }
 0x44f   : > { %7789 = vmatprep.mubr.msk.bf16.mxu0 %vm8179_vm1, %v8178_v1 }
 0x456   : > { %7790 = vmatmul.mubr.msk.bf16.vlgmr.msra.gmra.mrb[156].mxu0 %vm706_vm4, %v3324_v27 }
 0x457   : > { %7802 = vmatpush3.bf16.msra.mxu0 %v7970_v45  ;;  %7793 = vmatprep.mubr.msk.bf16.mxu0 %vm8179_vm1, %v8178_v1 }
 0x458   : > { %7803 = vmatprep.subr.bf16.mxu0 %v8178_v1 }
 0x45b   : > { %7804 = vmatpush3.bf16.msra.mxu0 %v7971_v53 }
 0x45c   : > { %7833 = vmatprep.subr.bf16.mxu0 %v8178_v1 }
 0x45e   : > { %7794 = vmatmul.mubr.msk.bf16.gmra.mrb[160].mxu0 %vm706_vm4, %v3333_v28 }
 0x45f   : > { %7797 = vmatprep.mubr.msk.bf16.mxu0 %vm8179_vm1, %v8178_v1 }
 0x466   : > { %7798 = vmatmul.mubr.msk.bf16.gmra.mrb[164].mxu0 %vm706_vm4, %v3332_v46 }
 0x467   : > { %7805 = vmatprep.mubr.msk.bf16.mxu0 %vm8179_vm1, %v8178_v1 }
 0x46e   : > { %7806 = vmatmul.mubr.msk.bf16.vlgmr.msra.gmra.mrb[168].mxu0 %vm706_vm4, %v9265_v19 }
 0x46f   : > { %7834 = vmatpush3.bf16.msra.mxu0 %v7972_v35  ;;  %7809 = vmatprep.mubr.msk.bf16.mxu0 %vm8179_vm1, %v8178_v1 }
 0x470   : > { %7835 = vmatprep.subr.bf16.mxu0 %v8178_v1 }
 0x473   : > { %7836 = vmatpush3.bf16.msra.mxu0 %v7973_v43 }
 0x474   : > { %3874 = vmatprep.subr.bf16.mxu0 %v7976_v37 }
 0x476   : > { %7810 = vmatmul.mubr.msk.bf16.gmra.mrb[172].mxu0 %vm706_vm4, %v9270_v8 }
 0x477   : > { %7813 = vmatprep.mubr.msk.bf16.mxu0 %vm8179_vm1, %v8178_v1 }
 0x47e   : > { %7814 = vmatmul.mubr.msk.bf16.gmra.mrb[176].mxu0 %vm706_vm4, %v3424_v39 }
 0x47f   : > { %7837 = vmatprep.mubr.msk.bf16.mxu0 %vm8179_vm1, %v8178_v1 }
 0x486   : > { %7838 = vmatmul.mubr.msk.bf16.vlgmr.msra.gmra.mrb[180].mxu0 %vm706_vm4, %v9274_v61 }
 0x487   : > { %7841 = vmatprep.mubr.msk.bf16.mxu0 %vm8179_vm1, %v8178_v1  ;;  %3875 = vmatpush1.bf16.msra.mxu0 %v7974_v23 }
 0x488   : > { %3876 = vmatprep.subr.bf16.mxu0 %v7982_v48 }
 0x48b   : > { %3877 = vmatpush1.bf16.msra.mxu0 %v7980_v51 }
 0x48c   : > { %4040 = vmatprep.subr.bf16.mxu0 %v7988_v16 }
 0x48e   : > { %7842 = vmatmul.mubr.msk.bf16.gmra.mrb[184].mxu0 %vm706_vm4, %v9282_v12 }
 0x48f   : > { %7845 = vmatprep.mubr.msk.bf16.mxu0 %vm8179_vm1, %v8178_v1  ;;  %v7979_v1 = vld [vmem:[%s10015_s9 + $0xc] ss:$16 sps:$4 sm:$0xff]  }
 0x490   : > { %3915 = vmatprep.subr.bf16.mxu1 %v7979_v1 }
 0x491   : > { %3916 = vmatpush1.bf16.msra.mxu1 %v7977_v18 }
 0x492   : > { %3917 = vmatprep.subr.bf16.mxu1 %v7985_v30 }
 0x495   : > { %3918 = vmatpush1.bf16.msra.mxu1 %v7983_v6 }
 0x496   : > { %7846 = vmatmul.mubr.msk.bf16.gmra.mrb[188].mxu0 %vm706_vm4, %v9276_v26  ;;  %4081 = vmatprep.subr.bf16.mxu1 %v7991_v58 }
 0x497   : > { %3906 = vmatprep.mubr.bf16.mxu0 %v8180_v36 }
 0x4c9   : > { %v3014_v29 = vpop.f32.mrb[108].mxu0 }
 0x4ca   : > { %v7727_v33 = vpop.f32.mrb[109].mxu0 }
 0x4cb   : > { %v3017_v13 = vpop.f32.mrb[110].mxu0 }
 0x4cc   : > { %v7728_v62 = vpop.f32.mrb[111].mxu0 }
 0x4cf   : > { %v9425_v10 = vpop.f32.mrb[140].mxu1 }
 0x4d0   : > { %v7823_v56 = vpop.f32.mrb[141].mxu1 }
 0x4d1   : > { %v3022_v54 = vpop.f32.mrb[112].mxu0  ;;  %v9427_v21 = vpop.f32.mrb[142].mxu1 }
 0x4d2   : > { %v7731_v5 = vpop.f32.mrb[113].mxu0  ;;  %v7824_v17 = vpop.f32.mrb[143].mxu1 }
 0x4d3   : > { %v3025_v47 = vpop.f32.mrb[114].mxu0 }
 0x4d4   : > { %v7732_v50 = vpop.f32.mrb[115].mxu0 }
 0x4d7   : > { %v9441_v7 = vpop.f32.mrb[144].mxu1 }
 0x4d8   : > { %v7827_v49 = vpop.f32.mrb[145].mxu1 }
 0x4d9   : > { %v3030_v31 = vpop.f32.mrb[116].mxu0  ;;  %v9443_v22 = vpop.f32.mrb[146].mxu1 }
 0x4da   : > { %v7735_v55 = vpop.f32.mrb[117].mxu0  ;;  %v7828_v44 = vpop.f32.mrb[147].mxu1 }
 0x4db   : > { %v3033_v32 = vpop.f32.mrb[118].mxu0 }
 0x4dc   : > { %v7736_v41 = vpop.f32.mrb[119].mxu0 }
 0x4df   : > { %v9445_v14 = vpop.f32.mrb[148].mxu1 }
 0x4e0   : > { %v7831_v40 = vpop.f32.mrb[149].mxu1 }
 0x4e1   : > { %v3088_v63 = vpop.f32.mrb[120].mxu0  ;;  %v3596_v42 = vpop.f32.mrb[150].mxu1 }
 0x4e2   : > { %v3089_v15 = vadd.f32 %v3088_v63, %v3014_v29  ;;  %v7743_v0 = vpop.f32.mrb[121].mxu0  ;;  %v7832_v11 = vpop.f32.mrb[151].mxu1 }
 0x4e3   : > { %v3091_v60 = vpop.f32.mrb[122].mxu0 }
 0x4e4   : > { %v3092_v39 = vadd.f32 %v3091_v60, %v3017_v13  ;;  %v7744_v20 = vpop.f32.mrb[123].mxu0 }
 0x4e7   : > { %v9447_v59 = vpop.f32.mrb[152].mxu1 }
 0x4e8   : > { %v7855_v34 = vpop.f32.mrb[153].mxu1 }
 0x4e9   : > { %v3096_v52 = vpop.f32.mrb[124].mxu0  ;;  %v9449_v57 = vpop.f32.mrb[154].mxu1 }
 0x4ea   : > { %v3097_v25 = vadd.f32 %v3096_v52, %v3022_v54  ;;  %v7747_v19 = vpop.f32.mrb[125].mxu0  ;;  %v7856_v8 = vpop.f32.mrb[155].mxu1 }
 0x4eb   : > { %v3099_v2 = vpop.f32.mrb[126].mxu0 }
 0x4ec   : > { %v3100_v24 = vadd.f32 %v3099_v2, %v3025_v47  ;;  %v7748_v61 = vpop.f32.mrb[127].mxu0 }
 0x4ef   : > { %v9451_v26 = vpop.f32.mrb[156].mxu1 }
 0x4f0   : > { %v7859_v46 = vpop.f32.mrb[157].mxu1 }
 0x4f1   : > { %v3104_v9 = vpop.f32.mrb[128].mxu0  ;;  %v9453_v27 = vpop.f32.mrb[158].mxu1 }
 0x4f2   : > { %v3105_v12 = vadd.f32 %v3104_v9, %v3030_v31  ;;  %v7751_v28 = vpop.f32.mrb[129].mxu0  ;;  %v7860_v38 = vpop.f32.mrb[159].mxu1 }
 0x4f3   : > { %v3107_v3 = vpop.f32.mrb[130].mxu0 }
 0x4f4   : > { %v7752_v4 = vpop.f32.mrb[131].mxu0 }
 0x4f7   : > { %v9463_v45 = vpop.f32.mrb[160].mxu1 }
 0x4f8   : > { %v7863_v53 = vpop.f32.mrb[161].mxu1 }
 0x4f9   : > { %v3178_v35 = vpop.f32.mrb[132].mxu0  ;;  %v3796_v43 = vpop.f32.mrb[162].mxu1 }
 0x4fa   : > { %v3200_v29 = vadd.f32 %v3178_v35, %v3089_v15  ;;  %v7759_v33 = vpop.f32.mrb[133].mxu0  ;;  %v7864_v13 = vpop.f32.mrb[163].mxu1 }
 0x4fb   : > { %v3181_v62 = vpop.f32.mrb[134].mxu0 }
 0x4fc   : > { %v3201_v23 = vadd.f32 %v3181_v62, %v3092_v39  ;;  %v7760_v37 = vpop.f32.mrb[135].mxu0 }
 0x501   : > { %v3186_v18 = vpop.f32.mrb[136].mxu0 }
 0x502   : > { %v3202_v1 = vadd.f32 %v3186_v18, %v3097_v25  ;;  %v7763_v56 = vpop.f32.mrb[137].mxu0 }
 0x503   : > { %v3189_v54 = vpop.f32.mrb[138].mxu0 }
 0x504   : > { %v3203_v5 = vadd.f32 %v3189_v54, %v3100_v24  ;;  %v7764_v17 = vpop.f32.mrb[139].mxu0 }
 0x509   : > { %v3194_v47 = vpop.f32.mrb[140].mxu0 }
 0x50a   : > { %v3204_v50 = vadd.f32 %v3194_v47, %v3105_v12  ;;  %v7767_v51 = vpop.f32.mrb[141].mxu0 }
 0x50b   : > { %v3197_v48 = vpop.f32.mrb[142].mxu0 }
 0x50c   : > { %v7768_v6 = vpop.f32.mrb[143].mxu0 }
 0x511   : > { %v3276_v30 = vpop.f32.mrb[144].mxu0 }
 0x512   : > { %v3298_v49 = vadd.f32 %v3276_v30, %v3200_v29  ;;  %v7775_v31 = vpop.f32.mrb[145].mxu0 }
 0x513   : > { %v3279_v55 = vpop.f32.mrb[146].mxu0 }
 0x514   : > { %v3299_v44 = vadd.f32 %v3279_v55, %v3201_v23  ;;  %v7776_v32 = vpop.f32.mrb[147].mxu0 }
 0x519   : > { %v3284_v41 = vpop.f32.mrb[148].mxu0 }
 0x51a   : > { %v3300_v40 = vadd.f32 %v3284_v41, %v3202_v1  ;;  %v7779_v63 = vpop.f32.mrb[149].mxu0 }
 0x51b   : > { %v3287_v42 = vpop.f32.mrb[150].mxu0 }
 0x51c   : > { %v3301_v15 = vadd.f32 %v3287_v42, %v3203_v5  ;;  %v7780_v0 = vpop.f32.mrb[151].mxu0 }
 0x51d   : > { %v7989_v0 = vld [vmem:[%s10015_s9 + $0x48] ss:$16 sps:$4 sm:$0xff]  }
 0x521   : > { %v3292_v11 = vpop.f32.mrb[152].mxu0 }
 0x522   : > { %v3302_v60 = vadd.f32 %v3292_v11, %v3204_v50  ;;  %v7783_v39 = vpop.f32.mrb[153].mxu0 }
 0x523   : > { %v3295_v20 = vpop.f32.mrb[154].mxu0  ;;  %v7994_v39 = vld [vmem:[%s10015_s9 + $0x64] ss:$16 sps:$4 sm:$0xff]  }
 0x524   : > { %v7784_v34 = vpop.f32.mrb[155].mxu0 }
 0x529   : > { %v3389_v52 = vpop.f32.mrb[156].mxu0 }
 0x52a   : > { %v3411_v25 = vadd.f32 %v3389_v52, %v3298_v49  ;;  %v7791_v19 = vpop.f32.mrb[157].mxu0 }
 0x52b   : > { %v3392_v8 = vpop.f32.mrb[158].mxu0  ;;  %v7992_v19 = vld [vmem:[%s10015_s9 + $0x60] ss:$16 sps:$4 sm:$0xff]  }
 0x52c   : > { %v3412_v2 = vadd.f32 %v3392_v8, %v3299_v44  ;;  %v7792_v24 = vpop.f32.mrb[159].mxu0  ;;  %v9473_v44 = vld [vmem:[%s10014_s8] ss:$0 sm:$0xff]  ;;  %v7995_v8 = vld [vmem:[%s10015_s9 + $0x68] ss:$16 sps:$4 sm:$0xff]  }
 0x531   : > { %v3397_v61 = vpop.f32.mrb[160].mxu0 }
 0x532   : > { %v3413_v46 = vadd.f32 %v3397_v61, %v3300_v40  ;;  %v7795_v9 = vpop.f32.mrb[161].mxu0 }
 0x533   : > { %v3400_v12 = vpop.f32.mrb[162].mxu0  ;;  %v7998_v9 = vld [vmem:[%s10015_s9 + $0x80] ss:$16 sps:$4 sm:$0xff]  }
 0x534   : > { %v3414_v28 = vadd.f32 %v3400_v12, %v3301_v15  ;;  %v7796_v38 = vpop.f32.mrb[163].mxu0  ;;  %v7986_v15 = vld [vmem:[%s10015_s9 + $0x40] ss:$16 sps:$4 sm:$0xff]   ;;  %v8001_v12 = vld [vmem:[%s10015_s9 + $0x88] ss:$16 sps:$4 sm:$0xff]  }
 0x539   : > { %v3405_v16 = vpop.f32.mrb[164].mxu0 }
 0x53a   : > { %v3415_v3 = vadd.f32 %v3405_v16, %v3302_v60  ;;  %v7799_v58 = vpop.f32.mrb[165].mxu0  ;;  %v8006_v16 = vld [vmem:[%s10015_s9 + $0xa4] ss:$16 sps:$4 sm:$0xff]  }
 0x53b   : > { %v3408_v4 = vpop.f32.mrb[166].mxu0 }
 0x53c   : > { %v7800_v53 = vpop.f32.mrb[167].mxu0 }
 0x541   : > { %v3481_v35 = vpop.f32.mrb[168].mxu0 }
 0x542   : > { %v3503_v43 = vadd.f32 %v3481_v35, %v3411_v25  ;;  %v7807_v29 = vpop.f32.mrb[169].mxu0  ;;  %v8004_v35 = vld [vmem:[%s10015_s9 + $0xa0] ss:$16 sps:$4 sm:$0xff]  }
 0x543   : > { %v3484_v33 = vpop.f32.mrb[170].mxu0 }
 0x544   : > { %v3504_v13 = vadd.f32 %v3484_v33, %v3412_v2  ;;  %v7808_v62 = vpop.f32.mrb[171].mxu0  ;;  %v3599_v23 = vadd.f32 %v9425_v10, %v3503_v43  ;;  %v8003_v2 = vld [vmem:[%s10015_s9 + $0x8c] ss:$16 sps:$4 sm:$0xff]   ;;  %v8007_v43 = vld [vmem:[%s10015_s9 + $0xa8] ss:$16 sps:$4 sm:$0xff]  }
 0x545   : > { %v8015_v33 = vld [vmem:[%s10015_s9 + $0xcc] ss:$16 sps:$4 sm:$0xff]   ;;  %v8013_v62 = vld [vmem:[%s10015_s9 + $0xc8] ss:$16 sps:$4 sm:$0xff]  }
 0x546   : > { %v3600_v37 = vadd.f32 %v9427_v21, %v3504_v13  ;;  %v8010_v13 = vld [vmem:[%s10015_s9 + $0xc0] ss:$16 sps:$4 sm:$0xff]  }
 0x549   : > { %v3489_v18 = vpop.f32.mrb[172].mxu0 }
 0x54a   : > { %v3505_v1 = vadd.f32 %v3489_v18, %v3413_v46  ;;  %v7811_v56 = vpop.f32.mrb[173].mxu0  ;;  %v8021_v18 = vld [vmem:[%s10015_s9 + $0xec] ss:$16 sps:$4 sm:$0xff]  }
 0x54b   : > { %v3492_v54 = vpop.f32.mrb[174].mxu0  ;;  %v8019_v56 = vld [vmem:[%s10015_s9 + $0xe8] ss:$16 sps:$4 sm:$0xff]  }
 0x54c   : > { %v3506_v5 = vadd.f32 %v3492_v54, %v3414_v28  ;;  %v7812_v17 = vpop.f32.mrb[175].mxu0  ;;  %v3601_v47 = vadd.f32 %v9441_v7, %v3505_v1  ;;  %v8016_v1 = vld [vmem:[%s10015_s9 + $0xe0] ss:$16 sps:$4 sm:$0xff]  }
 0x54d   : > { %v8027_v17 = vld [vmem:[%s10015_s9 + $0x10c] ss:$16 sps:$4 sm:$0xff]  }
 0x54e   : > { %v3602_v50 = vadd.f32 %v9443_v22, %v3506_v5  ;;  %v8024_v5 = vld [vmem:[%s10015_s9 + $0x104] ss:$16 sps:$4 sm:$0xff]  }
 0x551   : > { %v3497_v51 = vpop.f32.mrb[176].mxu0 }
 0x552   : > { %v3507_v48 = vadd.f32 %v3497_v51, %v3415_v3  ;;  %v7815_v6 = vpop.f32.mrb[177].mxu0  ;;  %v8009_v3 = vld [vmem:[%s10015_s9 + $0xac] ss:$16 sps:$4 sm:$0xff]  }
 0x553   : > { %v3500_v30 = vpop.f32.mrb[178].mxu0  ;;  %v8030_v6 = vld [vmem:[%s10015_s9 + $0x124] ss:$16 sps:$4 sm:$0xff]  }
 0x554   : > { %v7816_v49 = vpop.f32.mrb[179].mxu0  ;;  %v3603_v31 = vadd.f32 %v9445_v14, %v3507_v48  ;;  %v8033_v30 = vld [vmem:[%s10015_s9 + $0x12c] ss:$16 sps:$4 sm:$0xff]  }
 0x555   : > { %v8028_v49 = vld [vmem:[%s10015_s9 + $0x120] ss:$16 sps:$4 sm:$0xff]  }
 0x559   : > { %v3685_v10 = vpop.f32.mrb[180].mxu0 }
 0x55a   : > { %v3707_v55 = vadd.f32 %v3685_v10, %v3599_v23  ;;  %v7839_v21 = vpop.f32.mrb[181].mxu0 }
 0x55b   : > { %v3688_v32 = vpop.f32.mrb[182].mxu0  ;;  %v8039_v21 = vld [vmem:[%s10015_s9 + $0x14c] ss:$16 sps:$4 sm:$0xff]  }
 0x55c   : > { %v3799_v7 = vadd.f32 %v9447_v59, %v3707_v55  ;;  %v3708_v41 = vadd.f32 %v3688_v32, %v3600_v37  ;;  %v7840_v22 = vpop.f32.mrb[183].mxu0  ;;  %v8018_v37 = vld [vmem:[%s10015_s9 + $0xe4] ss:$16 sps:$4 sm:$0xff]   ;;  %v8034_v32 = vld [vmem:[%s10015_s9 + $0x140] ss:$16 sps:$4 sm:$0xff]  }
 0x55d   : > { %v8036_v55 = vld [vmem:[%s10015_s9 + $0x144] ss:$16 sps:$4 sm:$0xff]  }
 0x55e   : > { %v3811_v40 = vadd.f32 %v9473_v44, %v3799_v7  ;;  %v9478_v63 = vadd.f32 %v9449_v57, %v3708_v41  ;;  %v7997_v57 = vld [vmem:[%s10015_s9 + $0x6c] ss:$16 sps:$4 sm:$0xff]   ;;  %v8037_v7 = vld [vmem:[%s10015_s9 + $0x148] ss:$16 sps:$4 sm:$0xff]   ;;  %v8042_v22 = vld [vmem:[%s10015_s9 + $0x164] ss:$16 sps:$4 sm:$0xff]  }
 0x560   : > { %v3816_v42 = vmax.f32 %v3811_v40, 0.0  ;;  %v3812_v54 = vadd.f32 %v9473_v44, %v9478_v63  ;;  %v8045_v40 = vld [vmem:[%s10015_s9 + $0x16c] ss:$16 sps:$4 sm:$0xff]   ;;  %v8040_v63 = vld [vmem:[%s10015_s9 + $0x160] ss:$16 sps:$4 sm:$0xff]  }
 0x561   : > { %v3693_v14 = vpop.f32.mrb[184].mxu0 }
 0x562   : > { %v3822_v11 = vpack.c.bf16 %v3816_v42, %v3816_v42  ;;  %v3709_v60 = vadd.f32 %v3693_v14, %v3601_v47  ;;  %v7843_v59 = vpop.f32.mrb[185].mxu0  ;;  %v8022_v47 = vld [vmem:[%s10015_s9 + $0x100] ss:$16 sps:$4 sm:$0xff]   ;;  %v3817_v51 = vmax.f32 %v3812_v54, 0.0  ;;  %v8043_v42 = vld [vmem:[%s10015_s9 + $0x168] ss:$16 sps:$4 sm:$0xff]  }
 0x563   : > { %v3696_v20 = vpop.f32.mrb[186].mxu0 }
 0x564   : > { %v9493_v34 = vadd.f32 %v9451_v26, %v3709_v60  ;;  %v3710_v52 = vadd.f32 %v3696_v20, %v3602_v50  ;;  %v7844_v25 = vpop.f32.mrb[187].mxu0  ;;  %6917 = vmatmul.mubr.msk.bf16.vlgmr.msra.gmra.mrb[192].mxu0 %vm706_vm4, %v3822_v11  ;;  %6918 = vmatmul.mubr.msk.bf16.vlgmr.msra.gmra.mrb[164].mxu1 %vm706_vm4, %v3822_v11  ;;  %v8000_v26 = vld [vmem:[%s10015_s9 + $0x84] ss:$16 sps:$4 sm:$0xff]   ;;  %v3995_v38 = vshrl.u32 %v3822_v11, 16  ;;  %v4162_v23 = vrot.slane %v3822_v11, 1 }
 0x565   : > { %4041 = vmatpush1.bf16.msra.mxu0 %v7986_v15  ;;  %4082 = vmatpush1.bf16.msra.mxu1 %v7989_v0  ;;  %v8025_v50 = vld [vmem:[%s10015_s9 + $0x108] ss:$16 sps:$4 sm:$0xff]   ;;  %v9597_v10 = vpack.c.bf16 %v3817_v51, %v3817_v51  ;;  %v8048_v15 = vld [vmem:[%s10015_s9 + $0x184] ss:$16 sps:$4 sm:$0xff]   ;;  %v8051_v0 = vld [vmem:[%s10015_s9 + $0x18c] ss:$16 sps:$4 sm:$0xff]  }
 0x566   : > { %4042 = vmatprep.subr.bf16.mxu0 %v7994_v39  ;;  %4083 = vmatprep.subr.bf16.mxu1 %v7997_v57  ;;  %v3802_v24 = vadd.f32 %v9453_v27, %v3710_v52  ;;  %v4327_v48 = vrot.slane %v3995_v38, 1  ;;  %v8046_v11 = vld [vmem:[%s10015_s9 + $0x180] ss:$16 sps:$4 sm:$0xff]   ;;  %v8049_v60 = vld [vmem:[%s10015_s9 + $0x188] ss:$16 sps:$4 sm:$0xff]  }
 0x567   : > { %4072 = vmatprep.mubr.bf16.mxu0 %v8180_v36  ;;  %4113 = vmatprep.mubr.bf16.mxu1 %v8180_v36  ;;  %v4494_v41 = vrot.slane %v9597_v10, 1  ;;  %v4660_v14 = vshrl.u32 %v9597_v10, 16  ;;  %v8054_v39 = vld [vmem:[%s10015_s9 + $0x1a4] ss:$16 sps:$4 sm:$0xff]   ;;  %v8057_v57 = vld [vmem:[%s10015_s9 + $0x1ac] ss:$16 sps:$4 sm:$0xff]  }
 0x568   : > { %v9513_v61 = vadd.f32 %v9473_v44, %v3802_v24  ;;  %v8052_v20 = vld [vmem:[%s10015_s9 + $0x1a0] ss:$16 sps:$4 sm:$0xff]   ;;  %v8055_v52 = vld [vmem:[%s10015_s9 + $0x1a8] ss:$16 sps:$4 sm:$0xff]   ;;  %v8060_v25 = vld [vmem:[%s10015_s9 + $0x1c4] ss:$16 sps:$4 sm:$0xff]  }
 0x569   : > { %4043 = vmatpush1.bf16.msra.mxu0 %v7992_v19  ;;  %4084 = vmatpush1.bf16.msra.mxu1 %v7995_v8  ;;  %v3701_v46 = vpop.f32.mrb[188].mxu0  ;;  %v4662_v59 = vrot.slane %v4660_v14, 1  ;;  %v8063_v19 = vld [vmem:[%s10015_s9 + $0x1cc] ss:$16 sps:$4 sm:$0xff]   ;;  %v8058_v8 = vld [vmem:[%s10015_s9 + $0x1c0] ss:$16 sps:$4 sm:$0xff]  }
 0x56a   : > { %v3711_v28 = vadd.f32 %v3701_v46, %v3603_v31  ;;  %v7847_v27 = vpop.f32.mrb[189].mxu0  ;;  %4206 = vmatprep.subr.bf16.mxu0 %v8000_v26  ;;  %4247 = vmatprep.subr.bf16.mxu1 %v8003_v2  ;;  %v8031_v31 = vld [vmem:[%s10015_s9 + $0x128] ss:$16 sps:$4 sm:$0xff]   ;;  %v4827_v2 = vrot.slane %v9597_v10, 2  ;;  %v8066_v24 = vld [vmem:[%s10015_s9 + $0x1e4] ss:$16 sps:$4 sm:$0xff]  }
 0x56b   : > { %v3704_v58 = vpop.f32.mrb[190].mxu0  ;;  %v8061_v26 = vld [vmem:[%s10015_s9 + $0x1c8] ss:$16 sps:$4 sm:$0xff]   ;;  %v8069_v46 = vld [vmem:[%s10015_s9 + $0x1ec] ss:$16 sps:$4 sm:$0xff]  }
 0x56c   : > { %v3803_v4 = vadd.f32 %v9463_v45, %v3711_v28  ;;  %v7848_v53 = vpop.f32.mrb[191].mxu0  ;;  %6935 = vmatmul.mubr.msk.bf16.vlgmr.msra.gmra.mrb[196].mxu0 %vm706_vm4, %v3995_v38  ;;  %6936 = vmatmul.mubr.msk.bf16.vlgmr.msra.gmra.mrb[168].mxu1 %vm706_vm4, %v3995_v38  ;;  %v8012_v45 = vld [vmem:[%s10015_s9 + $0xc4] ss:$16 sps:$4 sm:$0xff]   ;;  %v3813_v28 = vadd.f32 %v9473_v44, %v9493_v34  ;;  %v8075_v38 = vld [vmem:[%s10015_s9 + $0x20c] ss:$16 sps:$4 sm:$0xff]  }
 0x56d   : > { %4207 = vmatpush1.bf16.msra.mxu0 %v7998_v9  ;;  %4248 = vmatpush1.bf16.msra.mxu1 %v8001_v12  ;;  %v8064_v9 = vld [vmem:[%s10015_s9 + $0x1e0] ss:$16 sps:$4 sm:$0xff]   ;;  %v8067_v12 = vld [vmem:[%s10015_s9 + $0x1e8] ss:$16 sps:$4 sm:$0xff]   ;;  %v8072_v27 = vld [vmem:[%s10015_s9 + $0x204] ss:$16 sps:$4 sm:$0xff]  }
 0x56e   : > { %v9537_v29 = vadd.f32 %v9473_v44, %v3803_v4  ;;  %4208 = vmatprep.subr.bf16.mxu0 %v8006_v16  ;;  %4249 = vmatprep.subr.bf16.mxu1 %v8009_v3  ;;  %v8070_v44 = vld [vmem:[%s10015_s9 + $0x200] ss:$16 sps:$4 sm:$0xff]   ;;  %v8073_v34 = vld [vmem:[%s10015_s9 + $0x208] ss:$16 sps:$4 sm:$0xff]   ;;  %v3818_v16 = vmax.f32 %v3813_v28, 0.0  ;;  %v4992_v3 = vrot.slane %v4660_v14, 2 }
 0x56f   : > { %4238 = vmatprep.mubr.bf16.mxu0 %v8180_v36  ;;  %4279 = vmatprep.mubr.bf16.mxu1 %v8180_v36  ;;  %v8078_v58 = vld [vmem:[%s10015_s9 + $0x224] ss:$16 sps:$4 sm:$0xff]   ;;  %v8081_v4 = vld [vmem:[%s10015_s9 + $0x22c] ss:$16 sps:$4 sm:$0xff]   ;;  %v8076_v53 = vld [vmem:[%s10015_s9 + $0x220] ss:$16 sps:$4 sm:$0xff]  }
 0x570   : > { %v8111_v10 = vld [vmem:[%s10015_s9 + $0x2cc] ss:$16 sps:$4 sm:$0xff]   ;;  %v8118_v14 = vld [vmem:[%s10015_s9 + $0x300] ss:$16 sps:$4 sm:$0xff]  }
 0x571   : > { %4209 = vmatpush1.bf16.msra.mxu0 %v8004_v35  ;;  %4250 = vmatpush1.bf16.msra.mxu1 %v8007_v43  ;;  %v8079_v35 = vld [vmem:[%s10015_s9 + $0x228] ss:$16 sps:$4 sm:$0xff]   ;;  %v9716_v43 = vpack.c.bf16 %v3818_v16, %v3818_v16  ;;  %v8147_v28 = vld [vmem:[%s10015_s9 + $0x38c] ss:$16 sps:$4 sm:$0xff]  }
 0x572   : > { %4371 = vmatprep.subr.bf16.mxu0 %v8012_v45  ;;  %4412 = vmatprep.subr.bf16.mxu1 %v8015_v33  ;;  %v8084_v45 = vld [vmem:[%s10015_s9 + $0x244] ss:$16 sps:$4 sm:$0xff]   ;;  %v8087_v33 = vld [vmem:[%s10015_s9 + $0x24c] ss:$16 sps:$4 sm:$0xff]  }
 0x573   : > { %v5325_v54 = vshrl.u32 %v9716_v43, 16  ;;  %v8153_v16 = vld [vmem:[%s10015_s9 + $0x3ac] ss:$16 sps:$4 sm:$0xff]  }
 0x574   : > { %6953 = vmatmul.mubr.msk.bf16.vlgmr.msra.gmra.mrb[200].mxu0 %vm706_vm4, %v4162_v23  ;;  %6954 = vmatmul.mubr.msk.bf16.vlgmr.msra.gmra.mrb[172].mxu1 %vm706_vm4, %v4162_v23  ;;  %v5159_v23 = vrot.slane %v9716_v43, 2 }
 0x575   : > { %4372 = vmatpush1.bf16.msra.mxu0 %v8010_v13  ;;  %4413 = vmatpush1.bf16.msra.mxu1 %v8013_v62  ;;  %v8082_v13 = vld [vmem:[%s10015_s9 + $0x240] ss:$16 sps:$4 sm:$0xff]   ;;  %v8085_v62 = vld [vmem:[%s10015_s9 + $0x248] ss:$16 sps:$4 sm:$0xff]   ;;  %v5327_v51 = vrot.slane %v5325_v54, 2 }
 0x576   : > { %4373 = vmatprep.subr.bf16.mxu0 %v8018_v37  ;;  %4414 = vmatprep.subr.bf16.mxu1 %v8021_v18  ;;  %v8090_v37 = vld [vmem:[%s10015_s9 + $0x264] ss:$16 sps:$4 sm:$0xff]   ;;  %v8093_v18 = vld [vmem:[%s10015_s9 + $0x26c] ss:$16 sps:$4 sm:$0xff]  }
 0x577   : > { %4403 = vmatprep.mubr.bf16.mxu0 %v8180_v36  ;;  %4444 = vmatprep.mubr.bf16.mxu1 %v8180_v36 }
 0x579   : > { %4374 = vmatpush1.bf16.msra.mxu0 %v8016_v1  ;;  %4415 = vmatpush1.bf16.msra.mxu1 %v8019_v56  ;;  %v8088_v1 = vld [vmem:[%s10015_s9 + $0x260] ss:$16 sps:$4 sm:$0xff]   ;;  %v8091_v56 = vld [vmem:[%s10015_s9 + $0x268] ss:$16 sps:$4 sm:$0xff]  }
 0x57a   : > { %4538 = vmatprep.subr.bf16.mxu0 %v8024_v5  ;;  %4579 = vmatprep.subr.bf16.mxu1 %v8027_v17  ;;  %v8096_v5 = vld [vmem:[%s10015_s9 + $0x284] ss:$16 sps:$4 sm:$0xff]   ;;  %v8099_v17 = vld [vmem:[%s10015_s9 + $0x28c] ss:$16 sps:$4 sm:$0xff]  }
 0x57c   : > { %6971 = vmatmul.mubr.msk.bf16.vlgmr.msra.gmra.mrb[204].mxu0 %vm706_vm4, %v4327_v48  ;;  %6972 = vmatmul.mubr.msk.bf16.vlgmr.msra.gmra.mrb[176].mxu1 %vm706_vm4, %v4327_v48  ;;  %v8102_v48 = vld [vmem:[%s10015_s9 + $0x2a4] ss:$16 sps:$4 sm:$0xff]  }
 0x57d   : > { %4539 = vmatpush1.bf16.msra.mxu0 %v8022_v47  ;;  %4580 = vmatpush1.bf16.msra.mxu1 %v8025_v50  ;;  %v8094_v47 = vld [vmem:[%s10015_s9 + $0x280] ss:$16 sps:$4 sm:$0xff]   ;;  %v8097_v50 = vld [vmem:[%s10015_s9 + $0x288] ss:$16 sps:$4 sm:$0xff]  }
 0x57e   : > { %4540 = vmatprep.subr.bf16.mxu0 %v8030_v6  ;;  %4581 = vmatprep.subr.bf16.mxu1 %v8033_v30  ;;  %v8105_v6 = vld [vmem:[%s10015_s9 + $0x2ac] ss:$16 sps:$4 sm:$0xff]   ;;  %v8100_v30 = vld [vmem:[%s10015_s9 + $0x2a0] ss:$16 sps:$4 sm:$0xff]  }
 0x57f   : > { %4570 = vmatprep.mubr.bf16.mxu0 %v8180_v36  ;;  %4611 = vmatprep.mubr.bf16.mxu1 %v8180_v36 }
 0x581   : > { %4541 = vmatpush1.bf16.msra.mxu0 %v8028_v49  ;;  %4582 = vmatpush1.bf16.msra.mxu1 %v8031_v31  ;;  %v8103_v49 = vld [vmem:[%s10015_s9 + $0x2a8] ss:$16 sps:$4 sm:$0xff]   ;;  %v8108_v31 = vld [vmem:[%s10015_s9 + $0x2c4] ss:$16 sps:$4 sm:$0xff]  }
 0x582   : > { %4706 = vmatprep.subr.bf16.mxu0 %v8036_v55  ;;  %4747 = vmatprep.subr.bf16.mxu1 %v8039_v21  ;;  %v8106_v55 = vld [vmem:[%s10015_s9 + $0x2c0] ss:$16 sps:$4 sm:$0xff]   ;;  %v8109_v21 = vld [vmem:[%s10015_s9 + $0x2c8] ss:$16 sps:$4 sm:$0xff]  }
 0x584   : > { %6989 = vmatmul.mubr.msk.bf16.vlgmr.msra.gmra.mrb[208].mxu0 %vm706_vm4, %v4494_v41  ;;  %6990 = vmatmul.mubr.msk.bf16.vlgmr.msra.gmra.mrb[180].mxu1 %vm706_vm4, %v4494_v41  ;;  %v8117_v41 = vld [vmem:[%s10015_s9 + $0x2ec] ss:$16 sps:$4 sm:$0xff]  }
 0x585   : > { %4707 = vmatpush1.bf16.msra.mxu0 %v8034_v32  ;;  %4748 = vmatpush1.bf16.msra.mxu1 %v8037_v7  ;;  %v5492_v32 = vrot.slane %v9716_v43, 3  ;;  %v8114_v7 = vld [vmem:[%s10015_s9 + $0x2e4] ss:$16 sps:$4 sm:$0xff]   ;;  %v8157_v43 = vld [vmem:[%s10015_s9 + $0x3c8] ss:$16 sps:$4 sm:$0xff]  }
 0x586   : > { %4708 = vmatprep.subr.bf16.mxu0 %v8042_v22  ;;  %4749 = vmatprep.subr.bf16.mxu1 %v8045_v40  ;;  %v8112_v22 = vld [vmem:[%s10015_s9 + $0x2e0] ss:$16 sps:$4 sm:$0xff]   ;;  %v8115_v40 = vld [vmem:[%s10015_s9 + $0x2e8] ss:$16 sps:$4 sm:$0xff]  }
 0x587   : > { %4738 = vmatprep.mubr.bf16.mxu0 %v8180_v36  ;;  %4779 = vmatprep.mubr.bf16.mxu1 %v8180_v36 }
 0x589   : > { %4709 = vmatpush1.bf16.msra.mxu0 %v8040_v63  ;;  %4750 = vmatpush1.bf16.msra.mxu1 %v8043_v42  ;;  %v8120_v63 = vld [vmem:[%s10015_s9 + $0x304] ss:$16 sps:$4 sm:$0xff]   ;;  %v8123_v42 = vld [vmem:[%s10015_s9 + $0x30c] ss:$16 sps:$4 sm:$0xff]  }
 0x58a   : > { %4871 = vmatprep.subr.bf16.mxu0 %v8048_v15  ;;  %4912 = vmatprep.subr.bf16.mxu1 %v8051_v0  ;;  %v8121_v15 = vld [vmem:[%s10015_s9 + $0x308] ss:$16 sps:$4 sm:$0xff]   ;;  %v3819_v0 = vmax.f32 %v9513_v61, 0.0  ;;  %v8124_v61 = vld [vmem:[%s10015_s9 + $0x320] ss:$16 sps:$4 sm:$0xff]  }
 0x58c   : > { %7007 = vmatmul.mubr.msk.bf16.vlgmr.msra.gmra.mrb[212].mxu0 %vm706_vm4, %v4662_v59  ;;  %7008 = vmatmul.mubr.msk.bf16.vlgmr.msra.gmra.mrb[184].mxu1 %vm706_vm4, %v4662_v59  ;;  %v8129_v59 = vld [vmem:[%s10015_s9 + $0x32c] ss:$16 sps:$4 sm:$0xff]  }
 0x58d   : > { %4872 = vmatpush1.bf16.msra.mxu0 %v8046_v11  ;;  %4913 = vmatpush1.bf16.msra.mxu1 %v8049_v60  ;;  %v5657_v11 = vrot.slane %v5325_v54, 3  ;;  %v8126_v60 = vld [vmem:[%s10015_s9 + $0x324] ss:$16 sps:$4 sm:$0xff]  }
 0x58e   : > { %4873 = vmatprep.subr.bf16.mxu0 %v8054_v39  ;;  %4914 = vmatprep.subr.bf16.mxu1 %v8057_v57  ;;  %v8127_v39 = vld [vmem:[%s10015_s9 + $0x328] ss:$16 sps:$4 sm:$0xff]   ;;  %v5813_v57 = vpack.c.bf16 %v3819_v0, %v3819_v0 }
 0x58f   : > { %4903 = vmatprep.mubr.bf16.mxu0 %v8180_v36  ;;  %4944 = vmatprep.mubr.bf16.mxu1 %v8180_v36 }
 0x591   : > { %4874 = vmatpush1.bf16.msra.mxu0 %v8052_v20  ;;  %4915 = vmatpush1.bf16.msra.mxu1 %v8055_v52  ;;  %v8132_v20 = vld [vmem:[%s10015_s9 + $0x344] ss:$16 sps:$4 sm:$0xff]   ;;  %v8135_v52 = vld [vmem:[%s10015_s9 + $0x34c] ss:$16 sps:$4 sm:$0xff]  }
 0x592   : > { %5036 = vmatprep.subr.bf16.mxu0 %v8060_v25  ;;  %5077 = vmatprep.subr.bf16.mxu1 %v8063_v19  ;;  %v8130_v25 = vld [vmem:[%s10015_s9 + $0x340] ss:$16 sps:$4 sm:$0xff]   ;;  %v8133_v19 = vld [vmem:[%s10015_s9 + $0x348] ss:$16 sps:$4 sm:$0xff]  }
 0x594   : > { %7025 = vmatmul.mubr.msk.bf16.vlgmr.msra.gmra.mrb[216].mxu0 %vm706_vm4, %v4827_v2  ;;  %7026 = vmatmul.mubr.msk.bf16.vlgmr.msra.gmra.mrb[188].mxu1 %vm706_vm4, %v4827_v2  ;;  %v8141_v2 = vld [vmem:[%s10015_s9 + $0x36c] ss:$16 sps:$4 sm:$0xff]  }
 0x595   : > { %5037 = vmatpush1.bf16.msra.mxu0 %v8058_v8  ;;  %5078 = vmatpush1.bf16.msra.mxu1 %v8061_v26  ;;  %v5824_v8 = vrot.slane %v5813_v57, 3  ;;  %v8138_v26 = vld [vmem:[%s10015_s9 + $0x364] ss:$16 sps:$4 sm:$0xff]  }
 0x596   : > { %5038 = vmatprep.subr.bf16.mxu0 %v8066_v24  ;;  %5079 = vmatprep.subr.bf16.mxu1 %v8069_v46  ;;  %v8136_v24 = vld [vmem:[%s10015_s9 + $0x360] ss:$16 sps:$4 sm:$0xff]   ;;  %v8139_v46 = vld [vmem:[%s10015_s9 + $0x368] ss:$16 sps:$4 sm:$0xff]  }
 0x597   : > { %5068 = vmatprep.mubr.bf16.mxu0 %v8180_v36  ;;  %5109 = vmatprep.mubr.bf16.mxu1 %v8180_v36 }
 0x599   : > { %5039 = vmatpush1.bf16.msra.mxu0 %v8064_v9  ;;  %5080 = vmatpush1.bf16.msra.mxu1 %v8067_v12  ;;  %v5990_v9 = vshrl.u32 %v5813_v57, 16  ;;  %v8144_v12 = vld [vmem:[%s10015_s9 + $0x384] ss:$16 sps:$4 sm:$0xff]  }
 0x59a   : > { %5203 = vmatprep.subr.bf16.mxu0 %v8072_v27  ;;  %5244 = vmatprep.subr.bf16.mxu1 %v8075_v38  ;;  %v8142_v27 = vld [vmem:[%s10015_s9 + $0x380] ss:$16 sps:$4 sm:$0xff]   ;;  %v8145_v38 = vld [vmem:[%s10015_s9 + $0x388] ss:$16 sps:$4 sm:$0xff]  }
 0x59c   : > { %7043 = vmatmul.mubr.msk.bf16.vlgmr.msra.gmra.mrb[220].mxu0 %vm706_vm4, %v4992_v3  ;;  %7044 = vmatmul.mubr.msk.bf16.vlgmr.msra.gmra.mrb[192].mxu1 %vm706_vm4, %v4992_v3  ;;  %v8148_v3 = vld [vmem:[%s10015_s9 + $0x3a0] ss:$16 sps:$4 sm:$0xff]  }
 0x59d   : > { %5204 = vmatpush1.bf16.msra.mxu0 %v8070_v44  ;;  %5245 = vmatpush1.bf16.msra.mxu1 %v8073_v34  ;;  %v5992_v44 = vrot.slane %v5990_v9, 3  ;;  %v8150_v34 = vld [vmem:[%s10015_s9 + $0x3a4] ss:$16 sps:$4 sm:$0xff]  }
 0x59e   : > { %5205 = vmatprep.subr.bf16.mxu0 %v8078_v58  ;;  %5246 = vmatprep.subr.bf16.mxu1 %v8081_v4  ;;  %v8151_v58 = vld [vmem:[%s10015_s9 + $0x3a8] ss:$16 sps:$4 sm:$0xff]   ;;  %v3820_v4 = vmax.f32 %v9537_v29, 0.0  ;;  %v8154_v29 = vld [vmem:[%s10015_s9 + $0x3c0] ss:$16 sps:$4 sm:$0xff]  }
 0x59f   : > { %5235 = vmatprep.mubr.bf16.mxu0 %v8180_v36  ;;  %5276 = vmatprep.mubr.bf16.mxu1 %v8180_v36 }
 0x5a1   : > { %5206 = vmatpush1.bf16.msra.mxu0 %v8076_v53  ;;  %5247 = vmatpush1.bf16.msra.mxu1 %v8079_v35  ;;  %v8156_v53 = vld [vmem:[%s10015_s9 + $0x3c4] ss:$16 sps:$4 sm:$0xff]   ;;  %v8159_v35 = vld [vmem:[%s10015_s9 + $0x3cc] ss:$16 sps:$4 sm:$0xff]  }
 0x5a2   : > { %5371 = vmatprep.subr.bf16.mxu0 %v8084_v45  ;;  %5412 = vmatprep.subr.bf16.mxu1 %v8087_v33  ;;  %v6148_v45 = vpack.c.bf16 %v3820_v4, %v3820_v4  ;;  %v8162_v33 = vld [vmem:[%s10015_s9 + $0x3e4] ss:$16 sps:$4 sm:$0xff]  }
 0x5a4   : > { %7061 = vmatmul.mubr.msk.bf16.vlgmr.msra.gmra.mrb[224].mxu0 %vm706_vm4, %v5159_v23  ;;  %7062 = vmatmul.mubr.msk.bf16.vlgmr.msra.gmra.mrb[196].mxu1 %vm706_vm4, %v5159_v23  ;;  %v8163_v23 = vld [vmem:[%s10015_s9 + $0x3e8] ss:$16 sps:$4 sm:$0xff]  }
 0x5a5   : > { %5372 = vmatpush1.bf16.msra.mxu0 %v8082_v13  ;;  %5413 = vmatpush1.bf16.msra.mxu1 %v8085_v62  ;;  %v8165_v13 = vld [vmem:[%s10015_s9 + $0x3ec] ss:$16 sps:$4 sm:$0xff]   ;;  %v8160_v62 = vld [vmem:[%s10015_s9 + $0x3e0] ss:$16 sps:$4 sm:$0xff]  }
 0x5a6   : > { %5373 = vmatprep.subr.bf16.mxu0 %v8090_v37  ;;  %5414 = vmatprep.subr.bf16.mxu1 %v8093_v18  ;;  %v6322_v37 = vshrl.u32 %v6148_v45, 16  ;;  %v8181_v18 = vmov 1966171168  }
 0x5a7   : > { %5403 = vmatprep.mubr.bf16.mxu0 %v8180_v36  ;;  %5444 = vmatprep.mubr.bf16.mxu1 %v8180_v36 }
 0x5a9   : > { %5374 = vmatpush1.bf16.msra.mxu0 %v8088_v1  ;;  %5415 = vmatpush1.bf16.msra.mxu1 %v8091_v56  ;;  %v3963_v1 = vunpack.c.l.s4 %v8181_v18  ;;  %v3965_v56 = vlaneseq }
 0x5aa   : > { %5536 = vmatprep.subr.bf16.mxu0 %v8096_v5  ;;  %5577 = vmatprep.subr.bf16.mxu1 %v8099_v17 }
 0x5ab   : > { %v3964_v54 = vunpack.c.0.s8 %v3963_v1  ;;  %v9924_v5 = vshrl.u32 %v3965_v56, 7  ;;  %vm6567_vm11 = vcmp.lt.s32.totalorder %v3965_v56, 512 }
 0x5ac   : > { %7079 = vmatmul.mubr.msk.bf16.vlgmr.msra.gmra.mrb[228].mxu0 %vm706_vm4, %v5327_v51  ;;  %7080 = vmatmul.mubr.msk.bf16.vlgmr.msra.gmra.mrb[200].mxu1 %vm706_vm4, %v5327_v51 }
 0x5ad   : > { %5537 = vmatpush1.bf16.msra.mxu0 %v8094_v47  ;;  %5578 = vmatpush1.bf16.msra.mxu1 %v8097_v50  ;;  %v9927_v50 = vsub.s32 %v3964_v54, %v9924_v5 }
 0x5ae   : > { %5538 = vmatprep.subr.bf16.mxu0 %v8102_v48  ;;  %5579 = vmatprep.subr.bf16.mxu1 %v8105_v6 }
 0x5af   : > { %5568 = vmatprep.mubr.bf16.mxu0 %v8180_v36  ;;  %5609 = vmatprep.mubr.bf16.mxu1 %v8180_v36 }
 0x5b1   : > { %5539 = vmatpush1.bf16.msra.mxu0 %v8100_v30  ;;  %5580 = vmatpush1.bf16.msra.mxu1 %v8103_v49 }
 0x5b2   : > { %5701 = vmatprep.subr.bf16.mxu0 %v8108_v31  ;;  %5742 = vmatprep.subr.bf16.mxu1 %v8111_v10 }
 0x5b4   : > { %7097 = vmatmul.mubr.msk.bf16.vlgmr.msra.gmra.mrb[232].mxu0 %vm706_vm4, %v5492_v32  ;;  %7098 = vmatmul.mubr.msk.bf16.vlgmr.msra.gmra.mrb[204].mxu1 %vm706_vm4, %v5492_v32 }
 0x5b5   : > { %5702 = vmatpush1.bf16.msra.mxu0 %v8106_v55  ;;  %5743 = vmatpush1.bf16.msra.mxu1 %v8109_v21 }
 0x5b6   : > { %5703 = vmatprep.subr.bf16.mxu0 %v8114_v7  ;;  %5744 = vmatprep.subr.bf16.mxu1 %v8117_v41 }
 0x5b7   : > { %5733 = vmatprep.mubr.bf16.mxu0 %v8180_v36  ;;  %5774 = vmatprep.mubr.bf16.mxu1 %v8180_v36 }
 0x5b9   : > { %5704 = vmatpush1.bf16.msra.mxu0 %v8112_v22  ;;  %5745 = vmatpush1.bf16.msra.mxu1 %v8115_v40 }
 0x5ba   : > { %5868 = vmatprep.subr.bf16.mxu0 %v8120_v63  ;;  %5909 = vmatprep.subr.bf16.mxu1 %v8123_v42 }
 0x5bc   : > { %7115 = vmatmul.mubr.msk.bf16.vlgmr.msra.gmra.mrb[236].mxu0 %vm706_vm4, %v5657_v11  ;;  %7116 = vmatmul.mubr.msk.bf16.vlgmr.msra.gmra.mrb[208].mxu1 %vm706_vm4, %v5657_v11 }
 0x5bd   : > { %5869 = vmatpush1.bf16.msra.mxu0 %v8118_v14  ;;  %5910 = vmatpush1.bf16.msra.mxu1 %v8121_v15 }
 0x5be   : > { %5870 = vmatprep.subr.bf16.mxu0 %v8126_v60  ;;  %5911 = vmatprep.subr.bf16.mxu1 %v8129_v59 }
 0x5bf   : > { %5900 = vmatprep.mubr.bf16.mxu0 %v8180_v36  ;;  %5941 = vmatprep.mubr.bf16.mxu1 %v8180_v36 }
 0x5c1   : > { %5871 = vmatpush1.bf16.msra.mxu0 %v8124_v61  ;;  %5912 = vmatpush1.bf16.msra.mxu1 %v8127_v39  ;;  %v3821_v39 = vld [vmem:[%s10016_s10] sm:$0xf] }
 0x5c2   : > { %6036 = vmatprep.subr.bf16.mxu0 %v8132_v20  ;;  %6077 = vmatprep.subr.bf16.mxu1 %v8135_v52 }
 0x5c4   : > { %7133 = vmatmul.mubr.msk.bf16.vlgmr.msra.gmra.mrb[240].mxu0 %vm706_vm4, %v5824_v8  ;;  %7134 = vmatmul.mubr.msk.bf16.vlgmr.msra.gmra.mrb[212].mxu1 %vm706_vm4, %v5824_v8 }
 0x5c5   : > { %6037 = vmatpush1.bf16.msra.mxu0 %v8130_v25  ;;  %6078 = vmatpush1.bf16.msra.mxu1 %v8133_v19 }
 0x5c6   : > { %6038 = vmatprep.subr.bf16.mxu0 %v8138_v26  ;;  %6079 = vmatprep.subr.bf16.mxu1 %v8141_v2 }
 0x5c7   : > { %6068 = vmatprep.mubr.bf16.mxu0 %v8180_v36  ;;  %6109 = vmatprep.mubr.bf16.mxu1 %v8180_v36 }
 0x5c9   : > { %6039 = vmatpush1.bf16.msra.mxu0 %v8136_v24  ;;  %6080 = vmatpush1.bf16.msra.mxu1 %v8139_v46 }
 0x5ca   : > { %6201 = vmatprep.subr.bf16.mxu0 %v8144_v12  ;;  %6242 = vmatprep.subr.bf16.mxu1 %v8147_v28 }
 0x5cc   : > { %7151 = vmatmul.mubr.msk.bf16.vlgmr.msra.gmra.mrb[244].mxu0 %vm706_vm4, %v5992_v44  ;;  %7152 = vmatmul.mubr.msk.bf16.vlgmr.msra.gmra.mrb[216].mxu1 %vm706_vm4, %v5992_v44 }
 0x5cd   : > { %6202 = vmatpush1.bf16.msra.mxu0 %v8142_v27  ;;  %6243 = vmatpush1.bf16.msra.mxu1 %v8145_v38 }
 0x5ce   : > { %6203 = vmatprep.subr.bf16.mxu0 %v8150_v34  ;;  %6244 = vmatprep.subr.bf16.mxu1 %v8153_v16 }
 0x5cf   : > { %6233 = vmatprep.mubr.bf16.mxu0 %v8180_v36  ;;  %6274 = vmatprep.mubr.bf16.mxu1 %v8180_v36 }
 0x5d1   : > { %6204 = vmatpush1.bf16.msra.mxu0 %v8148_v3  ;;  %6245 = vmatpush1.bf16.msra.mxu1 %v8151_v58 }
 0x5d2   : > { %6367 = vmatprep.subr.bf16.mxu0 %v8156_v53  ;;  %6408 = vmatprep.subr.bf16.mxu1 %v8159_v35 }
 0x5d4   : > { %7169 = vmatmul.mubr.msk.bf16.vlgmr.msra.gmra.mrb[248].mxu0 %vm706_vm4, %v6148_v45  ;;  %7170 = vmatmul.mubr.msk.bf16.vlgmr.msra.gmra.mrb[220].mxu1 %vm706_vm4, %v6148_v45 }
 0x5d5   : > { %6368 = vmatpush1.bf16.msra.mxu0 %v8154_v29  ;;  %6409 = vmatpush1.bf16.msra.mxu1 %v8157_v43 }
 0x5d6   : > { %6369 = vmatprep.subr.bf16.mxu0 %v8162_v33  ;;  %6410 = vmatprep.subr.bf16.mxu1 %v8165_v13 }
 0x5d7   : > { %6399 = vmatprep.mubr.bf16.mxu0 %v8180_v36  ;;  %6440 = vmatprep.mubr.bf16.mxu1 %v8180_v36 }
 0x5d9   : > { %6370 = vmatpush1.bf16.msra.mxu0 %v8160_v62  ;;  %6411 = vmatpush1.bf16.msra.mxu1 %v8163_v23 }
 0x5dc   : > { %7187 = vmatmul.mubr.msk.bf16.vlgmr.msra.gmra.mrb[252].mxu0 %vm706_vm4, %v6322_v37  ;;  %7188 = vmatmul.mubr.msk.bf16.vlgmr.msra.gmra.mrb[224].mxu1 %vm706_vm4, %v6322_v37 }
 0x637   : > { %v3908_v17 = vpop.f32.mrb[192].mxu0  ;;  %v3949_v47 = vpop.f32.mrb[164].mxu1 }
 0x638   : > { %v3910_v36 = vpop.f32.mrb[193].mxu0  ;;  %v3951_v51 = vpop.f32.mrb[165].mxu1 }
 0x639   : > { %v3960_v48 = vcombine.low %v3908_v17, %v3910_v36  ;;  %v3961_v6 = vcombine.low %v3949_v47, %v3951_v51  ;;  %v3912_v30 = vpop.f32.mrb[194].mxu0  ;;  %v3953_v49 = vpop.f32.mrb[166].mxu1 }
 0x63a   : > { %v3913_v31 = vpop.f32.mrb[195].mxu0  ;;  %v3954_v10 = vpop.f32.mrb[167].mxu1 }
 0x63b   : > { %v3968_v55 = vrot.slane %v3960_v48, %v9927_v50  ;;  %v3975_v21 = vrot.slane %v3961_v6, %v9927_v50 }
 0x63d   : > { %v3976_v32 = vcombine.low %v3968_v55, %v3975_v21 }
 0x63f   : > { %v4074_v7 = vpop.f32.mrb[196].mxu0  ;;  %v4115_v41 = vpop.f32.mrb[168].mxu1  ;;  %v3983_v60 = vrot.slane %v3976_v32, %v9927_v50 }
 0x640   : > { %v4076_v22 = vpop.f32.mrb[197].mxu0  ;;  %v4117_v40 = vpop.f32.mrb[169].mxu1 }
 0x641   : > { %v4126_v63 = vcombine.low %v4074_v7, %v4076_v22  ;;  %v4127_v42 = vcombine.low %v4115_v41, %v4117_v40  ;;  %v4078_v14 = vpop.f32.mrb[198].mxu0  ;;  %v4119_v15 = vpop.f32.mrb[170].mxu1  ;;  %v3985_v20 = vadd.f32 %v3983_v60, %v3821_v39 }
 0x642   : > { %v4079_v0 = vpop.f32.mrb[199].mxu0  ;;  %v4120_v11 = vpop.f32.mrb[171].mxu1 }
 0x643   : > { %v4134_v59 = vrot.slane %v4126_v63, %v9927_v50  ;;  %v4141_v61 = vrot.slane %v4127_v42, %v9927_v50 }
 0x645   : > { %v4142_v57 = vcombine.low %v4134_v59, %v4141_v61 }
 0x647   : > { %v4149_v52 = vrot.slane %v4142_v57, %v9927_v50  ;;  %v4240_v25 = vpop.f32.mrb[200].mxu0  ;;  %v4281_v19 = vpop.f32.mrb[172].mxu1 }
 0x648   : > { %v4242_v8 = vpop.f32.mrb[201].mxu0  ;;  %v4283_v26 = vpop.f32.mrb[173].mxu1 }
 0x649   : > { %v4151_v2 = vadd.f32 %v4149_v52, %v3985_v20  ;;  %v4292_v24 = vcombine.low %v4240_v25, %v4242_v8  ;;  %v4293_v46 = vcombine.low %v4281_v19, %v4283_v26  ;;  %v4244_v9 = vpop.f32.mrb[202].mxu0  ;;  %v4285_v12 = vpop.f32.mrb[174].mxu1 }
 0x64a   : > { %v4245_v28 = vpop.f32.mrb[203].mxu0  ;;  %v4286_v27 = vpop.f32.mrb[175].mxu1 }
 0x64b   : > { %v4300_v38 = vrot.slane %v4292_v24, %v9927_v50  ;;  %v4307_v44 = vrot.slane %v4293_v46, %v9927_v50 }
 0x64d   : > { %v4308_v34 = vcombine.low %v4300_v38, %v4307_v44 }
 0x64f   : > { %v4315_v16 = vrot.slane %v4308_v34, %v9927_v50  ;;  %v4405_v3 = vpop.f32.mrb[204].mxu0  ;;  %v4446_v58 = vpop.f32.mrb[176].mxu1 }
 0x650   : > { %v4407_v4 = vpop.f32.mrb[205].mxu0  ;;  %v4448_v53 = vpop.f32.mrb[177].mxu1 }
 0x651   : > { %v4317_v35 = vadd.f32 %v4315_v16, %v4151_v2  ;;  %v4457_v29 = vcombine.low %v4405_v3, %v4407_v4  ;;  %v4458_v43 = vcombine.low %v4446_v58, %v4448_v53  ;;  %v4409_v45 = vpop.f32.mrb[206].mxu0  ;;  %v4450_v33 = vpop.f32.mrb[178].mxu1 }
 0x652   : > { %v4410_v13 = vpop.f32.mrb[207].mxu0  ;;  %v4451_v62 = vpop.f32.mrb[179].mxu1 }
 0x653   : > { %v4465_v23 = vrot.slane %v4457_v29, %v9927_v50  ;;  %v4472_v37 = vrot.slane %v4458_v43, %v9927_v50 }
 0x655   : > { %v4473_v18 = vcombine.low %v4465_v23, %v4472_v37 }
 0x657   : > { %v4480_v1 = vrot.slane %v4473_v18, %v9927_v50  ;;  %v4572_v54 = vpop.f32.mrb[208].mxu0  ;;  %v4613_v17 = vpop.f32.mrb[180].mxu1 }
 0x658   : > { %v4574_v47 = vpop.f32.mrb[209].mxu0  ;;  %v4615_v36 = vpop.f32.mrb[181].mxu1 }
 0x659   : > { %v4482_v51 = vadd.f32 %v4480_v1, %v4317_v35  ;;  %v4624_v48 = vcombine.low %v4572_v54, %v4574_v47  ;;  %v4625_v6 = vcombine.low %v4613_v17, %v4615_v36  ;;  %v4576_v30 = vpop.f32.mrb[210].mxu0  ;;  %v4617_v49 = vpop.f32.mrb[182].mxu1 }
 0x65a   : > { %v4577_v31 = vpop.f32.mrb[211].mxu0  ;;  %v4618_v10 = vpop.f32.mrb[183].mxu1 }
 0x65b   : > { %v4632_v55 = vrot.slane %v4624_v48, %v9927_v50  ;;  %v4639_v21 = vrot.slane %v4625_v6, %v9927_v50 }
 0x65d   : > { %v4640_v32 = vcombine.low %v4632_v55, %v4639_v21 }
 0x65f   : > { %v4647_v7 = vrot.slane %v4640_v32, %v9927_v50  ;;  %v4740_v41 = vpop.f32.mrb[212].mxu0  ;;  %v4781_v22 = vpop.f32.mrb[184].mxu1 }
 0x660   : > { %v4742_v40 = vpop.f32.mrb[213].mxu0  ;;  %v4783_v63 = vpop.f32.mrb[185].mxu1 }
 0x661   : > { %v4649_v42 = vadd.f32 %v4647_v7, %v4482_v51  ;;  %v4792_v14 = vcombine.low %v4740_v41, %v4742_v40  ;;  %v4793_v15 = vcombine.low %v4781_v22, %v4783_v63  ;;  %v4744_v0 = vpop.f32.mrb[214].mxu0  ;;  %v4785_v11 = vpop.f32.mrb[186].mxu1 }
 0x662   : > { %v4745_v60 = vpop.f32.mrb[215].mxu0  ;;  %v4786_v59 = vpop.f32.mrb[187].mxu1 }
 0x663   : > { %v4800_v61 = vrot.slane %v4792_v14, %v9927_v50  ;;  %v4807_v39 = vrot.slane %v4793_v15, %v9927_v50 }
 0x665   : > { %v4808_v57 = vcombine.low %v4800_v61, %v4807_v39 }
 0x667   : > { %v4815_v20 = vrot.slane %v4808_v57, %v9927_v50  ;;  %v4905_v52 = vpop.f32.mrb[216].mxu0  ;;  %v4946_v25 = vpop.f32.mrb[188].mxu1 }
 0x668   : > { %v4907_v19 = vpop.f32.mrb[217].mxu0  ;;  %v4948_v8 = vpop.f32.mrb[189].mxu1 }
 0x669   : > { %v4817_v26 = vadd.f32 %v4815_v20, %v4649_v42  ;;  %v4957_v2 = vcombine.low %v4905_v52, %v4907_v19  ;;  %v4958_v24 = vcombine.low %v4946_v25, %v4948_v8  ;;  %v4909_v46 = vpop.f32.mrb[218].mxu0  ;;  %v4950_v9 = vpop.f32.mrb[190].mxu1 }
 0x66a   : > { %v4910_v12 = vpop.f32.mrb[219].mxu0  ;;  %v4951_v28 = vpop.f32.mrb[191].mxu1 }
 0x66b   : > { %v4965_v27 = vrot.slane %v4957_v2, %v9927_v50  ;;  %v4972_v38 = vrot.slane %v4958_v24, %v9927_v50 }
 0x66d   : > { %v4973_v44 = vcombine.low %v4965_v27, %v4972_v38 }
 0x66f   : > { %v4980_v34 = vrot.slane %v4973_v44, %v9927_v50  ;;  %v5070_v16 = vpop.f32.mrb[220].mxu0  ;;  %v5111_v3 = vpop.f32.mrb[192].mxu1 }
 0x670   : > { %v5072_v58 = vpop.f32.mrb[221].mxu0  ;;  %v5113_v4 = vpop.f32.mrb[193].mxu1 }
 0x671   : > { %v4982_v53 = vadd.f32 %v4980_v34, %v4817_v26  ;;  %v5122_v35 = vcombine.low %v5070_v16, %v5072_v58  ;;  %v5123_v29 = vcombine.low %v5111_v3, %v5113_v4  ;;  %v5074_v43 = vpop.f32.mrb[222].mxu0  ;;  %v5115_v45 = vpop.f32.mrb[194].mxu1 }
 0x672   : > { %v5075_v33 = vpop.f32.mrb[223].mxu0  ;;  %v5116_v13 = vpop.f32.mrb[195].mxu1 }
 0x673   : > { %v5130_v62 = vrot.slane %v5122_v35, %v9927_v50  ;;  %v5137_v23 = vrot.slane %v5123_v29, %v9927_v50 }
 0x675   : > { %v5138_v37 = vcombine.low %v5130_v62, %v5137_v23 }
 0x677   : > { %v5145_v18 = vrot.slane %v5138_v37, %v9927_v50  ;;  %v5237_v1 = vpop.f32.mrb[224].mxu0  ;;  %v5278_v54 = vpop.f32.mrb[196].mxu1 }
 0x678   : > { %v5239_v17 = vpop.f32.mrb[225].mxu0  ;;  %v5280_v47 = vpop.f32.mrb[197].mxu1 }
 0x679   : > { %v5147_v36 = vadd.f32 %v5145_v18, %v4982_v53  ;;  %v5289_v51 = vcombine.low %v5237_v1, %v5239_v17  ;;  %v5290_v48 = vcombine.low %v5278_v54, %v5280_v47  ;;  %v5241_v6 = vpop.f32.mrb[226].mxu0  ;;  %v5282_v30 = vpop.f32.mrb[198].mxu1 }
 0x67a   : > { %v5242_v49 = vpop.f32.mrb[227].mxu0  ;;  %v5283_v31 = vpop.f32.mrb[199].mxu1 }
 0x67b   : > { %v5297_v10 = vrot.slane %v5289_v51, %v9927_v50  ;;  %v5304_v55 = vrot.slane %v5290_v48, %v9927_v50 }
 0x67d   : > { %v5305_v21 = vcombine.low %v5297_v10, %v5304_v55 }
 0x67f   : > { %v5312_v32 = vrot.slane %v5305_v21, %v9927_v50  ;;  %v5405_v7 = vpop.f32.mrb[228].mxu0  ;;  %v5446_v41 = vpop.f32.mrb[200].mxu1 }
 0x680   : > { %v5407_v22 = vpop.f32.mrb[229].mxu0  ;;  %v5448_v40 = vpop.f32.mrb[201].mxu1 }
 0x681   : > { %v5314_v63 = vadd.f32 %v5312_v32, %v5147_v36  ;;  %v5457_v42 = vcombine.low %v5405_v7, %v5407_v22  ;;  %v5458_v14 = vcombine.low %v5446_v41, %v5448_v40  ;;  %v5409_v15 = vpop.f32.mrb[230].mxu0  ;;  %v5450_v0 = vpop.f32.mrb[202].mxu1 }
 0x682   : > { %v5410_v11 = vpop.f32.mrb[231].mxu0  ;;  %v5451_v60 = vpop.f32.mrb[203].mxu1 }
 0x683   : > { %v5465_v59 = vrot.slane %v5457_v42, %v9927_v50  ;;  %v5472_v61 = vrot.slane %v5458_v14, %v9927_v50 }
 0x685   : > { %v5473_v39 = vcombine.low %v5465_v59, %v5472_v61 }
 0x687   : > { %v5480_v57 = vrot.slane %v5473_v39, %v9927_v50  ;;  %v5570_v20 = vpop.f32.mrb[232].mxu0  ;;  %v5611_v52 = vpop.f32.mrb[204].mxu1 }
 0x688   : > { %v5572_v25 = vpop.f32.mrb[233].mxu0  ;;  %v5613_v19 = vpop.f32.mrb[205].mxu1 }
 0x689   : > { %v5482_v8 = vadd.f32 %v5480_v57, %v5314_v63  ;;  %v5622_v26 = vcombine.low %v5570_v20, %v5572_v25  ;;  %v5623_v2 = vcombine.low %v5611_v52, %v5613_v19  ;;  %v5574_v24 = vpop.f32.mrb[234].mxu0  ;;  %v5615_v46 = vpop.f32.mrb[206].mxu1 }
 0x68a   : > { %v5575_v9 = vpop.f32.mrb[235].mxu0  ;;  %v5616_v12 = vpop.f32.mrb[207].mxu1 }
 0x68b   : > { %v5630_v28 = vrot.slane %v5622_v26, %v9927_v50  ;;  %v5637_v27 = vrot.slane %v5623_v2, %v9927_v50 }
 0x68d   : > { %v5638_v38 = vcombine.low %v5630_v28, %v5637_v27 }
 0x68f   : > { %v5645_v44 = vrot.slane %v5638_v38, %v9927_v50  ;;  %v5735_v34 = vpop.f32.mrb[236].mxu0  ;;  %v5776_v16 = vpop.f32.mrb[208].mxu1 }
 0x690   : > { %v5737_v3 = vpop.f32.mrb[237].mxu0  ;;  %v5778_v58 = vpop.f32.mrb[209].mxu1 }
 0x691   : > { %v5647_v4 = vadd.f32 %v5645_v44, %v5482_v8  ;;  %v5787_v53 = vcombine.low %v5735_v34, %v5737_v3  ;;  %v5788_v35 = vcombine.low %v5776_v16, %v5778_v58  ;;  %v5739_v29 = vpop.f32.mrb[238].mxu0  ;;  %v5780_v43 = vpop.f32.mrb[210].mxu1 }
 0x692   : > { %v5740_v45 = vpop.f32.mrb[239].mxu0  ;;  %v5781_v33 = vpop.f32.mrb[211].mxu1 }
 0x693   : > { %v5795_v13 = vrot.slane %v5787_v53, %v9927_v50  ;;  %v5802_v62 = vrot.slane %v5788_v35, %v9927_v50 }
 0x695   : > { %v5803_v23 = vcombine.low %v5795_v13, %v5802_v62 }
 0x697   : > { %v5810_v37 = vrot.slane %v5803_v23, %v9927_v50  ;;  %v5902_v18 = vpop.f32.mrb[240].mxu0  ;;  %v5943_v1 = vpop.f32.mrb[212].mxu1 }
 0x698   : > { %v5904_v54 = vpop.f32.mrb[241].mxu0  ;;  %v5945_v17 = vpop.f32.mrb[213].mxu1 }
 0x699   : > { %v5812_v47 = vadd.f32 %v5810_v37, %v5647_v4  ;;  %v5954_v36 = vcombine.low %v5902_v18, %v5904_v54  ;;  %v5955_v51 = vcombine.low %v5943_v1, %v5945_v17  ;;  %v5906_v48 = vpop.f32.mrb[242].mxu0  ;;  %v5947_v6 = vpop.f32.mrb[214].mxu1  ;;  %v6482_v37 = vsub.s32 0, %v9924_v5 }
 0x69a   : > { %v5907_v30 = vpop.f32.mrb[243].mxu0  ;;  %v5948_v49 = vpop.f32.mrb[215].mxu1  ;;  %v6486_v18 = vsub.s32 1, %v9924_v5  ;;  %v6490_v1 = vsub.s32 2, %v9924_v5  ;;  %v6494_v17 = vsub.s32 3, %v9924_v5 }
 0x69b   : > { %v5962_v31 = vrot.slane %v5954_v36, %v9927_v50  ;;  %v5969_v10 = vrot.slane %v5955_v51, %v9927_v50 }
 0x69d   : > { %v5970_v55 = vcombine.low %v5962_v31, %v5969_v10 }
 0x69f   : > { %v5977_v21 = vrot.slane %v5970_v55, %v9927_v50  ;;  %v6070_v32 = vpop.f32.mrb[244].mxu0  ;;  %v6111_v7 = vpop.f32.mrb[216].mxu1 }
 0x6a0   : > { %v6072_v41 = vpop.f32.mrb[245].mxu0  ;;  %v6113_v22 = vpop.f32.mrb[217].mxu1 }
 0x6a1   : > { %v5979_v40 = vadd.f32 %v5977_v21, %v5812_v47  ;;  %v6122_v63 = vcombine.low %v6070_v32, %v6072_v41  ;;  %v6123_v42 = vcombine.low %v6111_v7, %v6113_v22  ;;  %v6074_v14 = vpop.f32.mrb[246].mxu0  ;;  %v6115_v15 = vpop.f32.mrb[218].mxu1 }
 0x6a2   : > { %v6075_v0 = vpop.f32.mrb[247].mxu0  ;;  %v6116_v11 = vpop.f32.mrb[219].mxu1 }
 0x6a3   : > { %v6130_v60 = vrot.slane %v6122_v63, %v9927_v50  ;;  %v6137_v59 = vrot.slane %v6123_v42, %v9927_v50 }
 0x6a5   : > { %v6138_v61 = vcombine.low %v6130_v60, %v6137_v59 }
 0x6a7   : > { %v6145_v39 = vrot.slane %v6138_v61, %v9927_v50  ;;  %v6235_v57 = vpop.f32.mrb[248].mxu0  ;;  %v6276_v20 = vpop.f32.mrb[220].mxu1 }
 0x6a8   : > { %v6237_v52 = vpop.f32.mrb[249].mxu0  ;;  %v6278_v25 = vpop.f32.mrb[221].mxu1 }
 0x6a9   : > { %v6147_v19 = vadd.f32 %v6145_v39, %v5979_v40  ;;  %v6287_v8 = vcombine.low %v6235_v57, %v6237_v52  ;;  %v6288_v26 = vcombine.low %v6276_v20, %v6278_v25  ;;  %v6239_v2 = vpop.f32.mrb[250].mxu0  ;;  %v6280_v24 = vpop.f32.mrb[222].mxu1 }
 0x6aa   : > { %v6240_v46 = vpop.f32.mrb[251].mxu0  ;;  %v6281_v9 = vpop.f32.mrb[223].mxu1 }
 0x6ab   : > { %v6295_v12 = vrot.slane %v6287_v8, %v9927_v50  ;;  %v6302_v28 = vrot.slane %v6288_v26, %v9927_v50  ;;  %v6562_v26 = vld [vmem:[%s10018_s12] sm:$0xf] }
 0x6ad   : > { %v6303_v27 = vcombine.low %v6295_v12, %v6302_v28 }
 0x6af   : > { %v6310_v38 = vrot.slane %v6303_v27, %v9927_v50  ;;  %v6401_v44 = vpop.f32.mrb[252].mxu0  ;;  %v6442_v34 = vpop.f32.mrb[224].mxu1 }
 0x6b0   : > { %v6403_v16 = vpop.f32.mrb[253].mxu0  ;;  %v6444_v3 = vpop.f32.mrb[225].mxu1 }
 0x6b1   : > { %v6312_v58 = vadd.f32 %v6310_v38, %v6147_v19  ;;  %v6453_v4 = vcombine.low %v6401_v44, %v6403_v16  ;;  %v6454_v53 = vcombine.low %v6442_v34, %v6444_v3  ;;  %v6405_v35 = vpop.f32.mrb[254].mxu0  ;;  %v6446_v29 = vpop.f32.mrb[226].mxu1  ;;  %v6560_v19 = vld [vmem:[%s10017_s11] sm:$0xf] }
 0x6b2   : > { %v6406_v43 = vpop.f32.mrb[255].mxu0  ;;  %v6447_v45 = vpop.f32.mrb[227].mxu1 }
 0x6b3   : > { %v6461_v33 = vrot.slane %v6453_v4, %v9927_v50  ;;  %v6468_v13 = vrot.slane %v6454_v53, %v9927_v50 }
 0x6b5   : > { %v6469_v62 = vcombine.low %v6461_v33, %v6468_v13 }
 0x6b7   : > { %v6476_v23 = vrot.slane %v6469_v62, %v9927_v50 }
 0x6b9   : > { %v6478_v54 = vadd.f32 %v6476_v23, %v6312_v58 }
 0x6bb   : > { %v6483_v47 = vrot.slane %v6478_v54, %v6482_v37  ;;  %v6487_v36 = vrot.slane %v6478_v54, %v6486_v18  ;;  %v6491_v51 = vrot.slane %v6478_v54, %v6490_v1  ;;  %v6495_v48 = vrot.slane %v6478_v54, %v6494_v17 }
 0x6bd   : > { %v6501_v6 = vsel %vm6500_vm10, %v6483_v47, 0.0  ;;  %v6502_v30 = vsel %vm6500_vm10, %v6487_v36, 0.0  ;;  %v6504_v50 = vsel %vm6500_vm10, %v6491_v51, 0.0  ;;  %v6506_v10 = vsel %vm6500_vm10, %v6495_v48, 0.0 }
 0x6be   : > { %v6503_v49 = vadd.f32 %v6502_v30, %v6501_v6 }
 0x6c0   : > { %v6505_v31 = vadd.f32 %v6504_v50, %v6503_v49 }
 0x6c2   : > { %v6507_v55 = vadd.f32 %v6506_v10, %v6505_v31 }
 0x6c4   : > { %6508 = vadd.xlane.f32.xlu0 %v6507_v55 }
 0x751   : > { %v6509_v21 = vpop.xlane.xlu0 %6508 }
 0x752   : > { %v6511_v32 = vmul.f32 0.001953125, %v6509_v21 }
 0x754   : > { %v6516_v5 = vrot.slane %v6511_v32, %v6482_v37 }
 0x756   : > { %v6518_v7 = vsub.f32 %v6478_v54, %v6516_v5 }
 0x758   : > { %v6519_v41 = vmul.f32 %v6518_v7, %v6518_v7 }
 0x75a   : > { %v6524_v22 = vrot.slane %v6519_v41, %v6482_v37  ;;  %v6528_v40 = vrot.slane %v6519_v41, %v6486_v18  ;;  %v6532_v63 = vrot.slane %v6519_v41, %v6490_v1  ;;  %v6536_v42 = vrot.slane %v6519_v41, %v6494_v17 }
 0x75c   : > { %v6541_v14 = vsel %vm6500_vm10, %v6524_v22, 0.0  ;;  %v6542_v15 = vsel %vm6500_vm10, %v6528_v40, 0.0  ;;  %v6544_v11 = vsel %vm6500_vm10, %v6532_v63, 0.0  ;;  %v6546_v59 = vsel %vm6500_vm10, %v6536_v42, 0.0 }
 0x75d   : > { %v6543_v0 = vadd.f32 %v6542_v15, %v6541_v14 }
 0x75f   : > { %v6545_v60 = vadd.f32 %v6544_v11, %v6543_v0 }
 0x761   : > { %v6547_v61 = vadd.f32 %v6546_v59, %v6545_v60 }
 0x763   : > { %6548 = vadd.xlane.f32.xlu0 %v6547_v61 }
 0x7f0   : > { %v6549_v39 = vpop.xlane.xlu0 %6548 }
 0x7f1   : > { %v6550_v57 = vmul.f32 0.001953125, %v6549_v39 }
 0x7f3   : > { %v6551_v20 = vadd.f32 1e-05, %v6550_v57 }
 0x7f5   : > { %8166 = vrsqrt.f32 %v6551_v20 }
 0x7ff   : > { %v8167_v52 = vpop.eup %8166 }
 0x800   : > { %v6557_v25 = vrot.slane %v8167_v52, %v6482_v37 }
 0x802   : > { %v6559_v8 = vmul.f32 %v6557_v25, %v6518_v7 }
 0x804   : > { %v6561_v2 = vmul.f32 %v6560_v19, %v6559_v8 }
 0x806   : > { %v6563_v24 = vadd.f32 %v6562_v26, %v6561_v2 }
 0x808   : > { %8168 = vtanh.f32 %v6563_v24 }
 0x812   : > { %v8169_v46 = vpop.eup %8168 }
 0x813   : > { %6569 = vst.msk [vmem:[%s438_s28] sm:$0xf] %vm6567_vm11, %v8169_v46 }
 0x814 PF: > { %s23_s25 = sadd.s32 1, %s8176_s25  }
 0x815   : > { %p20_p4 = scmp.ge.s32.totalorder %s23_s25, 4  }
 0x817   :  { %22 = sbr.rel (!%p20_p4) target bundleno = 1 (0x1), region = 141 }

</bundles_post_ra>
